<compile_context>
chip_gen: v5e
topology: v5e:2x2
jax: 0.10.0
libtpu: 0.0.40
codegen_flags: <defaults>
</compile_context>

<pallas_src>
import functools

import jax
import jax.numpy as jnp
from jax.experimental import pallas as pl
from jax.experimental.pallas import tpu as pltpu

_VMEM_LIMIT = 48 * 1024 * 1024  # > default scoped 32 MiB, < v7x physical 64 MiB


def _round_up(x, n):
    return ((x + n - 1) // n) * n


# ----------------------------------------------------------------------------
# Kernel 1: fused vector-quantization + post_quant_conv (1x1)
#   grid = (M tiles ["parallel"], codebook tiles ["arbitrary"])
#   running (dmin, best gathered row) carried in VMEM scratch across K tiles.
# ----------------------------------------------------------------------------
def _vq_pq_kernel(z_ref, e_ref, esq_ref, epq_ref, b_ref, o_ref,
                  dmin_ref, acc_ref):
    kk = pl.program_id(1)

    @pl.when(kk == 0)
    def _():
        dmin_ref[...] = jnp.full(dmin_ref.shape, 1e30, dmin_ref.dtype)
        acc_ref[...] = jnp.zeros(acc_ref.shape, acc_ref.dtype)

    # distance matmul kept in f32 so the argmin matches the f32 reference
    # exactly (D is small; the MXU is nowhere near the bottleneck here).
    z = z_ref[...].astype(jnp.float32)                       # [TM, D]
    e = e_ref[...].astype(jnp.float32)                       # [TK, D]
    tk = e.shape[0]
    # ||z||^2 dropped: constant w.r.t. the argmin over codebook entries.
    d = esq_ref[...] - 2.0 * jax.lax.dot_general(
        z, e, (((1,), (1,)), ((), ())),
        preferred_element_type=jnp.float32)                  # [TM, TK]

    loc_min = jnp.min(d, axis=1, keepdims=True)              # [TM, 1]
    iota = jax.lax.broadcasted_iota(jnp.int32, d.shape, 1)
    # first-index tie-breaking within the tile (matches torch.argmin)
    loc_idx = jnp.min(jnp.where(d <= loc_min, iota, tk), axis=1)
    onehot = (iota == loc_idx[:, None]).astype(jnp.float32)  # [TM, TK]
    # gather of (codebook @ pq_w): the 1x1 post_quant_conv is fused here.
    loc_val = jnp.dot(onehot, epq_ref[...].astype(jnp.float32),
                      preferred_element_type=jnp.float32)    # [TM, Z]

    better = loc_min < dmin_ref[...]   # strict '<': earlier K tile wins ties
    dmin_ref[...] = jnp.where(better, loc_min, dmin_ref[...])
    acc_ref[...] = jnp.where(better, loc_val, acc_ref[...])

    @pl.when(kk == pl.num_programs(1) - 1)
    def _():
        o_ref[...] = (acc_ref[...] + b_ref[...]).astype(o_ref.dtype)


def vq_postquant_pallas(z_flat, codebook, pq_w, pq_b, *, tile_m=512,
                        tile_k=512, out_dtype=jnp.bfloat16):
    m, dd = z_flat.shape
    kk, dd2 = codebook.shape
    assert dd == dd2
    zch = pq_w.shape[1]

    # hoisted codebook-derived constants (computed once, not per grid step)
    e_sq = jnp.sum(codebook * codebook, axis=1)[None, :]        # (1, K)
    e_pq = codebook @ pq_w                                      # (K, Z) f32

    # M handling: pad to a multiple of tile_m (junk rows sliced off after).
    tile_m = min(tile_m, _round_up(m, 8))
    mp = _round_up(m, tile_m)
    if mp != m:
        z_flat = jnp.pad(z_flat, ((0, mp - m), (0, 0)))

    # K handling: pad with entries at distance 1e30 so they never win.
    tile_k = min(tile_k, _round_up(kk, 8))
    kp = _round_up(kk, tile_k)
    if kp != kk:
        codebook = jnp.pad(codebook, ((0, kp - kk), (0, 0)))
        e_pq = jnp.pad(e_pq, ((0, kp - kk), (0, 0)))
        e_sq = jnp.pad(e_sq, ((0, 0), (0, kp - kk)), constant_values=1e30)

    grid = (mp // tile_m, kp // tile_k)
    out = pl.pallas_call(
        _vq_pq_kernel,
        out_shape=jax.ShapeDtypeStruct((mp, zch), out_dtype),
        grid=grid,
        in_specs=[
            pl.BlockSpec((tile_m, dd), lambda i, k: (i, 0)),
            pl.BlockSpec((tile_k, dd), lambda i, k: (k, 0)),
            pl.BlockSpec((1, tile_k), lambda i, k: (0, k)),
            pl.BlockSpec((tile_k, zch), lambda i, k: (k, 0)),
            pl.BlockSpec((1, zch), lambda i, k: (0, 0)),
        ],
        out_specs=pl.BlockSpec((tile_m, zch), lambda i, k: (i, 0)),
        scratch_shapes=[
            pltpu.VMEM((tile_m, 1), jnp.float32),     # running min distance
            pltpu.VMEM((tile_m, zch), jnp.float32),   # running best value
        ],
        compiler_params=pltpu.CompilerParams(
            dimension_semantics=("parallel", "arbitrary"),
            vmem_limit_bytes=_VMEM_LIMIT),
    )(z_flat, codebook, e_sq, e_pq, pq_b)
    return out[:m]


# ----------------------------------------------------------------------------
# Kernel 2: 3x3 "same" conv, no im2col.  One padded-image halo tile per batch
# element; 9 shifted slices x 9 bf16 MXU matmuls accumulated in f32, fused
# bias + (swish | final (x+1)/2 clamp) epilogue, lane-dense padded-N output.
# ----------------------------------------------------------------------------
def _conv3x3_kernel(x_ref, w_ref, b_ref, o_ref, *, mode):
    x = x_ref[0]                        # [H+2, W+2, C]  (halo tile, bf16)
    hh = x.shape[0] - 2
    ww = x.shape[1] - 2
    c = x.shape[2]
    cp = w_ref.shape[1]

    acc = jnp.zeros((hh * ww, cp), jnp.float32)
    for di in range(3):
        for dj in range(3):
            t = di * 3 + dj
            patch = x[di:di + hh, dj:dj + ww, :].reshape(hh * ww, c)
            acc = acc + jnp.dot(
                patch.astype(jnp.bfloat16),
                w_ref[t * c:(t + 1) * c, :].astype(jnp.bfloat16),
                preferred_element_type=jnp.float32)

    y = acc + b_ref[...].astype(jnp.float32)
    if mode == "swish":
        y = y * jax.nn.sigmoid(y)            # VQGAN nonlinearity
    elif mode == "out":
        # decode(...).add(1).div(2) then clamp_with_grad(., 0, 1) forward
        y = jnp.clip((y + 1.0) * 0.5, 0.0, 1.0)
    o_ref[0] = y.astype(o_ref.dtype)


def conv3x3_pallas(x_nhwc, w_flat, b_row, *, mode="none",
                   out_dtype=jnp.bfloat16):
    bsz, hh, ww, c = x_nhwc.shape
    kc, cp = w_flat.shape
    assert kc == 9 * c
    xp = jnp.pad(x_nhwc, ((0, 0), (1, 1), (1, 1), (0, 0)))   # spatial halo pad

    out = pl.pallas_call(
        functools.partial(_conv3x3_kernel, mode=mode),
        out_shape=jax.ShapeDtypeStruct((bsz, hh * ww, cp), out_dtype),
        grid=(bsz,),
        in_specs=[
            pl.BlockSpec((1, hh + 2, ww + 2, c), lambda i: (i, 0, 0, 0)),
            pl.BlockSpec((9 * c, cp), lambda i: (0, 0)),
            pl.BlockSpec((1, cp), lambda i: (0, 0)),
        ],
        out_specs=pl.BlockSpec((1, hh * ww, cp), lambda i: (i, 0, 0)),
        compiler_params=pltpu.CompilerParams(
            dimension_semantics=("parallel",),
            vmem_limit_bytes=_VMEM_LIMIT),
    )(xp, w_flat, b_row)
    return out.reshape(bsz, hh, ww, cp)


# ----------------------------------------------------------------------------
# Parameter setup + full forward (kernels stay in NHWC-flat / bf16 between
# stages; PyTorch-facing API is NCHW f32 like the module).
# ----------------------------------------------------------------------------
def conv_weight_to_matmul(w_oihw):
    # torch conv weight [Cout, Cin, kh, kw] -> [kh*kw*Cin, Cout]
    cout, cin, kh, kw = w_oihw.shape
    return jnp.transpose(w_oihw, (2, 3, 1, 0)).reshape(kh * kw * cin, cout)


def init_params(key, n_embed, embed_dim, z_channels, hidden, out_ch=3,
                lane=128):
    ks = jax.random.split(key, 7)
    p = {"out_ch": out_ch}
    p["codebook"] = jax.random.normal(ks[0], (n_embed, embed_dim), jnp.float32)
    p["pq_w"] = 0.05 * jax.random.normal(ks[1], (embed_dim, z_channels), jnp.float32)
    p["pq_b"] = 0.01 * jax.random.normal(ks[2], (1, z_channels), jnp.float32)
    w_ci = 0.03 * jax.random.normal(ks[3], (hidden, z_channels, 3, 3), jnp.float32)
    p["ci_w"] = conv_weight_to_matmul(w_ci)                 # (9*z, hidden) f32
    p["ci_b"] = 0.01 * jax.random.normal(ks[4], (1, hidden), jnp.float32)
    w_co = 0.05 * jax.random.normal(ks[5], (out_ch, hidden, 3, 3), jnp.float32)
    p["co_w"] = conv_weight_to_matmul(w_co)                 # (9*h, out_ch) f32
    p["co_b"] = 0.01 * jax.random.normal(ks[6], (1, out_ch), jnp.float32)

    # Kernel-side copies: bf16 MXU operands, output channels zero-padded to a
    # lane-dense multiple of 128 (sliced back outside the kernel).
    hp = _round_up(hidden, lane)
    cop = _round_up(out_ch, lane)

    def pad_cols(a, n):
        return jnp.pad(a, ((0, 0), (0, n - a.shape[1])))

    p["ci_w_k"] = pad_cols(p["ci_w"], hp).astype(jnp.bfloat16)
    p["ci_b_k"] = pad_cols(p["ci_b"], hp)
    co_w_pi = p["co_w"].reshape(9, hidden, out_ch)
    co_w_pi = jnp.pad(co_w_pi, ((0, 0), (0, hp - hidden), (0, 0)))
    p["co_w_k"] = pad_cols(co_w_pi.reshape(9 * hp, out_ch), cop).astype(jnp.bfloat16)
    p["co_b_k"] = pad_cols(p["co_b"], cop)
    return p


def generator_forward(z_nchw, params):
    b, c, h, w = z_nchw.shape
    # z.movedim(1, 3): NCHW -> NHWC, flattened to (M, embed_dim)
    z = jnp.transpose(z_nchw, (0, 2, 3, 1)).reshape(b * h * w, c)
    # fused vector_quantize + post_quant_conv (1x1)
    hq = vq_postquant_pallas(z, params["codebook"], params["pq_w"],
                             params["pq_b"], tile_m=256, tile_k=256)
    hq = hq.reshape(b, h, w, -1)                       # bf16 NHWC
    # compact decoder: conv_in 3x3 + swish -> conv_out 3x3 + (x+1)/2 + clamp
    h1 = conv3x3_pallas(hq, params["ci_w_k"], params["ci_b_k"],
                        mode="swish", out_dtype=jnp.bfloat16)
    out = conv3x3_pallas(h1, params["co_w_k"], params["co_b_k"],
                         mode="out", out_dtype=jnp.float32)
    out = out[..., :params["out_ch"]]                  # drop lane padding
    return jnp.transpose(out, (0, 3, 1, 2))            # back to NCHW


# ----------------------------------------------------------------------------
# Pure-JAX f32 reference (no Pallas) for correctness checking
# ----------------------------------------------------------------------------
def _ref_im2col_3x3(x_nhwc):
    b, h, w, c = x_nhwc.shape
    xp = jnp.pad(x_nhwc, ((0, 0), (1, 1), (1, 1), (0, 0)))
    cols = [xp[:, i:i + h, j:j + w, :] for i in range(3) for j in range(3)]
    return jnp.concatenate(cols, axis=-1).reshape(b * h * w, 9 * c)


def generator_forward_ref(z_nchw, params):
    b, c, h, w = z_nchw.shape
    z = jnp.transpose(z_nchw, (0, 2, 3, 1)).reshape(b * h * w, c)
    e = params["codebook"]
    d = (jnp.sum(z * z, 1, keepdims=True) + jnp.sum(e * e, 1)[None, :]
         - 2.0 * z @ e.T)
    zq = e[jnp.argmin(d, axis=1)]
    hcur = zq @ params["pq_w"] + params["pq_b"]
    hcur = _ref_im2col_3x3(hcur.reshape(b, h, w, -1)) @ params["ci_w"] + params["ci_b"]
    hcur = hcur * jax.nn.sigmoid(hcur)
    out = _ref_im2col_3x3(hcur.reshape(b, h, w, -1)) @ params["co_w"] + params["co_b"]
    out = jnp.clip((out + 1.0) * 0.5, 0.0, 1.0).reshape(b, h, w, -1)
    return jnp.transpose(out, (0, 3, 1, 2))


if __name__ == "__main__":
    key = jax.random.PRNGKey(0)
    k_z, k_p = jax.random.split(key)

    B, H, W = 2, 16, 16                       # latent z: [B, embed_dim, H, W]
    N_EMBED, EMBED_DIM = 512, 64
    Z_CH, HIDDEN = 128, 128                   # lane-aligned channel widths

    z = jax.random.normal(k_z, (B, EMBED_DIM, H, W), jnp.float32)
    params = init_params(k_p, N_EMBED, EMBED_DIM, Z_CH, HIDDEN)

    out = jax.block_until_ready(generator_forward(z, params))
    ref = jax.block_until_ready(generator_forward_ref(z, params))

    assert out.shape == (B, 3, H, W), out.shape
    assert out.dtype == jnp.float32
    assert bool(jnp.all(out >= 0.0)) and bool(jnp.all(out <= 1.0))
    max_err = float(jnp.max(jnp.abs(out - ref)))
    assert max_err < 3e-2, max_err            # bf16 MXU operands, f32 accum
    print("KERNEL_OK")
</pallas_src>

<mosaic_0001>
module attributes {stable_mosaic.version = 11 : i64} {
  func.func @_vq_pq_kernel(%arg0: i32, %arg1: i32, %arg2: memref<256x64xf32, #tpu.memory_space<vmem>>, %arg3: memref<256x64xf32, #tpu.memory_space<vmem>>, %arg4: memref<1x256xf32, #tpu.memory_space<vmem>>, %arg5: memref<256x128xf32, #tpu.memory_space<vmem>>, %arg6: memref<1x128xf32, #tpu.memory_space<vmem>>, %arg7: memref<256x128xbf16, #tpu.memory_space<vmem>>, %arg8: memref<256x1xf32, #tpu.memory_space<vmem>>, %arg9: memref<256x128xf32, #tpu.memory_space<vmem>>) attributes {dimension_semantics = [#tpu.dimension_semantics<parallel>, #tpu.dimension_semantics<arbitrary>], iteration_bounds = array<i64: 2, 2>, scalar_prefetch = 0 : i64, scratch_operands = 2 : i64, tpu.core_type = #tpu.core_type<tc>, window_params = [{transform_indices = @transform_0, window_bounds = array<i64: 256, 64>}, {transform_indices = @transform_1, window_bounds = array<i64: 256, 64>}, {transform_indices = @transform_2, window_bounds = array<i64: 1, 256>}, {transform_indices = @transform_3, window_bounds = array<i64: 256, 128>}, {pipeline_mode = #tpu.pipeline_mode<synchronous>, transform_indices = @transform_4, window_bounds = array<i64: 1, 128>}, {transform_indices = @transform_5, window_bounds = array<i64: 256, 128>}]} {
    %c0_i32 = arith.constant 0 : i32
    %0 = arith.cmpi eq, %arg1, %c0_i32 : i32
    %1 = arith.extui %0 : i1 to i32
    %c0_i32_0 = arith.constant 0 : i32
    %2 = arith.cmpi ne, %1, %c0_i32_0 : i32
    scf.if %2 {
      %cst_23 = arith.constant 1.000000e+30 : f32
      %39 = vector.broadcast %cst_23 : f32 to vector<256x1xf32>
      %c0_24 = arith.constant 0 : index
      %c0_25 = arith.constant 0 : index
      %40 = vector.load %arg8[%c0_24, %c0_25] : memref<256x1xf32, #tpu.memory_space<vmem>>, vector<256x1xf32>
      tpu.vector_store %arg8[%c0_24, %c0_25], %39 {strides = array<i32>} : memref<256x1xf32, #tpu.memory_space<vmem>>, vector<256x1xf32>,
      %cst_26 = arith.constant 0.000000e+00 : f32
      %41 = vector.broadcast %cst_26 : f32 to vector<256x128xf32>
      %c0_27 = arith.constant 0 : index
      %c0_28 = arith.constant 0 : index
      %42 = vector.load %arg9[%c0_27, %c0_28] : memref<256x128xf32, #tpu.memory_space<vmem>>, vector<256x128xf32>
      tpu.vector_store %arg9[%c0_27, %c0_28], %41 {strides = array<i32>} : memref<256x128xf32, #tpu.memory_space<vmem>>, vector<256x128xf32>,
    } else {
    }
    %c0 = arith.constant 0 : index
    %c0_1 = arith.constant 0 : index
    %3 = vector.load %arg2[%c0, %c0_1] : memref<256x64xf32, #tpu.memory_space<vmem>>, vector<256x64xf32>
    %c0_2 = arith.constant 0 : index
    %c0_3 = arith.constant 0 : index
    %4 = vector.load %arg3[%c0_2, %c0_3] : memref<256x64xf32, #tpu.memory_space<vmem>>, vector<256x64xf32>
    %c0_4 = arith.constant 0 : index
    %c0_5 = arith.constant 0 : index
    %5 = vector.load %arg4[%c0_4, %c0_5] : memref<1x256xf32, #tpu.memory_space<vmem>>, vector<1x256xf32>
    %cst = arith.constant dense<0.000000e+00> : vector<256x256xf32>
    %6 = tpu.matmul %3, %4, %cst {dimension_numbers = #tpu.dot_dimension_numbers<[1], [1], [0], [0], [0, 0, 1, 0], [], []>} : vector<256x64xf32>, vector<256x64xf32>, vector<256x256xf32> -> vector<256x256xf32>
    %cst_6 = arith.constant 2.000000e+00 : f32
    %7 = vector.broadcast %cst_6 : f32 to vector<256x256xf32>
    %8 = arith.mulf %7, %6 : vector<256x256xf32>
    %9 = vector.broadcast %5 : vector<1x256xf32> to vector<256x256xf32>
    %10 = arith.subf %9, %8 : vector<256x256xf32>
    %cst_7 = arith.constant dense<0x7F800000> : vector<256xf32>
    %11 = vector.multi_reduction <minimumf>, %10, %cst_7 [1] : vector<256x256xf32> to vector<256xf32>
    %12 = vector.shape_cast %11 : vector<256xf32> to vector<256x1xf32>
    %13 = tpu.iota {dimensions = array<i32: 1>} : vector<256x256xi32>
    %14 = vector.broadcast %12 : vector<256x1xf32> to vector<256x256xf32>
    %15 = arith.cmpf ole, %10, %14 : vector<256x256xf32>
    %c256_i32 = arith.constant 256 : i32
    %16 = vector.broadcast %c256_i32 : i32 to vector<256x256xi32>
    %17 = arith.select %15, %13, %16 : vector<256x256xi1>, vector<256x256xi32>
    %cst_8 = arith.constant dense<2147483647> : vector<256xi32>
    %18 = vector.multi_reduction <minsi>, %17, %cst_8 [1] : vector<256x256xi32> to vector<256xi32>
    %19 = vector.shape_cast %18 : vector<256xi32> to vector<256x1xi32>
    %20 = vector.broadcast %19 : vector<256x1xi32> to vector<256x256xi32>
    %21 = arith.cmpi eq, %13, %20 : vector<256x256xi32>
    %22 = arith.extui %21 : vector<256x256xi1> to vector<256x256xi32>
    %23 = arith.sitofp %22 : vector<256x256xi32> to vector<256x256xf32>
    %c0_9 = arith.constant 0 : index
    %c0_10 = arith.constant 0 : index
    %24 = vector.load %arg5[%c0_9, %c0_10] : memref<256x128xf32, #tpu.memory_space<vmem>>, vector<256x128xf32>
    %cst_11 = arith.constant dense<0.000000e+00> : vector<256x128xf32>
    %25 = tpu.matmul %23, %24, %cst_11 {dimension_numbers = #tpu.dot_dimension_numbers<[1], [0], [0], [1], [0, 0, 1, 1], [], []>} : vector<256x256xf32>, vector<256x128xf32>, vector<256x128xf32> -> vector<256x128xf32>
    %c0_12 = arith.constant 0 : index
    %c0_13 = arith.constant 0 : index
    %26 = vector.load %arg8[%c0_12, %c0_13] : memref<256x1xf32, #tpu.memory_space<vmem>>, vector<256x1xf32>
    %27 = arith.cmpf olt, %12, %26 : vector<256x1xf32>
    %c0_14 = arith.constant 0 : index
    %c0_15 = arith.constant 0 : index
    %28 = vector.load %arg8[%c0_14, %c0_15] : memref<256x1xf32, #tpu.memory_space<vmem>>, vector<256x1xf32>
    %29 = arith.select %27, %12, %28 : vector<256x1xi1>, vector<256x1xf32>
    %c0_16 = arith.constant 0 : index
    %c0_17 = arith.constant 0 : index
    %30 = vector.load %arg8[%c0_16, %c0_17] : memref<256x1xf32, #tpu.memory_space<vmem>>, vector<256x1xf32>
    tpu.vector_store %arg8[%c0_16, %c0_17], %29 {strides = array<i32>} : memref<256x1xf32, #tpu.memory_space<vmem>>, vector<256x1xf32>,
    %c0_18 = arith.constant 0 : index
    %c0_19 = arith.constant 0 : index
    %31 = vector.load %arg9[%c0_18, %c0_19] : memref<256x128xf32, #tpu.memory_space<vmem>>, vector<256x128xf32>
    %32 = vector.shape_cast %27 : vector<256x1xi1> to vector<256x1xi1>
    %33 = vector.broadcast %32 : vector<256x1xi1> to vector<256x128xi1>
    %34 = arith.select %33, %25, %31 : vector<256x128xi1>, vector<256x128xf32>
    %c0_20 = arith.constant 0 : index
    %c0_21 = arith.constant 0 : index
    %35 = vector.load %arg9[%c0_20, %c0_21] : memref<256x128xf32, #tpu.memory_space<vmem>>, vector<256x128xf32>
    tpu.vector_store %arg9[%c0_20, %c0_21], %34 {strides = array<i32>} : memref<256x128xf32, #tpu.memory_space<vmem>>, vector<256x128xf32>,
    %c1_i32 = arith.constant 1 : i32
    %36 = arith.cmpi eq, %arg1, %c1_i32 : i32
    %37 = arith.extui %36 : i1 to i32
    %c0_i32_22 = arith.constant 0 : i32
    %38 = arith.cmpi ne, %37, %c0_i32_22 : i32
    scf.if %38 {
      %c0_23 = arith.constant 0 : index
      %c0_24 = arith.constant 0 : index
      %39 = vector.load %arg9[%c0_23, %c0_24] : memref<256x128xf32, #tpu.memory_space<vmem>>, vector<256x128xf32>
      %c0_25 = arith.constant 0 : index
      %c0_26 = arith.constant 0 : index
      %40 = vector.load %arg6[%c0_25, %c0_26] : memref<1x128xf32, #tpu.memory_space<vmem>>, vector<1x128xf32>
      %41 = vector.broadcast %40 : vector<1x128xf32> to vector<256x128xf32>
      %42 = arith.addf %39, %41 : vector<256x128xf32>
      %43 = arith.truncf %42 : vector<256x128xf32> to vector<256x128xbf16>
      %c0_27 = arith.constant 0 : index
      %c0_28 = arith.constant 0 : index
      %44 = vector.load %arg7[%c0_27, %c0_28] : memref<256x128xbf16, #tpu.memory_space<vmem>>, vector<256x128xbf16>
      tpu.vector_store %arg7[%c0_27, %c0_28], %43 {strides = array<i32>} : memref<256x128xbf16, #tpu.memory_space<vmem>>, vector<256x128xbf16>,
    } else {
    }
    return
  }
  func.func @transform_0(%arg0: i32, %arg1: i32) -> (i32, i32) {
    %c0_i32 = arith.constant 0 : i32
    %c0_i32_0 = arith.constant 0 : i32
    return %arg0, %c0_i32 : i32, i32
  }
  func.func @transform_1(%arg0: i32, %arg1: i32) -> (i32, i32) {
    %c0_i32 = arith.constant 0 : i32
    %c0_i32_0 = arith.constant 0 : i32
    return %arg1, %c0_i32 : i32, i32
  }
  func.func @transform_2(%arg0: i32, %arg1: i32) -> (i32, i32) {
    %c0_i32 = arith.constant 0 : i32
    %c0_i32_0 = arith.constant 0 : i32
    return %c0_i32, %arg1 : i32, i32
  }
  func.func @transform_3(%arg0: i32, %arg1: i32) -> (i32, i32) {
    %c0_i32 = arith.constant 0 : i32
    %c0_i32_0 = arith.constant 0 : i32
    return %arg1, %c0_i32 : i32, i32
  }
  func.func @transform_4(%arg0: i32, %arg1: i32) -> (i32, i32) {
    %c0_i32 = arith.constant 0 : i32
    %c0_i32_0 = arith.constant 0 : i32
    %c0_i32_1 = arith.constant 0 : i32
    return %c0_i32, %c0_i32_0 : i32, i32
  }
  func.func @transform_5(%arg0: i32, %arg1: i32) -> (i32, i32) {
    %c0_i32 = arith.constant 0 : i32
    %c0_i32_0 = arith.constant 0 : i32
    return %arg0, %c0_i32 : i32, i32
  }
}

</mosaic_0001>

<bundles_post_ra>
// kernel: tpu_custom_call.1
= control target key start
LH: loop header
LB: loop body
LE: loop exit
PB: predicated region body
PF: predicated region fallthrough
CT: control target
= control target key end

     0   :  { %10 = vsyncpa [#allocation5], 0  ;;  %s5448_s0 = inlined_call_operand.vmem [shape: f32[512,64], index: 0, kind: input, shape index: {}]   ;;  %s5449_s1 = inlined_call_operand.vmem [shape: f32[512,64], index: 1, kind: input, shape index: {}]   ;;  %s5450_s2 = inlined_call_operand.vmem [shape: f32[1,512], index: 2, kind: input, shape index: {}]   ;;  %s5451_s3 = inlined_call_operand.vmem [shape: f32[512,128], index: 3, kind: input, shape index: {}]   ;;  %s5452_s4 = inlined_call_operand.vmem [shape: f32[1,128], index: 4, kind: input, shape index: {}]   ;;  %s5453_s5 = inlined_call_operand.hbm [shape: bf16[512,128], index: 5, kind: output, shape index: {}]  }
   0x1   :  { %12 = vsyncpa [#allocation5 + $0x1], 0  ;;  %s3372_s18 = smov 0   ;;  %s3374_s19 = smov 0  }
   0x2   :  { %s3376_s20 = smov 0   ;;  %s3378_s21 = smov 0  }
   0x3   :  { %s3380_s22 = smov 0   ;;  %s3382_s23 = smov 0  }
   0x4   :  { %s3384_s24 = smov 0   ;;  %s3386_s25 = smov 0  }
   0x5 LB: > { %5528 = sst [smem:[#allocation7_spill]] %s3326_s23  ;;  %s2819_s26 = sadd.s32 4294967295, %s3334_s25   ;;  %s3334_s25 = sphi %s3386_s25, %s18_s25   ;;  %s3330_s24 = sphi %s3384_s24, %s5673_s24   ;;  %s3326_s23 = sphi %s3382_s23, %s5672_s23   ;;  %s3322_s22 = sphi %s3380_s22, %s5671_s22   ;;  %s3318_s21 = sphi %s3378_s21, %s5670_s21   ;;  %s3314_s20 = sphi %s3376_s20, %s5676_s20   ;;  %s3310_s19 = sphi %s3374_s19, %s5675_s19   ;;  %s3306_s18 = sphi %s3372_s18, %s5674_s18  }
   0x6   : > { %5529 = sst [smem:[#allocation8_spill]] %s3330_s24  ;;  %s2820_s27 = sadd.s32 4294967294, %s3334_s25  }
   0x7   : > { %s27_s28 = sadd.s32 1, %s3326_s23  ;;  %s30_s29 = sadd.s32 1, %s3330_s24 }
   0x8   : > { %p28_p0 = scmp.ge.s32.totalorder %s27_s28, 2  ;;  %p172_p1 = scmp.ne.s32.totalorder %s3314_s20, %s3310_s19 }
   0x9   : > { %p173_p2 = scmp.eq.s32.totalorder %s2819_s26, 3  ;;  %p178_p4 = scmp.ne.s32.totalorder %s3310_s19, %s3306_s18 }
   0xa   : > { %s5678_s28 = smov (%p28_p0, %s27_s28), 0  ;;  %s5680_s29 = smov (!%p28_p0, %s30_s29), %s3330_s24 }
   0xb   : > { %5530 = sst [smem:[#allocation9_spill]] %s5678_s28  ;;  %p3421_p3 = por %p173_p2, %p172_p1 }
   0xc   : > { %p32_p5 = scmp.ge.s32.totalorder %s5680_s29, 2  ;;  %p179_p6 = scmp.eq.s32.totalorder %s2820_s27, 3 }
   0xd   : > { %p2823_p7 = scmp.ge.s32.totalorder %s3334_s25, 1  ;;  %p235_p8 = scmp.lt.s32.totalorder %s3334_s25, 5 }
   0xe   : > { %s5682_s29 = smov (%p32_p5, %s5680_s29), 0  ;;  %p3431_p9 = por %p179_p6, %p178_p4 }
   0xf   : > { %5532 = sst [smem:[#allocation10_spill]] %s5682_s29  ;;  %p236_p10 = pnand %p2823_p7, %p235_p8 }
  0x10   : > { %s159_s7 = ssub.s32 %s3330_s24, %s5682_s29  ;;  %s162_s8 = sadd.s32 1, %s3314_s20 }
  0x11   : > { %p160_p11 = scmp.eq.s32.totalorder %s159_s7, 0  ;;  %239 = sbr.rel (%p236_p10) target bundleno = 1302 (0x516), region = 40 }
  0x13   : > { %s3439_s9 = scalar_select %p160_p11, %s3314_s20, %s162_s8  }
  0x16   : > { %s5454_s10 = sand.u32 1, %s3310_s19   ;;  %s2825_s11 = sshll.u32 %s3322_s22, 5 }
  0x17   : > { %s2824_s12 = sshll.u32 %s5454_s10, 7  ;;  %p278_p12 = scmp.lt.s32.totalorder %s2825_s11, 63 }
  0x18   : > { %s2827_s13 = sshll.u32 %s3318_s21, 5  ;;  %s2829_s14 = sshll.u32 %s3318_s21, 1 }
  0x19   : > { %s5684_s11 = smov (!%p278_p12, %s2825_s11), 63  ;;  %p284_p13 = scmp.lt.s32.totalorder %s2827_s13, 63 }
  0x1a   : > { %s2826_s15 = sshll.u32 %s5684_s11, 3  ;;  %p290_p0 = scmp.lt.s32.totalorder %s2829_s14, 3 }
  0x1b   : > { %s3450_s26 = scalar_lea.vmem %s5448_s0, %s2826_s15  ;;  %s5686_s13 = smov (!%p284_p13, %s2827_s13), 63 }
  0x1c   : > { %s5688_s14 = smov (!%p290_p0, %s2829_s14), 3  ;;  %s2828_s27 = sshll.u32 %s5686_s13, 3 }
  0x1d   : > { %s3457_s10 = scalar_lea.vmem %s5449_s1, %s2828_s27  ;;  %s292_s11 = scalar_lea.vmem %s5450_s2, %s5688_s14 }
  0x1e   : > { %s3466_s16 = scalar_lea.vmem %s5451_s3, %s2828_s27  ;;  %s3468_s15 = scalar_lea.vmem [#allocation4], %s2824_s12 }
  0x1f   : > { %p2832_p1 = scmp.ne.s32.totalorder %s3318_s21, 0 }
  0x21   : > { %304 = sbr.rel (%p2832_p1) target bundleno = 103 (0x67), region = 44 }
  0x26   : > { %vm305_vm0 = vcmask 7168   ;;  %v3336_v0 = vmov 1e+30   ;;  %v3337_v1 = vmov 0.0  }
  0x27   : > { %306 = vst.msk [vmem:[#allocation2] sm:$0xff] %vm305_vm0, %v3336_v0 }
  0x28   : > { %307 = vst.msk [vmem:[#allocation2 + $0x8] sm:$0xff] %vm305_vm0, %v3336_v0 }
  0x29   : > { %308 = vst.msk [vmem:[#allocation2 + $0x10] sm:$0xff] %vm305_vm0, %v3336_v0 }
  0x2a   : > { %309 = vst.msk [vmem:[#allocation2 + $0x18] sm:$0xff] %vm305_vm0, %v3336_v0 }
  0x2b   : > { %310 = vst.msk [vmem:[#allocation2 + $0x20] sm:$0xff] %vm305_vm0, %v3336_v0 }
  0x2c   : > { %311 = vst.msk [vmem:[#allocation2 + $0x28] sm:$0xff] %vm305_vm0, %v3336_v0 }
  0x2d   : > { %312 = vst.msk [vmem:[#allocation2 + $0x30] sm:$0xff] %vm305_vm0, %v3336_v0 }
  0x2e   : > { %313 = vst.msk [vmem:[#allocation2 + $0x38] sm:$0xff] %vm305_vm0, %v3336_v0 }
  0x2f   : > { %314 = vst.msk [vmem:[#allocation2 + $0x40] sm:$0xff] %vm305_vm0, %v3336_v0 }
  0x30   : > { %315 = vst.msk [vmem:[#allocation2 + $0x48] sm:$0xff] %vm305_vm0, %v3336_v0 }
  0x31   : > { %316 = vst.msk [vmem:[#allocation2 + $0x50] sm:$0xff] %vm305_vm0, %v3336_v0 }
  0x32   : > { %317 = vst.msk [vmem:[#allocation2 + $0x58] sm:$0xff] %vm305_vm0, %v3336_v0 }
  0x33   : > { %318 = vst.msk [vmem:[#allocation2 + $0x60] sm:$0xff] %vm305_vm0, %v3336_v0 }
  0x34   : > { %319 = vst.msk [vmem:[#allocation2 + $0x68] sm:$0xff] %vm305_vm0, %v3336_v0 }
  0x35   : > { %320 = vst.msk [vmem:[#allocation2 + $0x70] sm:$0xff] %vm305_vm0, %v3336_v0 }
  0x36   : > { %321 = vst.msk [vmem:[#allocation2 + $0x78] sm:$0xff] %vm305_vm0, %v3336_v0 }
  0x37   : > { %322 = vst.msk [vmem:[#allocation2 + $0x80] sm:$0xff] %vm305_vm0, %v3336_v0 }
  0x38   : > { %323 = vst.msk [vmem:[#allocation2 + $0x88] sm:$0xff] %vm305_vm0, %v3336_v0 }
  0x39   : > { %324 = vst.msk [vmem:[#allocation2 + $0x90] sm:$0xff] %vm305_vm0, %v3336_v0 }
  0x3a   : > { %325 = vst.msk [vmem:[#allocation2 + $0x98] sm:$0xff] %vm305_vm0, %v3336_v0 }
  0x3b   : > { %326 = vst.msk [vmem:[#allocation2 + $0xa0] sm:$0xff] %vm305_vm0, %v3336_v0 }
  0x3c   : > { %327 = vst.msk [vmem:[#allocation2 + $0xa8] sm:$0xff] %vm305_vm0, %v3336_v0 }
  0x3d   : > { %328 = vst.msk [vmem:[#allocation2 + $0xb0] sm:$0xff] %vm305_vm0, %v3336_v0 }
  0x3e   : > { %329 = vst.msk [vmem:[#allocation2 + $0xb8] sm:$0xff] %vm305_vm0, %v3336_v0 }
  0x3f   : > { %330 = vst.msk [vmem:[#allocation2 + $0xc0] sm:$0xff] %vm305_vm0, %v3336_v0 }
  0x40   : > { %331 = vst.msk [vmem:[#allocation2 + $0xc8] sm:$0xff] %vm305_vm0, %v3336_v0 }
  0x41   : > { %332 = vst.msk [vmem:[#allocation2 + $0xd0] sm:$0xff] %vm305_vm0, %v3336_v0 }
  0x42   : > { %333 = vst.msk [vmem:[#allocation2 + $0xd8] sm:$0xff] %vm305_vm0, %v3336_v0 }
  0x43   : > { %334 = vst.msk [vmem:[#allocation2 + $0xe0] sm:$0xff] %vm305_vm0, %v3336_v0 }
  0x44   : > { %335 = vst.msk [vmem:[#allocation2 + $0xe8] sm:$0xff] %vm305_vm0, %v3336_v0 }
  0x45   : > { %336 = vst.msk [vmem:[#allocation2 + $0xf0] sm:$0xff] %vm305_vm0, %v3336_v0 }
  0x46   : > { %337 = vst.msk [vmem:[#allocation2 + $0xf8] sm:$0xff] %vm305_vm0, %v3336_v0 }
  0x47   : > { %338 = vst [vmem:[#allocation3 + $0xb0] sm:$0xff] %v3337_v1 }
  0x48   : > { %339 = vst [vmem:[#allocation3] sm:$0xff] %v3337_v1 }
  0x49   : > { %340 = vst [vmem:[#allocation3 + $0xd8] sm:$0xff] %v3337_v1 }
  0x4a   : > { %341 = vst [vmem:[#allocation3 + $0x18] sm:$0xff] %v3337_v1 }
  0x4b   : > { %342 = vst [vmem:[#allocation3 + $0x50] sm:$0xff] %v3337_v1 }
  0x4c   : > { %343 = vst [vmem:[#allocation3 + $0x68] sm:$0xff] %v3337_v1 }
  0x4d   : > { %344 = vst [vmem:[#allocation3 + $0x30] sm:$0xff] %v3337_v1 }
  0x4e   : > { %345 = vst [vmem:[#allocation3 + $0x48] sm:$0xff] %v3337_v1 }
  0x4f   : > { %346 = vst [vmem:[#allocation3 + $0x80] sm:$0xff] %v3337_v1 }
  0x50   : > { %347 = vst [vmem:[#allocation3 + $0x88] sm:$0xff] %v3337_v1 }
  0x51   : > { %348 = vst [vmem:[#allocation3 + $0xe8] sm:$0xff] %v3337_v1 }
  0x52   : > { %349 = vst [vmem:[#allocation3 + $0xb8] sm:$0xff] %v3337_v1 }
  0x53   : > { %350 = vst [vmem:[#allocation3 + $0x60] sm:$0xff] %v3337_v1 }
  0x54   : > { %351 = vst [vmem:[#allocation3 + $0xf0] sm:$0xff] %v3337_v1 }
  0x55   : > { %352 = vst [vmem:[#allocation3 + $0x8] sm:$0xff] %v3337_v1 }
  0x56   : > { %353 = vst [vmem:[#allocation3 + $0x78] sm:$0xff] %v3337_v1 }
  0x57   : > { %354 = vst [vmem:[#allocation3 + $0x38] sm:$0xff] %v3337_v1 }
  0x58   : > { %355 = vst [vmem:[#allocation3 + $0x58] sm:$0xff] %v3337_v1 }
  0x59   : > { %356 = vst [vmem:[#allocation3 + $0x40] sm:$0xff] %v3337_v1 }
  0x5a   : > { %357 = vst [vmem:[#allocation3 + $0xc8] sm:$0xff] %v3337_v1 }
  0x5b   : > { %358 = vst [vmem:[#allocation3 + $0xe0] sm:$0xff] %v3337_v1 }
  0x5c   : > { %359 = vst [vmem:[#allocation3 + $0x90] sm:$0xff] %v3337_v1 }
  0x5d   : > { %360 = vst [vmem:[#allocation3 + $0x70] sm:$0xff] %v3337_v1 }
  0x5e   : > { %361 = vst [vmem:[#allocation3 + $0xc0] sm:$0xff] %v3337_v1 }
  0x5f   : > { %362 = vst [vmem:[#allocation3 + $0xa8] sm:$0xff] %v3337_v1 }
  0x60   : > { %363 = vst [vmem:[#allocation3 + $0xd0] sm:$0xff] %v3337_v1 }
  0x61   : > { %364 = vst [vmem:[#allocation3 + $0x10] sm:$0xff] %v3337_v1 }
  0x62   : > { %365 = vst [vmem:[#allocation3 + $0x28] sm:$0xff] %v3337_v1 }
  0x63   : > { %366 = vst [vmem:[#allocation3 + $0xa0] sm:$0xff] %v3337_v1 }
  0x64   : > { %367 = vst [vmem:[#allocation3 + $0xf8] sm:$0xff] %v3337_v1 }
  0x65   : > { %368 = vst [vmem:[#allocation3 + $0x20] sm:$0xff] %v3337_v1 }
  0x66   : > { %369 = vst [vmem:[#allocation3 + $0x98] sm:$0xff] %v3337_v1 }
  0x67 PF: > { %v417_v2 = vld [vmem:[%s3457_s10 + $0x78] sm:$0xff]  ;;  %vm435_vm1 = vcmask 523264   ;;  %v416_v4 = vld [vmem:[%s3457_s10 + $0x70] sm:$0xff]  ;;  %v415_v6 = vld [vmem:[%s3457_s10 + $0x68] sm:$0xff]  ;;  %vm2272_vm2 = vcmask 7168   ;;  %p3057_p2 = scmp.ne.s32.totalorder %s3318_s21, 1 }
  0x68   : > { %v433_v3 = vld [vmem:[%s3457_s10 + $0xf8] sm:$0xff]  ;;  %2833 = vmatpush.xpose.msk.msra.mxu0 %vm435_vm1, %v417_v2  ;;  %v432_v5 = vld [vmem:[%s3457_s10 + $0xf0] sm:$0xff]  ;;  %v431_v7 = vld [vmem:[%s3457_s10 + $0xe8] sm:$0xff] }
  0x69   : > { %2881 = vmatpush.xpose.msk.msra.mxu1 %vm435_vm1, %v433_v3  ;;  %v414_v8 = vld [vmem:[%s3457_s10 + $0x60] sm:$0xff]  ;;  %v413_v10 = vld [vmem:[%s3457_s10 + $0x58] sm:$0xff]  ;;  %v412_v12 = vld [vmem:[%s3457_s10 + $0x50] sm:$0xff] }
  0x6a   : > { %v430_v9 = vld [vmem:[%s3457_s10 + $0xe0] sm:$0xff]  ;;  %v429_v11 = vld [vmem:[%s3457_s10 + $0xd8] sm:$0xff]  ;;  %v428_v13 = vld [vmem:[%s3457_s10 + $0xd0] sm:$0xff] }
  0x6b   : > { %v411_v14 = vld [vmem:[%s3457_s10 + $0x48] sm:$0xff]  ;;  %v410_v16 = vld [vmem:[%s3457_s10 + $0x40] sm:$0xff]  ;;  %v409_v18 = vld [vmem:[%s3457_s10 + $0x38] sm:$0xff] }
  0x6c   : > { %2834 = vmatpush.xpose.msk.msra.mxu0 %vm435_vm1, %v416_v4  ;;  %v427_v15 = vld [vmem:[%s3457_s10 + $0xc8] sm:$0xff]  ;;  %v426_v17 = vld [vmem:[%s3457_s10 + $0xc0] sm:$0xff]  ;;  %v425_v19 = vld [vmem:[%s3457_s10 + $0xb8] sm:$0xff] }
  0x6d   : > { %2882 = vmatpush.xpose.msk.msra.mxu1 %vm435_vm1, %v432_v5  ;;  %v408_v20 = vld [vmem:[%s3457_s10 + $0x30] sm:$0xff]  ;;  %v407_v22 = vld [vmem:[%s3457_s10 + $0x28] sm:$0xff]  ;;  %v406_v24 = vld [vmem:[%s3457_s10 + $0x20] sm:$0xff] }
  0x6e   : > { %v424_v21 = vld [vmem:[%s3457_s10 + $0xb0] sm:$0xff]  ;;  %v423_v23 = vld [vmem:[%s3457_s10 + $0xa8] sm:$0xff]  ;;  %v422_v25 = vld [vmem:[%s3457_s10 + $0xa0] sm:$0xff] }
  0x6f   : > { %v405_v26 = vld [vmem:[%s3457_s10 + $0x18] sm:$0xff]  ;;  %v404_v28 = vld [vmem:[%s3457_s10 + $0x10] sm:$0xff]  ;;  %v403_v30 = vld [vmem:[%s3457_s10 + $0x8] sm:$0xff] }
  0x70   : > { %2835 = vmatpush.xpose.msk.msra.mxu0 %vm435_vm1, %v415_v6  ;;  %v421_v27 = vld [vmem:[%s3457_s10 + $0x98] sm:$0xff]  ;;  %v420_v29 = vld [vmem:[%s3457_s10 + $0x90] sm:$0xff]  ;;  %v419_v31 = vld [vmem:[%s3457_s10 + $0x88] sm:$0xff] }
  0x71   : > { %2883 = vmatpush.xpose.msk.msra.mxu1 %vm435_vm1, %v431_v7  ;;  %v402_v32 = vld [vmem:[%s3457_s10] sm:$0xff]  ;;  %v371_v35 = vld [vmem:[%s3450_s26 + $0x8] sm:$0xff]  ;;  %v372_v36 = vld [vmem:[%s3450_s26 + $0x10] sm:$0xff] }
  0x72   : > { %v418_v33 = vld [vmem:[%s3457_s10 + $0x80] sm:$0xff]  ;;  %v373_v37 = vld [vmem:[%s3450_s26 + $0x18] sm:$0xff]  ;;  %v375_v39 = vld [vmem:[%s3450_s26 + $0x28] sm:$0xff] }
  0x73   : > { %v370_v34 = vld [vmem:[%s3450_s26] sm:$0xff]  ;;  %v376_v40 = vld [vmem:[%s3450_s26 + $0x30] sm:$0xff]  ;;  %v377_v41 = vld [vmem:[%s3450_s26 + $0x38] sm:$0xff] }
  0x74   : > { %2836 = vmatpush.xpose.msk.msra.mxu0 %vm435_vm1, %v414_v8  ;;  %v374_v38 = vld [vmem:[%s3450_s26 + $0x20] sm:$0xff]  ;;  %v379_v43 = vld [vmem:[%s3450_s26 + $0x48] sm:$0xff]  ;;  %v380_v44 = vld [vmem:[%s3450_s26 + $0x50] sm:$0xff] }
  0x75   : > { %2884 = vmatpush.xpose.msk.msra.mxu1 %vm435_vm1, %v430_v9  ;;  %v378_v42 = vld [vmem:[%s3450_s26 + $0x40] sm:$0xff]  ;;  %v381_v45 = vld [vmem:[%s3450_s26 + $0x58] sm:$0xff]  ;;  %v383_v47 = vld [vmem:[%s3450_s26 + $0x68] sm:$0xff] }
  0x76   : > { %v382_v46 = vld [vmem:[%s3450_s26 + $0x60] sm:$0xff]  ;;  %v384_v48 = vld [vmem:[%s3450_s26 + $0x70] sm:$0xff] }
  0x77   : > { %v434_v49 = vld [vmem:[%s292_s11] sm:$0x3] }
  0x78   : > { %2837 = vmatpush.xpose.msk.msra.mxu0 %vm435_vm1, %v413_v10  ;;  %v3617_v50 = vperm.slane %v434_v49, 0  ;;  %v3619_v51 = vperm.slane %v434_v49, 1 }
  0x79   : > { %2885 = vmatpush.xpose.msk.msra.mxu1 %vm435_vm1, %v429_v11 }
  0x7c   : > { %2838 = vmatpush.xpose.msk.msra.mxu0 %vm435_vm1, %v412_v12 }
  0x7d   : > { %2886 = vmatpush.xpose.msk.msra.mxu1 %vm435_vm1, %v428_v13 }
  0x80   : > { %2839 = vmatpush.xpose.msk.msra.mxu0 %vm435_vm1, %v411_v14 }
  0x81   : > { %2887 = vmatpush.xpose.msk.msra.mxu1 %vm435_vm1, %v427_v15 }
  0x84   : > { %2840 = vmatpush.xpose.msk.msra.mxu0 %vm435_vm1, %v410_v16 }
  0x85   : > { %2888 = vmatpush.xpose.msk.msra.mxu1 %vm435_vm1, %v426_v17 }
  0x88   : > { %2841 = vmatpush.xpose.msk.msra.mxu0 %vm435_vm1, %v409_v18 }
  0x89   : > { %2889 = vmatpush.xpose.msk.msra.mxu1 %vm435_vm1, %v425_v19 }
  0x8c   : > { %2842 = vmatpush.xpose.msk.msra.mxu0 %vm435_vm1, %v408_v20 }
  0x8d   : > { %2890 = vmatpush.xpose.msk.msra.mxu1 %vm435_vm1, %v424_v21 }
  0x90   : > { %2843 = vmatpush.xpose.msk.msra.mxu0 %vm435_vm1, %v407_v22 }
  0x91   : > { %2891 = vmatpush.xpose.msk.msra.mxu1 %vm435_vm1, %v423_v23 }
  0x94   : > { %2844 = vmatpush.xpose.msk.msra.mxu0 %vm435_vm1, %v406_v24 }
  0x95   : > { %2892 = vmatpush.xpose.msk.msra.mxu1 %vm435_vm1, %v422_v25 }
  0x98   : > { %2845 = vmatpush.xpose.msk.msra.mxu0 %vm435_vm1, %v405_v26 }
  0x99   : > { %2893 = vmatpush.xpose.msk.msra.mxu1 %vm435_vm1, %v421_v27 }
  0x9c   : > { %2846 = vmatpush.xpose.msk.msra.mxu0 %vm435_vm1, %v404_v28 }
  0x9d   : > { %2894 = vmatpush.xpose.msk.msra.mxu1 %vm435_vm1, %v420_v29 }
  0xa0   : > { %2847 = vmatpush.xpose.msk.msra.mxu0 %vm435_vm1, %v403_v30 }
  0xa1   : > { %2895 = vmatpush.xpose.msk.msra.mxu1 %vm435_vm1, %v419_v31 }
  0xa4   : > { %2848 = vmatpush.xpose.msk.msra.mxu0 %vm435_vm1, %v402_v32 }
  0xa5   : > { %2896 = vmatpush.xpose.msk.msra.mxu1 %vm435_vm1, %v418_v33 }
  0xa7   : > { %2849 = vmatmul.msk.f32.vlgmr.msra.gmra.mxu0 %vm435_vm1, %v370_v34 }
  0xa8   : > { %2897 = vmatmul.msk.f32.vlgmr.msra.gmra.mxu1 %vm435_vm1, %v370_v34 }
  0xaf   : > { %2850 = vmatmul.msk.f32.gmra.mxu0 %vm435_vm1, %v371_v35 }
  0xb0   : > { %2898 = vmatmul.msk.f32.gmra.mxu1 %vm435_vm1, %v371_v35 }
  0xb7   : > { %2851 = vmatmul.msk.f32.gmra.mxu0 %vm435_vm1, %v372_v36 }
  0xb8   : > { %2899 = vmatmul.msk.f32.gmra.mxu1 %vm435_vm1, %v372_v36 }
  0xbf   : > { %2852 = vmatmul.msk.f32.gmra.mxu0 %vm435_vm1, %v373_v37 }
  0xc0   : > { %2900 = vmatmul.msk.f32.gmra.mxu1 %vm435_vm1, %v373_v37 }
  0xc7   : > { %2853 = vmatmul.msk.f32.gmra.mxu0 %vm435_vm1, %v374_v38 }
  0xc8   : > { %2901 = vmatmul.msk.f32.gmra.mxu1 %vm435_vm1, %v374_v38 }
  0xcf   : > { %2854 = vmatmul.msk.f32.gmra.mxu0 %vm435_vm1, %v375_v39 }
  0xd0   : > { %2902 = vmatmul.msk.f32.gmra.mxu1 %vm435_vm1, %v375_v39 }
  0xd7   : > { %2855 = vmatmul.msk.f32.gmra.mxu0 %vm435_vm1, %v376_v40 }
  0xd8   : > { %2903 = vmatmul.msk.f32.gmra.mxu1 %vm435_vm1, %v376_v40 }
  0xdf   : > { %2856 = vmatmul.msk.f32.gmra.mxu0 %vm435_vm1, %v377_v41 }
  0xe0   : > { %2904 = vmatmul.msk.f32.gmra.mxu1 %vm435_vm1, %v377_v41 }
  0xe7   : > { %2857 = vmatmul.msk.f32.gmra.mxu0 %vm435_vm1, %v378_v42 }
  0xe8   : > { %2905 = vmatmul.msk.f32.gmra.mxu1 %vm435_vm1, %v378_v42 }
  0xef   : > { %2858 = vmatmul.msk.f32.gmra.mxu0 %vm435_vm1, %v379_v43 }
  0xf0   : > { %2906 = vmatmul.msk.f32.gmra.mxu1 %vm435_vm1, %v379_v43 }
  0xf7   : > { %2859 = vmatmul.msk.f32.gmra.mxu0 %vm435_vm1, %v380_v44 }
  0xf8   : > { %2907 = vmatmul.msk.f32.gmra.mxu1 %vm435_vm1, %v380_v44 }
  0xff   : > { %2860 = vmatmul.msk.f32.gmra.mxu0 %vm435_vm1, %v381_v45 }
 0x100   : > { %2908 = vmatmul.msk.f32.gmra.mxu1 %vm435_vm1, %v381_v45 }
 0x107   : > { %2861 = vmatmul.msk.f32.gmra.mxu0 %vm435_vm1, %v382_v46 }
 0x108   : > { %2909 = vmatmul.msk.f32.gmra.mxu1 %vm435_vm1, %v382_v46 }
 0x10f   : > { %2862 = vmatmul.msk.f32.gmra.mxu0 %vm435_vm1, %v383_v47 }
 0x110   : > { %2910 = vmatmul.msk.f32.gmra.mxu1 %vm435_vm1, %v383_v47 }
 0x117   : > { %2863 = vmatmul.msk.f32.gmra.mxu0 %vm435_vm1, %v384_v48 }
 0x118   : > { %2911 = vmatmul.msk.f32.gmra.mxu1 %vm435_vm1, %v384_v48 }
 0x124   : > { %v645_v52 = vpop.f32.mrf.mxu0 }
 0x125   : > { %v758_v53 = vpop.f32.mrf.mxu1  ;;  %v854_v54 = vmul.f32 2.0, %v645_v52 }
 0x126   : > { %v855_v55 = vmul.f32 2.0, %v758_v53 }
 0x127   : > { %v3622_v56 = vsub.f32 %v3617_v50, %v854_v54 }
 0x128   : > { %v3625_v57 = vsub.f32 %v3619_v51, %v855_v55  ;;  %v385_v55 = vld [vmem:[%s3450_s26 + $0x78] sm:$0xff] }
 0x129   : > { %2864 = vmatmul.msk.f32.gmra.mxu0 %vm435_vm1, %v385_v55  ;;  %2912 = vmatmul.msk.f32.gmra.mxu1 %vm435_vm1, %v385_v55 }
 0x12a   : > { %v987_v58 = vmin.f32 %v3622_v56, %v3625_v57 }
 0x12c   : > { %988 = vmin.xlane.f32.xlu0 %v987_v58  ;;  %v648_v59 = vpop.f32.mrf.mxu0  ;;  %v5458_v58 = vmov 0  }
 0x12d   : > { %v761_v60 = vpop.f32.mrf.mxu1  ;;  %v856_v61 = vmul.f32 2.0, %v648_v59  ;;  %3236 = vset.pattern.permute.xlu0 %v5458_v58  ;;  %3237 = vset.pattern.permute.xlu1 %v5458_v58  ;;  %v386_v59 = vld [vmem:[%s3450_s26 + $0x80] sm:$0xff] }
 0x12e   : > { %v857_v62 = vmul.f32 2.0, %v761_v60  ;;  %3238 = vset.pattern.permute.xlu2 %v5458_v58 }
 0x12f   : > { %v3630_v63 = vsub.f32 %v3617_v50, %v856_v61 }
 0x130   : > { %v3633_v0 = vsub.f32 %v3619_v51, %v857_v62  ;;  %v1083_v62 = vlaneseq }
 0x131   : > { %2865 = vmatmul.msk.f32.gmra.mxu0 %vm435_vm1, %v386_v59  ;;  %2913 = vmatmul.msk.f32.gmra.mxu1 %vm435_vm1, %v386_v59  ;;  %v3803_v59 = vld [vmem:[#allocation2 + $0x18] sm:$0xff] }
 0x132   : > { %v990_v1 = vmin.f32 %v3630_v63, %v3633_v0  ;;  %5540 = vst [vmem:[#allocation17_spill] sm:$0xff] %v3803_v59 }
 0x134   : > { %991 = vmin.xlane.f32.xlu0 %v990_v1  ;;  %v651_v2 = vpop.f32.mrf.mxu0  ;;  %v387_v1 = vld [vmem:[%s3450_s26 + $0x88] sm:$0xff] }
 0x135   : > { %v764_v3 = vpop.f32.mrf.mxu1  ;;  %v858_v4 = vmul.f32 2.0, %v651_v2  ;;  %v3703_v2 = vand.u32 127, %v1083_v62 }
 0x136   : > { %v859_v5 = vmul.f32 2.0, %v764_v3 }
 0x137   : > { %v3638_v6 = vsub.f32 %v3617_v50, %v858_v4 }
 0x138   : > { %v3641_v7 = vsub.f32 %v3619_v51, %v859_v5  ;;  %v3712_v5 = vadd.s32 128, %v3703_v2 }
 0x139   : > { %2866 = vmatmul.msk.f32.gmra.mxu0 %vm435_vm1, %v387_v1  ;;  %2914 = vmatmul.msk.f32.gmra.mxu1 %vm435_vm1, %v387_v1 }
 0x13a   : > { %v993_v8 = vmin.f32 %v3638_v6, %v3641_v7 }
 0x13c   : > { %994 = vmin.xlane.f32.xlu1 %v993_v8  ;;  %v654_v9 = vpop.f32.mrf.mxu0  ;;  %v3714_v8 = vld [vmem:[#allocation2] sm:$0xff] }
 0x13d   : > { %v767_v10 = vpop.f32.mrf.mxu1  ;;  %v860_v11 = vmul.f32 2.0, %v654_v9  ;;  %5534 = vst [vmem:[#allocation11_spill] sm:$0xff] %v3714_v8 }
 0x13e   : > { %v861_v12 = vmul.f32 2.0, %v767_v10 }
 0x13f   : > { %v3646_v13 = vsub.f32 %v3617_v50, %v860_v11 }
 0x140   : > { %v3649_v14 = vsub.f32 %v3619_v51, %v861_v12  ;;  %v388_v12 = vld [vmem:[%s3450_s26 + $0x90] sm:$0xff] }
 0x141   : > { %2867 = vmatmul.msk.f32.gmra.mxu0 %vm435_vm1, %v388_v12  ;;  %2915 = vmatmul.msk.f32.gmra.mxu1 %vm435_vm1, %v388_v12 }
 0x142   : > { %v996_v15 = vmin.f32 %v3646_v13, %v3649_v14 }
 0x144   : > { %997 = vmin.xlane.f32.xlu1 %v996_v15  ;;  %v657_v16 = vpop.f32.mrf.mxu0 }
 0x145   : > { %v770_v17 = vpop.f32.mrf.mxu1  ;;  %v862_v18 = vmul.f32 2.0, %v657_v16 }
 0x146   : > { %v863_v19 = vmul.f32 2.0, %v770_v17  ;;  %v3738_v17 = vld [vmem:[#allocation2 + $0x8] sm:$0xff] }
 0x147   : > { %v3654_v20 = vsub.f32 %v3617_v50, %v862_v18  ;;  %5536 = vst [vmem:[#allocation13_spill] sm:$0xff] %v3738_v17 }
 0x148   : > { %v3657_v21 = vsub.f32 %v3619_v51, %v863_v19 }
 0x14a   : > { %v999_v22 = vmin.f32 %v3654_v20, %v3657_v21 }
 0x14c   : > { %1000 = vmin.xlane.f32.xlu2 %v999_v22  ;;  %v660_v23 = vpop.f32.mrf.mxu0 }
 0x14d   : > { %v773_v24 = vpop.f32.mrf.mxu1  ;;  %v864_v25 = vmul.f32 2.0, %v660_v23 }
 0x14e   : > { %v865_v26 = vmul.f32 2.0, %v773_v24 }
 0x14f   : > { %v3662_v27 = vsub.f32 %v3617_v50, %v864_v25 }
 0x150   : > { %v3665_v28 = vsub.f32 %v3619_v51, %v865_v26 }
 0x152   : > { %v1002_v29 = vmin.f32 %v3662_v27, %v3665_v28 }
 0x154   : > { %1003 = vmin.xlane.f32.xlu2 %v1002_v29  ;;  %v663_v30 = vpop.f32.mrf.mxu0 }
 0x155   : > { %v776_v31 = vpop.f32.mrf.mxu1  ;;  %v866_v32 = vmul.f32 2.0, %v663_v30 }
 0x156   : > { %v867_v33 = vmul.f32 2.0, %v776_v31 }
 0x157   : > { %v3670_v34 = vsub.f32 %v3617_v50, %v866_v32  ;;  %v3768_v32 = vld [vmem:[#allocation2 + $0x10] sm:$0xff] }
 0x158   : > { %v3673_v35 = vsub.f32 %v3619_v51, %v867_v33  ;;  %5538 = vst [vmem:[#allocation15_spill] sm:$0xff] %v3768_v32 }
 0x15a   : > { %v1005_v36 = vmin.f32 %v3670_v34, %v3673_v35 }
 0x15c   : > { %1006 = vmin.xlane.f32.xlu0 %v1005_v36  ;;  %v666_v37 = vpop.f32.mrf.mxu0 }
 0x15d   : > { %v779_v38 = vpop.f32.mrf.mxu1  ;;  %v868_v39 = vmul.f32 2.0, %v666_v37 }
 0x15e   : > { %v869_v40 = vmul.f32 2.0, %v779_v38 }
 0x15f   : > { %v3678_v41 = vsub.f32 %v3617_v50, %v868_v39 }
 0x160   : > { %v3681_v42 = vsub.f32 %v3619_v51, %v869_v40 }
 0x162   : > { %v1008_v43 = vmin.f32 %v3678_v41, %v3681_v42 }
 0x164   : > { %1009 = vmin.xlane.f32.xlu2 %v1008_v43  ;;  %v669_v44 = vpop.f32.mrf.mxu0 }
 0x165   : > { %v782_v45 = vpop.f32.mrf.mxu1  ;;  %v870_v18 = vmul.f32 2.0, %v669_v44  ;;  %v389_v44 = vld [vmem:[%s3450_s26 + $0x98] sm:$0xff] }
 0x166   : > { %v871_v19 = vmul.f32 2.0, %v782_v45  ;;  %2868 = vmatmul.msk.f32.gmra.mxu0 %vm435_vm1, %v389_v44  ;;  %2916 = vmatmul.msk.f32.gmra.mxu1 %vm435_vm1, %v389_v44 }
 0x16c   : > { %v672_v46 = vpop.f32.mrf.mxu0 }
 0x16d   : > { %v785_v47 = vpop.f32.mrf.mxu1  ;;  %v872_v48 = vmul.f32 2.0, %v672_v46 }
 0x16e   : > { %v873_v49 = vmul.f32 2.0, %v785_v47 }
 0x16f   : > { %v3686_v52 = vsub.f32 %v3617_v50, %v872_v48 }
 0x170   : > { %v3689_v53 = vsub.f32 %v3619_v51, %v873_v49 }
 0x172   : > { %v1014_v54 = vmin.f32 %v3686_v52, %v3689_v53 }
 0x174   : > { %1015 = vmin.xlane.f32.xlu2 %v1014_v54  ;;  %v675_v60 = vpop.f32.mrf.mxu0 }
 0x175   : > { %v788_v61 = vpop.f32.mrf.mxu1  ;;  %v874_v33 = vmul.f32 2.0, %v675_v60 }
 0x176   : > { %v875_v36 = vmul.f32 2.0, %v788_v61 }
 0x178   : > { %v3797_v47 = vsub.f32 %v3619_v51, %v875_v36  ;;  %v3848_v36 = vld [vmem:[#allocation2 + $0x20] sm:$0xff] }
 0x179   : > { %5542 = vst [vmem:[#allocation19_spill] sm:$0xff] %v3848_v36 }
 0x17c   : > { %v3707_v3 = vpop.f32.mrf.mxu0 }
 0x17d   : > { %v3709_v4 = vpop.f32.mrf.mxu1  ;;  %v876_v60 = vmul.f32 2.0, %v3707_v3 }
 0x17e   : > { %v877_v61 = vmul.f32 2.0, %v3709_v4  ;;  %v390_v4 = vld [vmem:[%s3450_s26 + $0xa0] sm:$0xff] }
 0x17f   : > { %2869 = vmatmul.msk.f32.gmra.mxu0 %vm435_vm1, %v390_v4  ;;  %2917 = vmatmul.msk.f32.gmra.mxu1 %vm435_vm1, %v390_v4 }
 0x184   : > { %v681_v16 = vpop.f32.mrf.mxu0 }
 0x185   : > { %v794_v23 = vpop.f32.mrf.mxu1  ;;  %v878_v48 = vmul.f32 2.0, %v681_v16  ;;  %v3840_v16 = vsub.f32 %v3619_v51, %v877_v61 }
 0x186   : > { %v879_v55 = vmul.f32 2.0, %v794_v23 }
 0x188   : > { %v3825_v12 = vsub.f32 %v3619_v51, %v879_v55 }
 0x18c   : > { %v684_v39 = vpop.f32.mrf.mxu0 }
 0x18d   : > { %v797_v43 = vpop.f32.mrf.mxu1 }
 0x18e   : > { %v881_v23 = vmul.f32 2.0, %v797_v43 }
 0x190   : > { %v3858_v43 = vsub.f32 %v3619_v51, %v881_v23  ;;  %v3920_v23 = vld [vmem:[#allocation2 + $0x30] sm:$0xff] }
 0x191   : > { %5546 = vst [vmem:[#allocation23_spill] sm:$0xff] %v3920_v23 }
 0x194   : > { %v687_v3 = vpop.f32.mrf.mxu0 }
 0x19f   : > { %v3716_v9 = vpop.xlane.xlu0 %988 }
 0x1a0   : > { %5535 = vst [vmem:[#allocation12_spill] sm:$0xff] %v3716_v9  ;;  %vm1086_vm3 = vcmp.le.f32.partialorder %v3622_v56, %v3716_v9  ;;  %vm1087_vm4 = vcmp.le.f32.partialorder %v3625_v57, %v3716_v9  ;;  %vm2208_vm5 = vcmp.lt.f32.partialorder %v3716_v9, %v3714_v8 }
 0x1a1   : > { %v1150_v10 = vsel %vm1086_vm3, %v3703_v2, 256  ;;  %v1151_v11 = vsel %vm1087_vm4, %v3712_v5, 256  ;;  %v2240_v15 = vsel %vm2208_vm5, %v3716_v9, %v3714_v8 }
 0x1a2   : > { %vm1214_vm6 = vcmp.lt.s32.totalorder %v1150_v10, %v1151_v11  ;;  %2273 = vst.msk [vmem:[#allocation2] sm:$0xff] %vm2272_vm2, %v2240_v15 }
 0x1a3   : > { %v3735_v56 = vsel %vm1214_vm6, %v1150_v10, %v1151_v11  ;;  %v3812_v10 = vsub.f32 %v3617_v50, %v878_v48 }
 0x1a4   : > { %v1217_v57 = vshra.s32 %v3735_v56, 16 }
 0x1a6   : > { %v3740_v22 = vcvt.s32.f32 %v1217_v57 }
 0x1a7   : > { %v3742_v24 = vpop.xlane.xlu0 %991 }
 0x1a8   : > { %5537 = vst [vmem:[#allocation14_spill] sm:$0xff] %v3742_v24  ;;  %vm1088_vm7 = vcmp.le.f32.partialorder %v3630_v63, %v3742_v24  ;;  %vm1089_vm8 = vcmp.le.f32.partialorder %v3633_v0, %v3742_v24  ;;  %1220 = vmin.xlane.f32.xlu1 %v3740_v22  ;;  %vm2209_vm9 = vcmp.lt.f32.partialorder %v3742_v24, %v3738_v17 }
 0x1a9   : > { %v1152_v25 = vsel %vm1088_vm7, %v3703_v2, 256  ;;  %v1153_v26 = vsel %vm1089_vm8, %v3712_v5, 256  ;;  %v2241_v29 = vsel %vm2209_vm9, %v3742_v24, %v3738_v17  ;;  %v3759_v63 = vsub.f32 %v3617_v50, %v870_v18  ;;  %v800_v18 = vpop.f32.mrf.mxu1  ;;  %v1935_v17 = vld [vmem:[%s3466_s16 + $0x88] sm:$0xff]  ;;  %v1918_v24 = vld [vmem:[%s3466_s16] sm:$0xff] }
 0x1aa   : > { %v3762_v0 = vsub.f32 %v3619_v51, %v871_v19  ;;  %vm1230_vm10 = vcmp.lt.s32.totalorder %v1152_v25, %v1153_v26  ;;  %2274 = vst.msk [vmem:[#allocation2 + $0x8] sm:$0xff] %vm2272_vm2, %v2241_v29  ;;  %v880_v19 = vmul.f32 2.0, %v684_v39 }
 0x1ab   : > { %v3765_v30 = vsel %vm1230_vm10, %v1152_v25, %v1153_v26  ;;  %v882_v26 = vmul.f32 2.0, %v687_v3  ;;  %v3893_v3 = vld [vmem:[#allocation2 + $0x28] sm:$0xff] }
 0x1ac   : > { %v1233_v31 = vshra.s32 %v3765_v30, 16  ;;  %v1011_v38 = vmin.f32 %v3759_v63, %v3762_v0  ;;  %v3855_v39 = vsub.f32 %v3617_v50, %v880_v19  ;;  %5544 = vst [vmem:[#allocation21_spill] sm:$0xff] %v3893_v3 }
 0x1ae   : > { %v3770_v37 = vcvt.s32.f32 %v1233_v31  ;;  %v1023_v31 = vmin.f32 %v3812_v10, %v3825_v12  ;;  %v1026_v61 = vmin.f32 %v3855_v39, %v3858_v43 }
 0x1af   : > { %v3774_v40 = vpop.xlane.xlu1 %994 }
 0x1b0   : > { %5539 = vst [vmem:[#allocation16_spill] sm:$0xff] %v3774_v40  ;;  %vm1090_vm11 = vcmp.le.f32.partialorder %v3638_v6, %v3774_v40  ;;  %vm1091_vm12 = vcmp.le.f32.partialorder %v3641_v7, %v3774_v40  ;;  %1236 = vmin.xlane.f32.xlu0 %v3770_v37  ;;  %1012 = vmin.xlane.f32.xlu1 %v1011_v38 }
 0x1b1   : > { %vm2210_vm13 = vcmp.lt.f32.partialorder %v3774_v40, %v3768_v32  ;;  %v1154_v45 = vsel %vm1090_vm11, %v3703_v2, 256  ;;  %v1155_v46 = vsel %vm1091_vm12, %v3712_v5, 256  ;;  %v3794_v7 = vsub.f32 %v3617_v50, %v874_v33 }
 0x1b2   : > { %v2242_v6 = vsel %vm2210_vm13, %v3774_v40, %v3768_v32  ;;  %vm1246_vm14 = vcmp.lt.s32.totalorder %v1154_v45, %v1155_v46  ;;  %v883_v33 = vmul.f32 2.0, %v800_v18 }
 0x1b3   : > { %2275 = vst.msk [vmem:[#allocation2 + $0x10] sm:$0xff] %vm2272_vm2, %v2242_v6  ;;  %v3800_v49 = vsel %vm1246_vm14, %v1154_v45, %v1155_v46  ;;  %v1017_v1 = vmin.f32 %v3794_v7, %v3797_v47  ;;  %v3863_v46 = vsub.f32 %v3617_v50, %v882_v26  ;;  %v391_v6 = vld [vmem:[%s3450_s26 + $0xa8] sm:$0xff] }
 0x1b4   : > { %v1249_v54 = vshra.s32 %v3800_v49, 16  ;;  %v3874_v48 = vsub.f32 %v3619_v51, %v883_v33  ;;  %2870 = vmatmul.msk.f32.gmra.mxu0 %vm435_vm1, %v391_v6  ;;  %2918 = vmatmul.msk.f32.gmra.mxu1 %vm435_vm1, %v391_v6 }
 0x1b6   : > { %v3807_v62 = vcvt.s32.f32 %v1249_v54 }
 0x1b7   : > { %v3814_v11 = vpop.xlane.xlu1 %997 }
 0x1b8   : > { %5541 = vst [vmem:[#allocation18_spill] sm:$0xff] %v3814_v11  ;;  %vm1092_vm15 = vcmp.le.f32.partialorder %v3646_v13, %v3814_v11  ;;  %vm1093_vm0 = vcmp.le.f32.partialorder %v3649_v14, %v3814_v11  ;;  %1252 = vmin.xlane.f32.xlu0 %v3807_v62  ;;  %1018 = vmin.xlane.f32.xlu1 %v1017_v1 }
 0x1b9   : > { %vm2211_vm3 = vcmp.lt.f32.partialorder %v3814_v11, %v3803_v59  ;;  %v1156_v15 = vsel %vm1092_vm15, %v3703_v2, 256  ;;  %v1157_v57 = vsel %vm1093_vm0, %v3712_v5, 256  ;;  %v3837_v14 = vsub.f32 %v3617_v50, %v876_v60 }
 0x1ba   : > { %v2243_v13 = vsel %vm2211_vm3, %v3814_v11, %v3803_v59  ;;  %vm1262_vm4 = vcmp.lt.s32.totalorder %v1156_v15, %v1157_v57  ;;  %v1029_v1 = vmin.f32 %v3863_v46, %v3874_v48 }
 0x1bb   : > { %2276 = vst.msk [vmem:[#allocation2 + $0x18] sm:$0xff] %vm2272_vm2, %v2243_v13  ;;  %v3843_v25 = vsel %vm1262_vm4, %v1156_v15, %v1157_v57  ;;  %v1020_v44 = vmin.f32 %v3837_v14, %v3840_v16  ;;  %v392_v57 = vld [vmem:[%s3450_s26 + $0xb0] sm:$0xff] }
 0x1bc   : > { %v1265_v29 = vshra.s32 %v3843_v25, 16  ;;  %2871 = vmatmul.msk.f32.gmra.mxu0 %vm435_vm1, %v392_v57  ;;  %2919 = vmatmul.msk.f32.gmra.mxu1 %vm435_vm1, %v392_v57 }
 0x1be   : > { %v3850_v38 = vcvt.s32.f32 %v1265_v29  ;;  %v393_v29 = vld [vmem:[%s3450_s26 + $0xb8] sm:$0xff] }
 0x1bf   : > { %v3860_v45 = vpop.xlane.xlu2 %1000 }
 0x1c0   : > { %5543 = vst [vmem:[#allocation20_spill] sm:$0xff] %v3860_v45  ;;  %vm1094_vm6 = vcmp.le.f32.partialorder %v3654_v20, %v3860_v45  ;;  %vm1095_vm7 = vcmp.le.f32.partialorder %v3657_v21, %v3860_v45  ;;  %1268 = vmin.xlane.f32.xlu2 %v3850_v38  ;;  %1021 = vmin.xlane.f32.xlu0 %v1020_v44 }
 0x1c1   : > { %vm2212_vm8 = vcmp.lt.f32.partialorder %v3860_v45, %v3848_v36  ;;  %1024 = vmin.xlane.f32.xlu1 %v1023_v31  ;;  %v1158_v54 = vsel %vm1094_vm6, %v3703_v2, 256  ;;  %v1159_v55 = vsel %vm1095_vm7, %v3712_v5, 256 }
 0x1c2   : > { %v2244_v20 = vsel %vm2212_vm8, %v3860_v45, %v3848_v36  ;;  %vm1278_vm10 = vcmp.lt.s32.totalorder %v1158_v54, %v1159_v55  ;;  %v4157_v45 = vld [vmem:[#allocation2 + $0x68] sm:$0xff] }
 0x1c3   : > { %2277 = vst.msk [vmem:[#allocation2 + $0x20] sm:$0xff] %vm2272_vm2, %v2244_v20  ;;  %v3886_v21 = vsel %vm1278_vm10, %v1158_v54, %v1159_v55  ;;  %v394_v55 = vld [vmem:[%s3450_s26 + $0xc0] sm:$0xff] }
 0x1c4   : > { %v1281_v60 = vshra.s32 %v3886_v21, 16  ;;  %2872 = vmatmul.msk.f32.gmra.mxu0 %vm435_vm1, %v393_v29  ;;  %2920 = vmatmul.msk.f32.gmra.mxu1 %vm435_vm1, %v393_v29  ;;  %v398_v29 = vld [vmem:[%s3450_s26 + $0xe0] sm:$0xff]  ;;  %5560 = vst [vmem:[#allocation37_spill] sm:$0xff] %v4157_v45 }
 0x1c6   : > { %v3895_v4 = vcvt.s32.f32 %v1281_v60 }
 0x1c7   : > { %v3897_v15 = vpop.xlane.xlu2 %1003 }
 0x1c8   : > { %5545 = vst [vmem:[#allocation22_spill] sm:$0xff] %v3897_v15  ;;  %vm1096_vm11 = vcmp.le.f32.partialorder %v3662_v27, %v3897_v15  ;;  %vm1097_vm12 = vcmp.le.f32.partialorder %v3665_v28, %v3897_v15  ;;  %1284 = vmin.xlane.f32.xlu2 %v3895_v4  ;;  %1027 = vmin.xlane.f32.xlu0 %v1026_v61 }
 0x1c9   : > { %vm5477_vm14 = vcmp.lt.f32.partialorder %v3897_v15, %v3893_v3  ;;  %1030 = vmin.xlane.f32.xlu1 %v1029_v1  ;;  %v1160_v13 = vsel %vm1096_vm11, %v3703_v2, 256  ;;  %v1161_v18 = vsel %vm1097_vm12, %v3712_v5, 256 }
 0x1ca   : > { %v2245_v27 = vsel %vm5477_vm14, %v3897_v15, %v3893_v3  ;;  %vm1294_vm15 = vcmp.lt.s32.totalorder %v1160_v13, %v1161_v18 }
 0x1cb   : > { %2278 = vst.msk [vmem:[#allocation2 + $0x28] sm:$0xff] %vm2272_vm2, %v2245_v27  ;;  %v3917_v28 = vsel %vm1294_vm15, %v1160_v13, %v1161_v18  ;;  %v396_v13 = vld [vmem:[%s3450_s26 + $0xd0] sm:$0xff]  ;;  %v3973_v18 = vld [vmem:[#allocation2 + $0x38] sm:$0xff] }
 0x1cc   : > { %v1297_v19 = vshra.s32 %v3917_v28, 16  ;;  %2873 = vmatmul.msk.f32.gmra.mxu0 %vm435_vm1, %v394_v55  ;;  %2921 = vmatmul.msk.f32.gmra.mxu1 %vm435_vm1, %v394_v55  ;;  %5549 = vst [vmem:[#allocation26_spill] sm:$0xff] %v3973_v18  ;;  %v400_v55 = vld [vmem:[%s3450_s26 + $0xf0] sm:$0xff] }
 0x1ce   : > { %v3922_v26 = vcvt.s32.f32 %v1297_v19  ;;  %v397_v19 = vld [vmem:[%s3450_s26 + $0xd8] sm:$0xff] }
 0x1cf   : > { %v3925_v31 = vpop.xlane.xlu0 %1006 }
 0x1d0   : > { %5547 = vst [vmem:[#allocation24_spill] sm:$0xff] %v3925_v31  ;;  %vm1098_vm0 = vcmp.le.f32.partialorder %v3670_v34, %v3925_v31  ;;  %vm1099_vm4 = vcmp.le.f32.partialorder %v3673_v35, %v3925_v31  ;;  %1300 = vmin.xlane.f32.xlu2 %v3922_v26  ;;  %vm5527_vm6 = vcmp.lt.f32.partialorder %v3925_v31, %v3920_v23 }
 0x1d1   : > { %v1162_v33 = vsel %vm1098_vm0, %v3703_v2, 256  ;;  %v1163_v44 = vsel %vm1099_vm4, %v3712_v5, 256  ;;  %v2246_v34 = vsel %vm5527_vm6, %v3925_v31, %v3920_v23 }
 0x1d2   : > { %vm1310_vm7 = vcmp.lt.s32.totalorder %v1162_v33, %v1163_v44  ;;  %2279 = vst.msk [vmem:[#allocation2 + $0x30] sm:$0xff] %vm2272_vm2, %v2246_v34  ;;  %v3992_v34 = vld [vmem:[#allocation2 + $0x48] sm:$0xff] }
 0x1d3   : > { %v3944_v35 = vsel %vm1310_vm7, %v1162_v33, %v1163_v44  ;;  %v399_v33 = vld [vmem:[%s3450_s26 + $0xe8] sm:$0xff]  ;;  %5551 = vst [vmem:[#allocation28_spill] sm:$0xff] %v3992_v34 }
 0x1d4   : > { %v1313_v6 = vshra.s32 %v3944_v35, 16 }
 0x1d6   : > { %v3947_v54 = vcvt.s32.f32 %v1313_v6 }
 0x1d7   : > { %v3950_v20 = vpop.xlane.xlu2 %1009 }
 0x1d8   : > { %5548 = vst [vmem:[#allocation25_spill] sm:$0xff] %v3950_v20  ;;  %vm1100_vm10 = vcmp.le.f32.partialorder %v3678_v41, %v3950_v20  ;;  %vm1101_vm11 = vcmp.le.f32.partialorder %v3681_v42, %v3950_v20  ;;  %1316 = vmin.xlane.f32.xlu1 %v3947_v54  ;;  %v395_v42 = vld [vmem:[%s3450_s26 + $0xc8] sm:$0xff]  ;;  %vm2215_vm15 = vcmp.lt.f32.partialorder %v3950_v20, %v3973_v18 }
 0x1d9   : > { %v1164_v60 = vsel %vm1100_vm10, %v3703_v2, 256  ;;  %v1165_v61 = vsel %vm1101_vm11, %v3712_v5, 256  ;;  %2874 = vmatmul.msk.f32.gmra.mxu0 %vm435_vm1, %v395_v42  ;;  %2922 = vmatmul.msk.f32.gmra.mxu1 %vm435_vm1, %v395_v42  ;;  %v2247_v27 = vsel %vm2215_vm15, %v3950_v20, %v3973_v18 }
 0x1da   : > { %vm1326_vm12 = vcmp.lt.s32.totalorder %v1164_v60, %v1165_v61  ;;  %2280 = vst.msk [vmem:[#allocation2 + $0x38] sm:$0xff] %vm2272_vm2, %v2247_v27  ;;  %v1216_v27 = vand.u32 65535, %v3735_v56  ;;  %v1232_v56 = vand.u32 65535, %v3765_v30 }
 0x1db   : > { %v3961_v1 = vsel %vm1326_vm12, %v1164_v60, %v1165_v61  ;;  %v690_v60 = vpop.f32.mrf.mxu0  ;;  %v803_v61 = vpop.f32.mrf.mxu1 }
 0x1dc   : > { %v1329_v57 = vshra.s32 %v3961_v1, 16 }
 0x1de   : > { %v3964_v41 = vcvt.s32.f32 %v1329_v57  ;;  %v401_v57 = vld [vmem:[%s3450_s26 + $0xf8] sm:$0xff] }
 0x1e0   : > { %1332 = vmin.xlane.f32.xlu1 %v3964_v41 }
 0x1e1   : > { %2875 = vmatmul.msk.f32.gmra.mxu0 %vm435_vm1, %v396_v13  ;;  %2923 = vmatmul.msk.f32.gmra.mxu1 %vm435_vm1, %v396_v13 }
 0x1e3   : > { %v693_v42 = vpop.f32.mrf.mxu0  ;;  %v806_v13 = vpop.f32.mrf.mxu1 }
 0x1e7   : > { %v3990_v44 = vpop.xlane.xlu2 %1015 }
 0x1e8   : > { %5550 = vst [vmem:[#allocation27_spill] sm:$0xff] %v3990_v44  ;;  %vm5462_vm0 = vcmp.lt.f32.partialorder %v3990_v44, %v3992_v34  ;;  %vm1105_vm7 = vcmp.le.f32.partialorder %v3689_v53, %v3990_v44  ;;  %v4074_v53 = vld [vmem:[#allocation2 + $0x50] sm:$0xff] }
 0x1e9   : > { %2876 = vmatmul.msk.f32.gmra.mxu0 %vm435_vm1, %v397_v19  ;;  %2924 = vmatmul.msk.f32.gmra.mxu1 %vm435_vm1, %v397_v19  ;;  %v2249_v6 = vsel %vm5462_vm0, %v3990_v44, %v3992_v34  ;;  %v884_v19 = vmul.f32 2.0, %v690_v60  ;;  %v886_v60 = vmul.f32 2.0, %v693_v42  ;;  %5554 = vst [vmem:[#allocation31_spill] sm:$0xff] %v4074_v53 }
 0x1ea   : > { %2282 = vst.msk [vmem:[#allocation2 + $0x48] sm:$0xff] %vm2272_vm2, %v2249_v6  ;;  %v1218_v6 = vcvt.s32.f32 %v1216_v27  ;;  %v887_v27 = vmul.f32 2.0, %v806_v13 }
 0x1eb   : > { %v696_v58 = vpop.f32.mrf.mxu0  ;;  %v4015_v34 = vpop.f32.mrf.mxu1  ;;  %v4018_v3 = vsub.f32 %v3617_v50, %v884_v19  ;;  %v4032_v19 = vld [vmem:[#allocation2 + $0x40] sm:$0xff]  ;;  %v4043_v42 = vsub.f32 %v3617_v50, %v886_v60  ;;  %v1169_v60 = vsel %vm1105_vm7, %v3712_v5, 256 }
 0x1ec   : > { %5553 = vst [vmem:[#allocation30_spill] sm:$0xff] %v4032_v19 }
 0x1f1   : > { %2877 = vmatmul.msk.f32.gmra.mxu0 %vm435_vm1, %v398_v29  ;;  %2925 = vmatmul.msk.f32.gmra.mxu1 %vm435_vm1, %v398_v29  ;;  %v885_v29 = vmul.f32 2.0, %v803_v61 }
 0x1f9   : > { %2878 = vmatmul.msk.f32.gmra.mxu0 %vm435_vm1, %v399_v33  ;;  %2926 = vmatmul.msk.f32.gmra.mxu1 %vm435_vm1, %v399_v33 }
 0x201   : > { %2879 = vmatmul.msk.f32.gmra.mxu0 %vm435_vm1, %v400_v55  ;;  %2927 = vmatmul.msk.f32.gmra.mxu1 %vm435_vm1, %v400_v55 }
 0x209   : > { %2880 = vmatmul.msk.f32.gmra.mxu0 %vm435_vm1, %v401_v57  ;;  %2928 = vmatmul.msk.f32.gmra.mxu1 %vm435_vm1, %v401_v57  ;;  %v4021_v57 = vsub.f32 %v3619_v51, %v885_v29  ;;  %vm1104_vm1 = vcmp.le.f32.partialorder %v3686_v52, %v3990_v44 }
 0x20b   : > { %v1032_v61 = vmin.f32 %v4018_v3, %v4021_v57 }
 0x21b   : > { %v4011_v33 = vpop.xlane.xlu1 %1220 }
 0x21c   : > { %vm1222_vm4 = vcmp.eq.f32.partialorder %v3740_v22, %v4011_v33  ;;  %v1227_v8 = vcvt.f32.s32 %v4011_v33 }
 0x21d   : > { %v1223_v55 = vsel %vm1222_vm4, %v1218_v6, inf }
 0x21e   : > { %1224 = vmin.xlane.f32.xlu0 %v1223_v55  ;;  %v1234_v55 = vcvt.s32.f32 %v1232_v56  ;;  %v4048_v56 = vsub.f32 %v3619_v51, %v887_v27  ;;  %v812_v27 = vpop.f32.mrf.mxu1  ;;  %v1228_v9 = vshll.u32 %v1227_v8, 16  ;;  %v5498_v8 = vmov 1.0  }
 0x21f   : > { %v891_v59 = vmul.f32 2.0, %v812_v27 }
 0x220   : > { %v1035_v52 = vmin.f32 %v4043_v42, %v4048_v56 }
 0x223   : > { %v4028_v22 = vpop.xlane.xlu0 %1236  ;;  %v4030_v6 = vpop.xlane.xlu1 %1012 }
 0x224   : > { %5552 = vst [vmem:[#allocation29_spill] sm:$0xff] %v4030_v6  ;;  %vm1102_vm10 = vcmp.le.f32.partialorder %v3759_v63, %v4030_v6  ;;  %vm1103_vm11 = vcmp.le.f32.partialorder %v3762_v0, %v4030_v6  ;;  %vm1238_vm12 = vcmp.eq.f32.partialorder %v3770_v37, %v4028_v22  ;;  %v1248_v63 = vand.u32 65535, %v3800_v49 }
 0x225   : > { %v1239_v30 = vsel %vm1238_vm12, %v1234_v55, inf  ;;  %v1166_v13 = vsel %vm1102_vm10, %v3703_v2, 256  ;;  %v1167_v29 = vsel %vm1103_vm11, %v3712_v5, 256  ;;  %vm5476_vm0 = vcmp.lt.f32.partialorder %v4030_v6, %v4032_v19 }
 0x226   : > { %1240 = vmin.xlane.f32.xlu2 %v1239_v30  ;;  %1033 = vmin.xlane.f32.xlu0 %v1032_v61  ;;  %vm1342_vm4 = vcmp.lt.s32.totalorder %v1166_v13, %v1167_v29  ;;  %v1168_v37 = vsel %vm1104_vm1, %v3703_v2, 256  ;;  %v699_v61 = vpop.f32.mrf.mxu0  ;;  %v2248_v49 = vsel %vm5476_vm0, %v4030_v6, %v4032_v19  ;;  %v1250_v44 = vcvt.s32.f32 %v1248_v63 }
 0x227   : > { %v4053_v0 = vsel %vm1342_vm4, %v1166_v13, %v1167_v29  ;;  %2281 = vst.msk [vmem:[#allocation2 + $0x40] sm:$0xff] %vm2272_vm2, %v2248_v49  ;;  %vm1358_vm1 = vcmp.lt.s32.totalorder %v1168_v37, %v1169_v60  ;;  %v1243_v33 = vcvt.f32.s32 %v4028_v22 }
 0x228   : > { %v1345_v55 = vshra.s32 %v4053_v0, 16 }
 0x22a   : > { %v4070_v30 = vcvt.s32.f32 %v1345_v55  ;;  %v4087_v55 = vsel %vm1358_vm1, %v1168_v37, %v1169_v60  ;;  %v4101_v37 = vpop.f32.mrf.mxu1 }
 0x22b   : > { %v4076_v13 = vpop.xlane.xlu0 %1252  ;;  %v4078_v29 = vpop.xlane.xlu1 %1018  ;;  %v1361_v60 = vshra.s32 %v4087_v55, 16 }
 0x22c   : > { %5555 = vst [vmem:[#allocation32_spill] sm:$0xff] %v4078_v29  ;;  %vm1106_vm7 = vcmp.le.f32.partialorder %v3794_v7, %v4078_v29  ;;  %vm1107_vm10 = vcmp.le.f32.partialorder %v3797_v47, %v4078_v29  ;;  %1348 = vmin.xlane.f32.xlu1 %v4070_v30  ;;  %vm1254_vm11 = vcmp.eq.f32.partialorder %v3807_v62, %v4076_v13  ;;  %v1264_v47 = vand.u32 65535, %v3843_v25 }
 0x22d   : > { %v1255_v49 = vsel %vm1254_vm11, %v1250_v44, inf  ;;  %vm2218_vm12 = vcmp.lt.f32.partialorder %v4078_v29, %v4074_v53  ;;  %v1170_v63 = vsel %vm1106_vm7, %v3703_v2, 256  ;;  %v1171_v62 = vsel %vm1107_vm10, %v3712_v5, 256 }
 0x22e   : > { %1256 = vmin.xlane.f32.xlu2 %v1255_v49  ;;  %1036 = vmin.xlane.f32.xlu0 %v1035_v52  ;;  %v2250_v7 = vsel %vm2218_vm12, %v4078_v29, %v4074_v53  ;;  %v4099_v44 = vpop.f32.mrf.mxu0  ;;  %v888_v52 = vmul.f32 2.0, %v696_v58  ;;  %vm1374_vm4 = vcmp.lt.s32.totalorder %v1170_v63, %v1171_v62  ;;  %v1266_v6 = vcvt.s32.f32 %v1264_v47  ;;  %v1941_v53 = vld [vmem:[%s3466_s16 + $0xb8] sm:$0xff] }
 0x22f   : > { %2283 = vst.msk [vmem:[#allocation2 + $0x50] sm:$0xff] %vm2272_vm2, %v2250_v7  ;;  %v889_v25 = vmul.f32 2.0, %v4015_v34  ;;  %v4118_v58 = vcvt.s32.f32 %v1361_v60  ;;  %v4120_v7 = vld [vmem:[#allocation2 + $0x60] sm:$0xff]  ;;  %v4122_v31 = vsel %vm1374_vm4, %v1170_v63, %v1171_v62 }
 0x230   : > { %5558 = vst [vmem:[#allocation35_spill] sm:$0xff] %v4120_v7 }
 0x231   : > { %v4130_v34 = vsub.f32 %v3619_v51, %v889_v25  ;;  %v890_v25 = vmul.f32 2.0, %v699_v61 }
 0x232   : > { %v4139_v63 = vpop.f32.mrf.mxu1 }
 0x233   : > { %v4105_v49 = vpop.xlane.xlu2 %1268  ;;  %v4107_v19 = vpop.xlane.xlu0 %1021  ;;  %v4167_v27 = vsub.f32 %v3617_v50, %v890_v25 }
 0x234   : > { %5556 = vst [vmem:[#allocation33_spill] sm:$0xff] %v4107_v19  ;;  %vm1108_vm1 = vcmp.le.f32.partialorder %v3837_v14, %v4107_v19  ;;  %vm1109_vm7 = vcmp.le.f32.partialorder %v3840_v16, %v4107_v19  ;;  %v4114_v15 = vpop.xlane.xlu1 %1024  ;;  %vm1270_vm10 = vcmp.eq.f32.partialorder %v3850_v38, %v4105_v49  ;;  %v4126_v14 = vsub.f32 %v3617_v50, %v888_v52 }
 0x235   : > { %5557 = vst [vmem:[#allocation34_spill] sm:$0xff] %v4114_v15  ;;  %v1271_v23 = vsel %vm1270_vm10, %v1266_v6, inf  ;;  %v1280_v16 = vand.u32 65535, %v3886_v21  ;;  %v1172_v38 = vsel %vm1108_vm1, %v3703_v2, 256  ;;  %v1173_v47 = vsel %vm1109_vm7, %v3712_v5, 256 }
 0x236   : > { %1272 = vmin.xlane.f32.xlu2 %v1271_v23  ;;  %1364 = vmin.xlane.f32.xlu0 %v4118_v58  ;;  %vm5473_vm11 = vcmp.lt.f32.partialorder %v4114_v15, %v4120_v7  ;;  %v1377_v6 = vshra.s32 %v4122_v31, 16  ;;  %v4137_v23 = vpop.f32.mrf.mxu0  ;;  %vm1390_vm4 = vcmp.lt.s32.totalorder %v1172_v38, %v1173_v47  ;;  %v1038_v52 = vmin.f32 %v4126_v14, %v4130_v34 }
 0x237   : > { %v2252_v21 = vsel %vm5473_vm11, %v4114_v15, %v4120_v7  ;;  %v1282_v60 = vcvt.s32.f32 %v1280_v16  ;;  %vm1110_vm7 = vcmp.le.f32.partialorder %v3812_v10, %v4114_v15  ;;  %vm1111_vm10 = vcmp.le.f32.partialorder %v3825_v12, %v4114_v15 }
 0x238   : > { %2285 = vst.msk [vmem:[#allocation2 + $0x60] sm:$0xff] %vm2272_vm2, %v2252_v21  ;;  %v4155_v36 = vcvt.s32.f32 %v1377_v6  ;;  %v4163_v61 = vsel %vm1390_vm4, %v1172_v38, %v1173_v47  ;;  %v1296_v6 = vand.u32 65535, %v3917_v28  ;;  %v1174_v12 = vsel %vm1110_vm7, %v3703_v2, 256  ;;  %v4178_v47 = vld [vmem:[#allocation2 + $0x58] sm:$0xff]  ;;  %v4189_v28 = vld [vmem:[#allocation2 + $0x70] sm:$0xff] }
 0x239   : > { %v1393_v10 = vshra.s32 %v4163_v61, 16  ;;  %v1175_v38 = vsel %vm1111_vm10, %v3712_v5, 256  ;;  %5561 = vst [vmem:[#allocation38_spill] sm:$0xff] %v4178_v47  ;;  %vm5506_vm10 = vcmp.lt.f32.partialorder %v4107_v19, %v4178_v47 }
 0x23a   : > { %5563 = vst [vmem:[#allocation40_spill] sm:$0xff] %v4189_v28  ;;  %v1298_v25 = vcvt.s32.f32 %v1296_v6  ;;  %vm1406_vm4 = vcmp.lt.s32.totalorder %v1174_v12, %v1175_v38  ;;  %v4195_v7 = vpop.f32.mrf.mxu1 }
 0x23b   : > { %v4146_v62 = vpop.xlane.xlu2 %1284  ;;  %v4151_v11 = vpop.xlane.xlu0 %1027  ;;  %v4202_v15 = vcvt.s32.f32 %v1393_v10  ;;  %v1312_v10 = vand.u32 65535, %v3944_v35 }
 0x23c   : > { %5559 = vst [vmem:[#allocation36_spill] sm:$0xff] %v4151_v11  ;;  %vm1286_vm1 = vcmp.eq.f32.partialorder %v3895_v4, %v4146_v62  ;;  %v4170_v4 = vsub.f32 %v3619_v51, %v891_v59  ;;  %vm2221_vm11 = vcmp.lt.f32.partialorder %v4151_v11, %v4157_v45  ;;  %v4180_v21 = vpop.xlane.xlu1 %1030  ;;  %vm1113_vm0 = vcmp.le.f32.partialorder %v3858_v43, %v4151_v11 }
 0x23d   : > { %v1287_v16 = vsel %vm1286_vm1, %v1282_v60, inf  ;;  %5562 = vst [vmem:[#allocation39_spill] sm:$0xff] %v4180_v21  ;;  %v2253_v59 = vsel %vm2221_vm11, %v4151_v11, %v4157_v45  ;;  %vm1112_vm1 = vcmp.le.f32.partialorder %v3855_v39, %v4151_v11  ;;  %vm5479_vm14 = vcmp.lt.f32.partialorder %v4180_v21, %v4189_v28  ;;  %v1932_v45 = vld [vmem:[%s3466_s16 + $0x70] sm:$0xff] }
 0x23e   : > { %1288 = vmin.xlane.f32.xlu1 %v1287_v16  ;;  %1380 = vmin.xlane.f32.xlu0 %v4155_v36  ;;  %v4182_v60 = vpop.f32.mrf.mxu0  ;;  %v1041_v16 = vmin.f32 %v4167_v27, %v4170_v4  ;;  %2286 = vst.msk [vmem:[#allocation2 + $0x68] sm:$0xff] %vm2272_vm2, %v2253_v59  ;;  %v2251_v59 = vsel %vm5506_vm10, %v4107_v19, %v4178_v47  ;;  %v1949_v19 = vld [vmem:[%s3466_s16 + $0xf8] sm:$0xff] }
 0x23f   : > { %1039 = vmin.xlane.f32.xlu2 %v1038_v52  ;;  %2284 = vst.msk [vmem:[#allocation2 + $0x58] sm:$0xff] %vm2272_vm2, %v2251_v59  ;;  %v2254_v43 = vsel %vm5479_vm14, %v4180_v21, %v4189_v28  ;;  %v893_v59 = vmul.f32 2.0, %v4101_v37  ;;  %vm1114_vm14 = vcmp.le.f32.partialorder %v3863_v46, %v4180_v21  ;;  %v1328_v46 = vand.u32 65535, %v3961_v1  ;;  %2063 = vmatpush.msra.mxu3 %v1949_v19  ;;  %v1946_v19 = vld [vmem:[%s3466_s16 + $0xe0] sm:$0xff] }
 0x240   : > { %2287 = vst.msk [vmem:[#allocation2 + $0x70] sm:$0xff] %vm2272_vm2, %v2254_v43 }
 0x243   : > { %v4191_v52 = vpop.xlane.xlu2 %1300 }
 0x244   : > { %vm1302_vm7 = vcmp.eq.f32.partialorder %v3922_v26, %v4191_v52  ;;  %v4216_v26 = vsel %vm1406_vm4, %v1174_v12, %v1175_v38  ;;  %v1177_v12 = vsel %vm1113_vm0, %v3712_v5, 256 }
 0x245   : > { %v1303_v6 = vsel %vm1302_vm7, %v1298_v25, inf  ;;  %v1176_v25 = vsel %vm1112_vm1, %v3703_v2, 256  ;;  %v1409_v38 = vshra.s32 %v4216_v26, 16  ;;  %vm1115_vm1 = vcmp.le.f32.partialorder %v3874_v48, %v4180_v21 }
 0x246   : > { %1304 = vmin.xlane.f32.xlu1 %v1303_v6  ;;  %1396 = vmin.xlane.f32.xlu0 %v4202_v15  ;;  %v892_v6 = vmul.f32 2.0, %v4099_v44  ;;  %vm1422_vm4 = vcmp.lt.s32.totalorder %v1176_v25, %v1177_v12  ;;  %v4244_v43 = vpop.f32.mrf.mxu0  ;;  %v4246_v44 = vpop.f32.mrf.mxu1  ;;  %v1178_v48 = vsel %vm1114_vm14, %v3703_v2, 256 }
 0x247   : > { %1042 = vmin.xlane.f32.xlu2 %v1041_v16  ;;  %v1314_v16 = vcvt.s32.f32 %v1312_v10  ;;  %v4242_v35 = vcvt.s32.f32 %v1409_v38  ;;  %v4252_v10 = vsub.f32 %v3619_v51, %v893_v59  ;;  %v1179_v38 = vsel %vm1115_vm1, %v3712_v5, 256 }
 0x248   : > { %v4249_v37 = vsub.f32 %v3617_v50, %v892_v6  ;;  %v894_v59 = vmul.f32 2.0, %v4137_v23  ;;  %vm1438_vm0 = vcmp.lt.s32.totalorder %v1178_v48, %v1179_v38 }
 0x24a   : > { %v1044_v6 = vmin.f32 %v4249_v37, %v4252_v10  ;;  %v4272_v21 = vsub.f32 %v3617_v50, %v894_v59 }
 0x24b   : > { %v4234_v47 = vpop.xlane.xlu1 %1316 }
 0x24c   : > { %vm1318_vm7 = vcmp.eq.f32.partialorder %v3947_v54, %v4234_v47  ;;  %v4254_v54 = vsel %vm1422_vm4, %v1176_v25, %v1177_v12  ;;  %v895_v25 = vmul.f32 2.0, %v4139_v63  ;;  %v4277_v63 = vsel %vm1438_vm0, %v1178_v48, %v1179_v38 }
 0x24d   : > { %v1319_v39 = vsel %vm1318_vm7, %v1314_v16, inf  ;;  %v1425_v16 = vshra.s32 %v4254_v54, 16  ;;  %v1441_v59 = vshra.s32 %v4277_v63, 16  ;;  %v896_v38 = vmul.f32 2.0, %v4182_v60  ;;  %v1945_v60 = vld [vmem:[%s3466_s16 + $0xd8] sm:$0xff] }
 0x24e   : > { %1320 = vmin.xlane.f32.xlu1 %v1319_v39  ;;  %v1330_v39 = vcvt.s32.f32 %v1328_v46  ;;  %v4275_v23 = vsub.f32 %v3619_v51, %v895_v25  ;;  %v1933_v46 = vld [vmem:[%s3466_s16 + $0x78] sm:$0xff]  ;;  %v1947_v25 = vld [vmem:[%s3466_s16 + $0xe8] sm:$0xff] }
 0x24f   : > { %1412 = vmin.xlane.f32.xlu2 %v4242_v35  ;;  %v4269_v28 = vcvt.s32.f32 %v1425_v16  ;;  %v827_v16 = vpop.f32.mrf.mxu1  ;;  %1950 = vmatpush.msra.mxu2 %v1933_v46  ;;  %v1930_v46 = vld [vmem:[%s3466_s16 + $0x60] sm:$0xff]  ;;  %v4293_v11 = vcvt.s32.f32 %v1441_v59  ;;  %v1927_v59 = vld [vmem:[%s3466_s16 + $0x48] sm:$0xff] }
 0x250   : > { %v1047_v48 = vmin.f32 %v4272_v21, %v4275_v23 }
 0x251   : > { %1951 = vmatpush.msra.mxu2 %v1932_v45  ;;  %v4296_v45 = vsub.f32 %v3617_v50, %v896_v38  ;;  %v1943_v38 = vld [vmem:[%s3466_s16 + $0xc8] sm:$0xff] }
 0x253   : > { %v4265_v12 = vpop.xlane.xlu1 %1332 }
 0x254   : > { %vm1334_vm14 = vcmp.eq.f32.partialorder %v3964_v41, %v4265_v12  ;;  %v714_v41 = vpop.f32.mrf.mxu0 }
 0x255   : > { %v1335_v1 = vsel %vm1334_vm14, %v1330_v39, inf  ;;  %v1931_v39 = vld [vmem:[%s3466_s16 + $0x68] sm:$0xff] }
 0x256   : > { %1336 = vmin.xlane.f32.xlu0 %v1335_v1  ;;  %1045 = vmin.xlane.f32.xlu1 %v1044_v6  ;;  %v1948_v6 = vld [vmem:[%s3466_s16 + $0xf0] sm:$0xff]  ;;  %v897_v1 = vmul.f32 2.0, %v4195_v7  ;;  %v1929_v7 = vld [vmem:[%s3466_s16 + $0x58] sm:$0xff] }
 0x257   : > { %1428 = vmin.xlane.f32.xlu2 %v4269_v28  ;;  %2064 = vmatpush.msra.mxu3 %v1948_v6  ;;  %v1928_v6 = vld [vmem:[%s3466_s16 + $0x50] sm:$0xff] }
 0x258   : > { %1952 = vmatpush.msra.mxu2 %v1931_v39  ;;  %v4299_v32 = vsub.f32 %v3619_v51, %v897_v1  ;;  %v1944_v39 = vld [vmem:[%s3466_s16 + $0xd0] sm:$0xff] }
 0x259   : > { %2065 = vmatpush.msra.mxu3 %v1947_v25 }
 0x25a   : > { %1953 = vmatpush.msra.mxu2 %v1930_v46  ;;  %v1050_v1 = vmin.f32 %v4296_v45, %v4299_v32  ;;  %v898_v46 = vmul.f32 2.0, %v4244_v43  ;;  %v1925_v43 = vld [vmem:[%s3466_s16 + $0x38] sm:$0xff] }
 0x25b   : > { %2066 = vmatpush.msra.mxu3 %v1946_v19  ;;  %v899_v19 = vmul.f32 2.0, %v4246_v44  ;;  %v1924_v44 = vld [vmem:[%s3466_s16 + $0x30] sm:$0xff] }
 0x25c   : > { %1954 = vmatpush.msra.mxu2 %v1929_v7  ;;  %v717_v25 = vpop.f32.mrf.mxu0  ;;  %v1926_v7 = vld [vmem:[%s3466_s16 + $0x40] sm:$0xff] }
 0x25d   : > { %2067 = vmatpush.msra.mxu3 %v1945_v60  ;;  %v1942_v60 = vld [vmem:[%s3466_s16 + $0xc0] sm:$0xff]  ;;  %v4318_v40 = vsub.f32 %v3619_v51, %v899_v19 }
 0x25e   : > { %1048 = vmin.xlane.f32.xlu1 %v1047_v48  ;;  %v830_v48 = vpop.f32.mrf.mxu1  ;;  %1955 = vmatpush.msra.mxu2 %v1928_v6  ;;  %v4315_v6 = vsub.f32 %v3617_v50, %v898_v46  ;;  %v900_v46 = vmul.f32 2.0, %v714_v41  ;;  %v1922_v19 = vld [vmem:[%s3466_s16 + $0x20] sm:$0xff] }
 0x25f   : > { %1444 = vmin.xlane.f32.xlu2 %v4293_v11  ;;  %2068 = vmatpush.msra.mxu3 %v1944_v39  ;;  %v1940_v39 = vld [vmem:[%s3466_s16 + $0xb0] sm:$0xff] }
 0x260   : > { %1956 = vmatpush.msra.mxu2 %v1927_v59  ;;  %v1923_v59 = vld [vmem:[%s3466_s16 + $0x28] sm:$0xff] }
 0x261   : > { %2069 = vmatpush.msra.mxu3 %v1943_v38  ;;  %v1939_v38 = vld [vmem:[%s3466_s16 + $0xa8] sm:$0xff] }
 0x262   : > { %1957 = vmatpush.msra.mxu2 %v1926_v7  ;;  %v901_v7 = vmul.f32 2.0, %v827_v16  ;;  %v1921_v16 = vld [vmem:[%s3466_s16 + $0x18] sm:$0xff] }
 0x263   : > { %2070 = vmatpush.msra.mxu3 %v1942_v60 }
 0x264   : > { %1958 = vmatpush.msra.mxu2 %v1925_v43  ;;  %v720_v60 = vpop.f32.mrf.mxu0  ;;  %v1938_v43 = vld [vmem:[%s3466_s16 + $0xa0] sm:$0xff]  ;;  %v4334_v41 = vsub.f32 %v3619_v51, %v901_v7 }
 0x265   : > { %2071 = vmatpush.msra.mxu3 %v1941_v53  ;;  %v4331_v53 = vsub.f32 %v3617_v50, %v900_v46  ;;  %v1919_v46 = vld [vmem:[%s3466_s16 + $0x8] sm:$0xff] }
 0x266   : > { %1051 = vmin.xlane.f32.xlu1 %v1050_v1  ;;  %1959 = vmatpush.msra.mxu2 %v1924_v44  ;;  %v1053_v1 = vmin.f32 %v4315_v6, %v4318_v40  ;;  %v833_v29 = vpop.f32.mrf.mxu1  ;;  %v1937_v44 = vld [vmem:[%s3466_s16 + $0x98] sm:$0xff] }
 0x267   : > { %2072 = vmatpush.msra.mxu3 %v1940_v39  ;;  %v1056_v39 = vmin.f32 %v4331_v53, %v4334_v41 }
 0x268   : > { %1960 = vmatpush.msra.mxu2 %v1923_v59  ;;  %v902_v59 = vmul.f32 2.0, %v717_v25 }
 0x269   : > { %2073 = vmatpush.msra.mxu3 %v1939_v38  ;;  %v903_v38 = vmul.f32 2.0, %v830_v48  ;;  %v904_v48 = vmul.f32 2.0, %v720_v60 }
 0x26a   : > { %1961 = vmatpush.msra.mxu2 %v1922_v19  ;;  %v1936_v19 = vld [vmem:[%s3466_s16 + $0x90] sm:$0xff] }
 0x26b   : > { %2074 = vmatpush.msra.mxu3 %v1938_v43  ;;  %v1934_v43 = vld [vmem:[%s3466_s16 + $0x80] sm:$0xff] }
 0x26c   : > { %1962 = vmatpush.msra.mxu2 %v1921_v16  ;;  %v723_v7 = vpop.f32.mrf.mxu0  ;;  %v4347_v16 = vsub.f32 %v3617_v50, %v902_v59 }
 0x26d   : > { %2075 = vmatpush.msra.mxu3 %v1937_v44  ;;  %v4350_v44 = vsub.f32 %v3619_v51, %v903_v38 }
 0x26e   : > { %1054 = vmin.xlane.f32.xlu1 %v1053_v1  ;;  %v1920_v1 = vld [vmem:[%s3466_s16 + $0x10] sm:$0xff]  ;;  %v836_v18 = vpop.f32.mrf.mxu1 }
 0x26f   : > { %1963 = vmatpush.msra.mxu2 %v1920_v1  ;;  %2076 = vmatpush.msra.mxu3 %v1936_v19  ;;  %v1059_v25 = vmin.f32 %v4347_v16, %v4350_v44  ;;  %v905_v1 = vmul.f32 2.0, %v833_v29  ;;  %v4355_v19 = vsub.f32 %v3617_v50, %v904_v48 }
 0x271   : > { %1964 = vmatpush.msra.mxu2 %v1919_v46  ;;  %2077 = vmatpush.msra.mxu3 %v1935_v17  ;;  %5564 = vst [vmem:[#allocation41_spill] sm:$0xff] %v4355_v19  ;;  %v4358_v17 = vsub.f32 %v3619_v51, %v905_v1  ;;  %v906_v46 = vmul.f32 2.0, %v723_v7 }
 0x273   : > { %1965 = vmatpush.msra.mxu2 %v1918_v24  ;;  %2078 = vmatpush.msra.mxu3 %v1934_v43  ;;  %5565 = vst [vmem:[#allocation42_spill] sm:$0xff] %v4358_v17  ;;  %v1062_v38 = vmin.f32 %v4355_v19, %v4358_v17  ;;  %v907_v24 = vmul.f32 2.0, %v836_v18  ;;  %v4363_v43 = vsub.f32 %v3617_v50, %v906_v46 }
 0x275   : > { %v4366_v29 = vsub.f32 %v3619_v51, %v907_v24 }
 0x276   : > { %1057 = vmin.xlane.f32.xlu1 %v1056_v39  ;;  %v726_v39 = vpop.f32.mrf.mxu0  ;;  %v839_v59 = vpop.f32.mrf.mxu1 }
 0x277   : > { %5566 = vst [vmem:[#allocation43_spill] sm:$0xff] %v4366_v29  ;;  %v1065_v48 = vmin.f32 %v4363_v43, %v4366_v29  ;;  %v908_v1 = vmul.f32 2.0, %v726_v39  ;;  %v909_v20 = vmul.f32 2.0, %v839_v59 }
 0x279   : > { %v4372_v7 = vsub.f32 %v3617_v50, %v908_v1  ;;  %v4375_v18 = vsub.f32 %v3619_v51, %v909_v20  ;;  %v4390_v20 = vld [vmem:[#allocation2 + $0x78] sm:$0xff] }
 0x27a   : > { %5568 = vst [vmem:[#allocation45_spill] sm:$0xff] %v4390_v20 }
 0x27b   : > { %v1068_v19 = vmin.f32 %v4372_v7, %v4375_v18 }
 0x27e   : > { %1060 = vmin.xlane.f32.xlu1 %v1059_v25  ;;  %v729_v60 = vpop.f32.mrf.mxu0  ;;  %v842_v25 = vpop.f32.mrf.mxu1 }
 0x27f   : > { %v910_v46 = vmul.f32 2.0, %v729_v60  ;;  %v911_v24 = vmul.f32 2.0, %v842_v25 }
 0x281   : > { %v4384_v1 = vsub.f32 %v3619_v51, %v911_v24 }
 0x283   : > { %5567 = vst [vmem:[#allocation44_spill] sm:$0xff] %v4384_v1 }
 0x286   : > { %1063 = vmin.xlane.f32.xlu1 %v1062_v38  ;;  %v845_v29 = vpop.f32.mrf.mxu1  ;;  %v732_v39 = vpop.f32.mrf.mxu0 }
 0x287   : > { %v913_v25 = vmul.f32 2.0, %v845_v29 }
 0x28e   : > { %1066 = vmin.xlane.f32.xlu1 %v1065_v48  ;;  %v4381_v48 = vsub.f32 %v3617_v50, %v910_v46  ;;  %v1344_v46 = vand.u32 65535, %v4053_v0 }
 0x290   : > { %v1071_v60 = vmin.f32 %v4381_v48, %v4384_v1 }
 0x291   : > { %v1225_v38 = vpop.xlane.xlu0 %1224 }
 0x292   : > { %v1226_v17 = vcvt.f32.s32 %v1225_v38 }
 0x294   : > { %v1229_v59 = vadd.s32 %v1228_v9, %v1226_v17  ;;  %v1244_v9 = vshll.u32 %v1243_v33, 16  ;;  %v735_v33 = vpop.f32.mrf.mxu0 }
 0x296   : > { %1069 = vmin.xlane.f32.xlu1 %v1068_v19  ;;  %vm1726_vm4 = vcmp.eq.s32.totalorder %v3703_v2, %v1229_v59  ;;  %vm1727_vm7 = vcmp.eq.s32.totalorder %v3712_v5, %v1229_v59  ;;  %v912_v19 = vmul.f32 2.0, %v732_v39 }
 0x297   : > { %2993 = vmatmul.msk.f32.vlgmr.msra.gmra.mxu2 %vm1726_vm4, %v5498_v8  ;;  %3025 = vmatmul.msk.f32.vlgmr.msra.gmra.mxu3 %vm1727_vm7, %v5498_v8 }
 0x298   : > { %v4420_v8 = vsub.f32 %v3617_v50, %v912_v19 }
 0x299   : > { %v1241_v22 = vpop.xlane.xlu2 %1240  ;;  %v4392_v17 = vpop.xlane.xlu0 %1033 }
 0x29a   : > { %5569 = vst [vmem:[#allocation46_spill] sm:$0xff] %v4392_v17  ;;  %v1242_v38 = vcvt.f32.s32 %v1241_v22  ;;  %vm1116_vm1 = vcmp.le.f32.partialorder %v4018_v3, %v4392_v17  ;;  %vm1117_vm0 = vcmp.le.f32.partialorder %v4021_v57, %v4392_v17  ;;  %vm5505_vm14 = vcmp.lt.f32.partialorder %v4392_v17, %v4390_v20  ;;  %v848_v22 = vpop.f32.mrf.mxu1 }
 0x29b   : > { %v1180_v24 = vsel %vm1116_vm1, %v3703_v2, 256  ;;  %v1181_v59 = vsel %vm1117_vm0, %v3712_v5, 256  ;;  %v2255_v29 = vsel %vm5505_vm14, %v4392_v17, %v4390_v20  ;;  %v1259_v3 = vcvt.f32.s32 %v4076_v13 }
 0x29c   : > { %v1245_v39 = vadd.s32 %v1244_v9, %v1242_v38  ;;  %vm1454_vm4 = vcmp.lt.s32.totalorder %v1180_v24, %v1181_v59  ;;  %2288 = vst.msk [vmem:[#allocation2 + $0x78] sm:$0xff] %vm2272_vm2, %v2255_v29  ;;  %v4413_v57 = vsub.f32 %v3619_v51, %v913_v25  ;;  %v5570_v38 = vmov 1.0  }
 0x29d   : > { %v4415_v0 = vsel %vm1454_vm4, %v1180_v24, %v1181_v59  ;;  %v1346_v25 = vcvt.s32.f32 %v1344_v46  ;;  %v4431_v24 = vld [vmem:[#allocation2 + $0x80] sm:$0xff]  ;;  %v1260_v59 = vshll.u32 %v1259_v3, 16  ;;  %v914_v20 = vmul.f32 2.0, %v735_v33 }
 0x29e   : > { %1072 = vmin.xlane.f32.xlu1 %v1071_v60  ;;  %vm1728_vm7 = vcmp.eq.s32.totalorder %v3703_v2, %v1245_v39  ;;  %vm1729_vm1 = vcmp.eq.s32.totalorder %v3712_v5, %v1245_v39  ;;  %v1457_v9 = vshra.s32 %v4415_v0, 16  ;;  %5571 = vst [vmem:[#allocation47_spill] sm:$0xff] %v4431_v24  ;;  %v915_v17 = vmul.f32 2.0, %v848_v22 }
 0x29f   : > { %2994 = vmatmul.msk.f32.gmra.mxu2 %vm1728_vm7, %v5570_v38  ;;  %3026 = vmatmul.msk.f32.gmra.mxu3 %vm1729_vm1, %v5570_v38  ;;  %v4425_v13 = vpop.xlane.xlu1 %1348  ;;  %v1275_v22 = vcvt.f32.s32 %v4105_v49  ;;  %v738_v49 = vpop.f32.mrf.mxu0 }
 0x2a0   : > { %vm1350_vm0 = vcmp.eq.f32.partialorder %v4070_v30, %v4425_v13  ;;  %v4429_v60 = vcvt.s32.f32 %v1457_v9  ;;  %v1074_v30 = vmin.f32 %v4420_v8, %v4413_v57  ;;  %v4454_v9 = vsub.f32 %v3617_v50, %v914_v20 }
 0x2a1   : > { %v1257_v29 = vpop.xlane.xlu2 %1256  ;;  %v4433_v19 = vpop.xlane.xlu0 %1036  ;;  %v1351_v39 = vsel %vm1350_vm0, %v1346_v25, inf  ;;  %v4457_v25 = vsub.f32 %v3619_v51, %v915_v17  ;;  %v1276_v17 = vshll.u32 %v1275_v22, 16  ;;  %v1291_v22 = vcvt.f32.s32 %v4146_v62 }
 0x2a2   : > { %5572 = vst [vmem:[#allocation48_spill] sm:$0xff] %v4433_v19  ;;  %v1258_v1 = vcvt.f32.s32 %v1257_v29  ;;  %vm1118_vm4 = vcmp.le.f32.partialorder %v4043_v42, %v4433_v19  ;;  %vm1119_vm7 = vcmp.le.f32.partialorder %v4048_v56, %v4433_v19  ;;  %1352 = vmin.xlane.f32.xlu0 %v1351_v39  ;;  %1460 = vmin.xlane.f32.xlu2 %v4429_v60  ;;  %v1360_v42 = vand.u32 65535, %v4087_v55 }
 0x2a3   : > { %v1182_v46 = vsel %vm1118_vm4, %v3703_v2, 256  ;;  %v1183_v3 = vsel %vm1119_vm7, %v3712_v5, 256  ;;  %vm5507_vm1 = vcmp.lt.f32.partialorder %v4433_v19, %v4431_v24 }
 0x2a4   : > { %v1261_v33 = vadd.s32 %v1260_v59, %v1258_v1  ;;  %vm1470_vm0 = vcmp.lt.s32.totalorder %v1182_v46, %v1183_v3  ;;  %v2256_v56 = vsel %vm5507_vm1, %v4433_v19, %v4431_v24  ;;  %v851_v1 = vpop.f32.mrf.mxu1 }
 0x2a5   : > { %v4459_v29 = vsel %vm1470_vm0, %v1182_v46, %v1183_v3  ;;  %2289 = vst.msk [vmem:[#allocation2 + $0x80] sm:$0xff] %vm2272_vm2, %v2256_v56  ;;  %v1362_v46 = vcvt.s32.f32 %v1360_v42  ;;  %v917_v56 = vmul.f32 2.0, %v851_v1 }
 0x2a6   : > { %1075 = vmin.xlane.f32.xlu1 %v1074_v30  ;;  %vm1730_vm4 = vcmp.eq.s32.totalorder %v3703_v2, %v1261_v33  ;;  %vm1731_vm7 = vcmp.eq.s32.totalorder %v3712_v5, %v1261_v33  ;;  %v1473_v55 = vshra.s32 %v4459_v29, 16  ;;  %v1077_v30 = vmin.f32 %v4454_v9, %v4457_v25 }
 0x2a7   : > { %2995 = vmatmul.msk.f32.gmra.mxu2 %vm1730_vm4, %v5570_v38  ;;  %3027 = vmatmul.msk.f32.gmra.mxu3 %vm1731_vm7, %v5570_v38  ;;  %v916_v33 = vmul.f32 2.0, %v738_v49  ;;  %v1292_v49 = vshll.u32 %v1291_v22, 16 }
 0x2a8   : > { %v4467_v20 = vcvt.s32.f32 %v1473_v55  ;;  %v1376_v55 = vand.u32 65535, %v4122_v31 }
 0x2a9   : > { %v1273_v59 = vpop.xlane.xlu2 %1272  ;;  %v4469_v39 = vpop.xlane.xlu0 %1364  ;;  %v4479_v42 = vsub.f32 %v3617_v50, %v916_v33  ;;  %v4521_v33 = vld [vmem:[#allocation2 + $0x90] sm:$0xff] }
 0x2aa   : > { %v1274_v3 = vcvt.f32.s32 %v1273_v59  ;;  %1476 = vmin.xlane.f32.xlu2 %v4467_v20  ;;  %vm1366_vm0 = vcmp.eq.f32.partialorder %v4118_v58, %v4469_v39  ;;  %v4482_v59 = vsub.f32 %v3619_v51, %v917_v56  ;;  %v4488_v58 = vld [vmem:[#allocation2 + $0x88] sm:$0xff]  ;;  %v1378_v31 = vcvt.s32.f32 %v1376_v55 }
 0x2ab   : > { %v1367_v24 = vsel %vm1366_vm0, %v1362_v46, inf }
 0x2ac   : > { %v1277_v19 = vadd.s32 %v1276_v17, %v1274_v3  ;;  %1368 = vmin.xlane.f32.xlu0 %v1367_v24  ;;  %v1080_v51 = vmin.f32 %v4479_v42, %v4482_v59 }
 0x2ae   : > { %1078 = vmin.xlane.f32.xlu1 %v1077_v30  ;;  %vm1732_vm4 = vcmp.eq.s32.totalorder %v3703_v2, %v1277_v19  ;;  %vm1733_vm7 = vcmp.eq.s32.totalorder %v3712_v5, %v1277_v19 }
 0x2af   : > { %2996 = vmatmul.msk.f32.gmra.mxu2 %vm1732_vm4, %v5570_v38  ;;  %3028 = vmatmul.msk.f32.gmra.mxu3 %vm1733_vm7, %v5570_v38 }
 0x2b1   : > { %v1289_v62 = vpop.xlane.xlu1 %1288  ;;  %v4490_v24 = vpop.xlane.xlu0 %1380 }
 0x2b2   : > { %v1290_v50 = vcvt.f32.s32 %v1289_v62  ;;  %v4492_v1 = vpop.xlane.xlu2 %1039  ;;  %vm1382_vm0 = vcmp.eq.f32.partialorder %v4155_v36, %v4490_v24  ;;  %v1392_v36 = vand.u32 65535, %v4163_v61 }
 0x2b3   : > { %vm1120_vm4 = vcmp.le.f32.partialorder %v4126_v14, %v4492_v1  ;;  %vm1121_vm7 = vcmp.le.f32.partialorder %v4130_v34, %v4492_v1  ;;  %v1383_v19 = vsel %vm1382_vm0, %v1378_v31, inf  ;;  %vm5508_vm14 = vcmp.lt.f32.partialorder %v4492_v1, %v4488_v58 }
 0x2b4   : > { %v1293_v17 = vadd.s32 %v1292_v49, %v1290_v50  ;;  %1384 = vmin.xlane.f32.xlu0 %v1383_v19  ;;  %v1184_v46 = vsel %vm1120_vm4, %v3703_v2, 256  ;;  %v1185_v30 = vsel %vm1121_vm7, %v3712_v5, 256  ;;  %v2257_v14 = vsel %vm5508_vm14, %v4492_v1, %v4488_v58 }
 0x2b5   : > { %vm1486_vm10 = vcmp.lt.s32.totalorder %v1184_v46, %v1185_v30  ;;  %v1307_v34 = vcvt.f32.s32 %v4191_v52  ;;  %2290 = vst.msk [vmem:[#allocation2 + $0x88] sm:$0xff] %vm2272_vm2, %v2257_v14  ;;  %v1394_v55 = vcvt.s32.f32 %v1392_v36 }
 0x2b6   : > { %1081 = vmin.xlane.f32.xlu1 %v1080_v51  ;;  %vm1734_vm0 = vcmp.eq.s32.totalorder %v3703_v2, %v1293_v17  ;;  %vm1735_vm1 = vcmp.eq.s32.totalorder %v3712_v5, %v1293_v17  ;;  %v4515_v3 = vsel %vm1486_vm10, %v1184_v46, %v1185_v30 }
 0x2b7   : > { %2997 = vmatmul.msk.f32.gmra.mxu2 %vm1734_vm0, %v5570_v38  ;;  %3029 = vmatmul.msk.f32.gmra.mxu3 %vm1735_vm1, %v5570_v38  ;;  %v1489_v61 = vshra.s32 %v4515_v3, 16  ;;  %v1308_v62 = vshll.u32 %v1307_v34, 16 }
 0x2b9   : > { %v1305_v56 = vpop.xlane.xlu1 %1304  ;;  %v4523_v22 = vpop.xlane.xlu0 %1396  ;;  %v4525_v52 = vcvt.s32.f32 %v1489_v61 }
 0x2ba   : > { %v1306_v31 = vcvt.f32.s32 %v1305_v56  ;;  %v4527_v49 = vpop.xlane.xlu2 %1042  ;;  %vm1398_vm10 = vcmp.eq.f32.partialorder %v4202_v15, %v4523_v22  ;;  %v1408_v15 = vand.u32 65535, %v4216_v26 }
 0x2bb   : > { %vm1122_vm1 = vcmp.le.f32.partialorder %v4167_v27, %v4527_v49  ;;  %vm1123_vm4 = vcmp.le.f32.partialorder %v4170_v4, %v4527_v49  ;;  %1492 = vmin.xlane.f32.xlu2 %v4525_v52  ;;  %v1399_v50 = vsel %vm1398_vm10, %v1394_v55, inf  ;;  %vm5509_vm7 = vcmp.lt.f32.partialorder %v4527_v49, %v4521_v33 }
 0x2bc   : > { %v1309_v51 = vadd.s32 %v1308_v62, %v1306_v31  ;;  %1400 = vmin.xlane.f32.xlu0 %v1399_v50  ;;  %v1186_v19 = vsel %vm1122_vm1, %v3703_v2, 256  ;;  %v1187_v17 = vsel %vm1123_vm4, %v3712_v5, 256  ;;  %v2258_v27 = vsel %vm5509_vm7, %v4527_v49, %v4521_v33  ;;  %v4568_v50 = vld [vmem:[#allocation2 + $0x98] sm:$0xff] }
 0x2bd   : > { %vm1502_vm0 = vcmp.lt.s32.totalorder %v1186_v19, %v1187_v17  ;;  %v1323_v4 = vcvt.f32.s32 %v4234_v47  ;;  %2291 = vst.msk [vmem:[#allocation2 + $0x90] sm:$0xff] %vm2272_vm2, %v2258_v27  ;;  %v1410_v61 = vcvt.s32.f32 %v1408_v15  ;;  %v1339_v62 = vcvt.f32.s32 %v4265_v12 }
 0x2be   : > { %vm1736_vm10 = vcmp.eq.s32.totalorder %v3703_v2, %v1309_v51  ;;  %vm1737_vm14 = vcmp.eq.s32.totalorder %v3712_v5, %v1309_v51  ;;  %v4549_v46 = vsel %vm1502_vm0, %v1186_v19, %v1187_v17  ;;  %v1424_v31 = vand.u32 65535, %v4254_v54 }
 0x2bf   : > { %2998 = vmatmul.msk.f32.gmra.mxu2 %vm1736_vm10, %v5570_v38  ;;  %3030 = vmatmul.msk.f32.gmra.mxu3 %vm1737_vm14, %v5570_v38  ;;  %v1505_v26 = vshra.s32 %v4549_v46, 16  ;;  %v1324_v14 = vshll.u32 %v1323_v4, 16  ;;  %v1340_v51 = vshll.u32 %v1339_v62, 16 }
 0x2c0   : > { %v1426_v17 = vcvt.s32.f32 %v1424_v31 }
 0x2c1   : > { %v1321_v30 = vpop.xlane.xlu1 %1320  ;;  %v4555_v36 = vcvt.s32.f32 %v1505_v26 }
 0x2c2   : > { %v1322_v34 = vcvt.f32.s32 %v1321_v30  ;;  %v4557_v47 = vpop.xlane.xlu2 %1412  ;;  %v1440_v30 = vand.u32 65535, %v4277_v63 }
 0x2c3   : > { %1508 = vmin.xlane.f32.xlu2 %v4555_v36  ;;  %vm1414_vm1 = vcmp.eq.f32.partialorder %v4242_v35, %v4557_v47 }
 0x2c4   : > { %v1325_v56 = vadd.s32 %v1324_v14, %v1322_v34  ;;  %v1415_v55 = vsel %vm1414_vm1, %v1410_v61, inf  ;;  %v4598_v14 = vld [vmem:[#allocation2 + $0xa0] sm:$0xff]  ;;  %v1442_v63 = vcvt.s32.f32 %v1440_v30 }
 0x2c5   : > { %1416 = vmin.xlane.f32.xlu0 %v1415_v55  ;;  %5573 = vst [vmem:[#allocation49_spill] sm:$0xff] %v4598_v14 }
 0x2c6   : > { %vm1738_vm14 = vcmp.eq.s32.totalorder %v3703_v2, %v1325_v56  ;;  %vm1739_vm4 = vcmp.eq.s32.totalorder %v3712_v5, %v1325_v56 }
 0x2c7   : > { %2999 = vmatmul.msk.f32.gmra.mxu2 %vm1738_vm14, %v5570_v38  ;;  %3031 = vmatmul.msk.f32.gmra.mxu3 %vm1739_vm4, %v5570_v38 }
 0x2c9   : > { %v1337_v19 = vpop.xlane.xlu0 %1336  ;;  %v4570_v35 = vpop.xlane.xlu1 %1045 }
 0x2ca   : > { %v1338_v15 = vcvt.f32.s32 %v1337_v19  ;;  %v4572_v12 = vpop.xlane.xlu2 %1428  ;;  %vm1124_vm0 = vcmp.le.f32.partialorder %v4249_v37, %v4570_v35  ;;  %vm1125_vm10 = vcmp.le.f32.partialorder %v4252_v10, %v4570_v35  ;;  %vm5525_vm1 = vcmp.lt.f32.partialorder %v4570_v35, %v4568_v50 }
 0x2cb   : > { %vm1430_vm14 = vcmp.eq.f32.partialorder %v4269_v28, %v4572_v12  ;;  %v1188_v54 = vsel %vm1124_vm0, %v3703_v2, 256  ;;  %v1189_v27 = vsel %vm1125_vm10, %v3712_v5, 256  ;;  %v2259_v37 = vsel %vm5525_vm1, %v4570_v35, %v4568_v50 }
 0x2cc   : > { %v1341_v4 = vadd.s32 %v1340_v51, %v1338_v15  ;;  %v1431_v26 = vsel %vm1430_vm14, %v1426_v17, inf  ;;  %vm1518_vm4 = vcmp.lt.s32.totalorder %v1188_v54, %v1189_v27  ;;  %2292 = vst.msk [vmem:[#allocation2 + $0x98] sm:$0xff] %vm2272_vm2, %v2259_v37 }
 0x2cd   : > { %1432 = vmin.xlane.f32.xlu0 %v1431_v26  ;;  %v4589_v10 = vsel %vm1518_vm4, %v1188_v54, %v1189_v27 }
 0x2ce   : > { %vm1740_vm7 = vcmp.eq.s32.totalorder %v3703_v2, %v1341_v4  ;;  %vm1741_vm0 = vcmp.eq.s32.totalorder %v3712_v5, %v1341_v4  ;;  %v1521_v28 = vshra.s32 %v4589_v10, 16  ;;  %v4650_v4 = vld [vmem:[#allocation2 + $0xb0] sm:$0xff] }
 0x2cf   : > { %3000 = vmatmul.msk.f32.gmra.mxu2 %vm1740_vm7, %v5570_v38  ;;  %3032 = vmatmul.msk.f32.gmra.mxu3 %vm1741_vm0, %v5570_v38 }
 0x2d0   : > { %v4600_v34 = vcvt.s32.f32 %v1521_v28 }
 0x2d1   : > { %v4602_v61 = vpop.xlane.xlu1 %1048 }
 0x2d2   : > { %5574 = vst [vmem:[#allocation50_spill] sm:$0xff] %v4602_v61  ;;  %v4604_v56 = vpop.xlane.xlu2 %1444  ;;  %vm1126_vm10 = vcmp.le.f32.partialorder %v4272_v21, %v4602_v61  ;;  %vm1127_vm14 = vcmp.le.f32.partialorder %v4275_v23, %v4602_v61  ;;  %1524 = vmin.xlane.f32.xlu2 %v4600_v34  ;;  %vm5510_vm7 = vcmp.lt.f32.partialorder %v4602_v61, %v4598_v14 }
 0x2d3   : > { %vm1446_vm4 = vcmp.eq.f32.partialorder %v4293_v11, %v4604_v56  ;;  %v1190_v55 = vsel %vm1126_vm10, %v3703_v2, 256  ;;  %v1191_v62 = vsel %vm1127_vm14, %v3712_v5, 256  ;;  %v2260_v21 = vsel %vm5510_vm7, %v4602_v61, %v4598_v14  ;;  %v4626_v11 = vld [vmem:[#allocation2 + $0xa8] sm:$0xff] }
 0x2d4   : > { %v1447_v31 = vsel %vm1446_vm4, %v1442_v63, inf  ;;  %vm1534_vm0 = vcmp.lt.s32.totalorder %v1190_v55, %v1191_v62  ;;  %2293 = vst.msk [vmem:[#allocation2 + $0xa0] sm:$0xff] %vm2272_vm2, %v2260_v21 }
 0x2d5   : > { %1448 = vmin.xlane.f32.xlu0 %v1447_v31  ;;  %v4622_v23 = vsel %vm1534_vm0, %v1190_v55, %v1191_v62  ;;  %5575 = vst [vmem:[#allocation51_spill] sm:$0xff] %v4626_v11  ;;  %v4674_v55 = vld [vmem:[#allocation2 + $0xb8] sm:$0xff] }
 0x2d6   : > { %v1537_v51 = vshra.s32 %v4622_v23, 16  ;;  %5576 = vst [vmem:[#allocation52_spill] sm:$0xff] %v4674_v55 }
 0x2d8   : > { %v4628_v19 = vcvt.s32.f32 %v1537_v51 }
 0x2d9   : > { %v4630_v17 = vpop.xlane.xlu1 %1051 }
 0x2da   : > { %vm1128_vm10 = vcmp.le.f32.partialorder %v4296_v45, %v4630_v17  ;;  %vm1129_vm14 = vcmp.le.f32.partialorder %v4299_v32, %v4630_v17  ;;  %1540 = vmin.xlane.f32.xlu2 %v4628_v19  ;;  %vm5511_vm4 = vcmp.lt.f32.partialorder %v4630_v17, %v4626_v11 }
 0x2db   : > { %v1192_v15 = vsel %vm1128_vm10, %v3703_v2, 256  ;;  %v1193_v54 = vsel %vm1129_vm14, %v3712_v5, 256  ;;  %v2261_v27 = vsel %vm5511_vm4, %v4630_v17, %v4626_v11 }
 0x2dc   : > { %vm1550_vm0 = vcmp.lt.s32.totalorder %v1192_v15, %v1193_v54  ;;  %2294 = vst.msk [vmem:[#allocation2 + $0xa8] sm:$0xff] %vm2272_vm2, %v2261_v27 }
 0x2dd   : > { %v4647_v45 = vsel %vm1550_vm0, %v1192_v15, %v1193_v54  ;;  %v4698_v54 = vld [vmem:[#allocation2 + $0xc0] sm:$0xff] }
 0x2de   : > { %v1553_v32 = vshra.s32 %v4647_v45, 16  ;;  %5578 = vst [vmem:[#allocation54_spill] sm:$0xff] %v4698_v54 }
 0x2e0   : > { %v4652_v26 = vcvt.s32.f32 %v1553_v32 }
 0x2e1   : > { %v4654_v37 = vpop.xlane.xlu1 %1054 }
 0x2e2   : > { %vm1130_vm10 = vcmp.le.f32.partialorder %v4315_v6, %v4654_v37  ;;  %vm1131_vm14 = vcmp.le.f32.partialorder %v4318_v40, %v4654_v37  ;;  %1556 = vmin.xlane.f32.xlu2 %v4652_v26  ;;  %vm5515_vm0 = vcmp.lt.f32.partialorder %v4654_v37, %v4650_v4 }
 0x2e3   : > { %v1194_v28 = vsel %vm1130_vm10, %v3703_v2, 256  ;;  %v1195_v30 = vsel %vm1131_vm14, %v3712_v5, 256  ;;  %v2262_v63 = vsel %vm5515_vm0, %v4654_v37, %v4650_v4 }
 0x2e4   : > { %vm1566_vm7 = vcmp.lt.s32.totalorder %v1194_v28, %v1195_v30  ;;  %2295 = vst.msk [vmem:[#allocation2 + $0xb0] sm:$0xff] %vm2272_vm2, %v2262_v63 }
 0x2e5   : > { %v4671_v6 = vsel %vm1566_vm7, %v1194_v28, %v1195_v30 }
 0x2e6   : > { %v1569_v40 = vshra.s32 %v4671_v6, 16 }
 0x2e8   : > { %v4676_v62 = vcvt.s32.f32 %v1569_v40 }
 0x2e9   : > { %v4678_v31 = vpop.xlane.xlu1 %1057 }
 0x2ea   : > { %5577 = vst [vmem:[#allocation53_spill] sm:$0xff] %v4678_v31  ;;  %vm1132_vm10 = vcmp.le.f32.partialorder %v4331_v53, %v4678_v31  ;;  %vm1133_vm14 = vcmp.le.f32.partialorder %v4334_v41, %v4678_v31  ;;  %1572 = vmin.xlane.f32.xlu2 %v4676_v62  ;;  %vm5512_vm7 = vcmp.lt.f32.partialorder %v4678_v31, %v4674_v55 }
 0x2eb   : > { %v1196_v21 = vsel %vm1132_vm10, %v3703_v2, 256  ;;  %v1197_v51 = vsel %vm1133_vm14, %v3712_v5, 256  ;;  %v2263_v15 = vsel %vm5512_vm7, %v4678_v31, %v4674_v55 }
 0x2ec   : > { %vm1582_vm4 = vcmp.lt.s32.totalorder %v1196_v21, %v1197_v51  ;;  %2296 = vst.msk [vmem:[#allocation2 + $0xb8] sm:$0xff] %vm2272_vm2, %v2263_v15  ;;  %v5581_v15 = vld [vmem:[#allocation42_spill] sm:$0xff] }
 0x2ed   : > { %v4695_v53 = vsel %vm1582_vm4, %v1196_v21, %v1197_v51  ;;  %v5580_v51 = vld [vmem:[#allocation41_spill] sm:$0xff] }
 0x2ee   : > { %v1585_v41 = vshra.s32 %v4695_v53, 16 }
 0x2f0   : > { %v4700_v27 = vcvt.s32.f32 %v1585_v41 }
 0x2f1   : > { %v4702_v32 = vpop.xlane.xlu1 %1060 }
 0x2f2   : > { %5579 = vst [vmem:[#allocation55_spill] sm:$0xff] %v4702_v32  ;;  %vm1134_vm10 = vcmp.le.f32.partialorder %v4347_v16, %v4702_v32  ;;  %vm1135_vm14 = vcmp.le.f32.partialorder %v4350_v44, %v4702_v32  ;;  %1588 = vmin.xlane.f32.xlu2 %v4700_v27  ;;  %vm5514_vm4 = vcmp.lt.f32.partialorder %v4702_v32, %v4698_v54 }
 0x2f3   : > { %v1198_v28 = vsel %vm1134_vm10, %v3703_v2, 256  ;;  %v1199_v30 = vsel %vm1135_vm14, %v3712_v5, 256  ;;  %v2264_v63 = vsel %vm5514_vm4, %v4702_v32, %v4698_v54  ;;  %v1355_v54 = vcvt.f32.s32 %v4425_v13 }
 0x2f4   : > { %vm1598_vm7 = vcmp.lt.s32.totalorder %v1198_v28, %v1199_v30  ;;  %2297 = vst.msk [vmem:[#allocation2 + $0xc0] sm:$0xff] %vm2272_vm2, %v2264_v63 }
 0x2f5   : > { %v4719_v16 = vsel %vm1598_vm7, %v1198_v28, %v1199_v30  ;;  %v1356_v61 = vshll.u32 %v1355_v54, 16 }
 0x2f6   : > { %v1601_v44 = vshra.s32 %v4719_v16, 16 }
 0x2f8   : > { %v4722_v40 = vcvt.s32.f32 %v1601_v44 }
 0x2f9   : > { %v4724_v21 = vpop.xlane.xlu1 %1063 }
 0x2fa   : > { %vm1136_vm10 = vcmp.le.f32.partialorder %v5580_v51, %v4724_v21  ;;  %vm1137_vm14 = vcmp.le.f32.partialorder %v5581_v15, %v4724_v21  ;;  %1604 = vmin.xlane.f32.xlu2 %v4722_v40  ;;  %v5582_v51 = vld [vmem:[#allocation43_spill] sm:$0xff] }
 0x2fb   : > { %v1200_v41 = vsel %vm1136_vm10, %v3703_v2, 256  ;;  %v1201_v63 = vsel %vm1137_vm14, %v3712_v5, 256 }
 0x2fc   : > { %vm1614_vm7 = vcmp.lt.s32.totalorder %v1200_v41, %v1201_v63 }
 0x2fd   : > { %v4733_v28 = vsel %vm1614_vm7, %v1200_v41, %v1201_v63 }
 0x2fe   : > { %v1617_v30 = vshra.s32 %v4733_v28, 16 }
 0x300   : > { %v4736_v44 = vcvt.s32.f32 %v1617_v30 }
 0x301   : > { %v4738_v55 = vpop.xlane.xlu1 %1066 }
 0x302   : > { %vm1138_vm4 = vcmp.le.f32.partialorder %v4363_v43, %v4738_v55  ;;  %vm1139_vm0 = vcmp.le.f32.partialorder %v5582_v51, %v4738_v55  ;;  %1620 = vmin.xlane.f32.xlu2 %v4736_v44  ;;  %v1456_v43 = vand.u32 65535, %v4415_v0  ;;  %v1371_v0 = vcvt.f32.s32 %v4469_v39 }
 0x303   : > { %v1202_v15 = vsel %vm1138_vm4, %v3703_v2, 256  ;;  %v1203_v31 = vsel %vm1139_vm0, %v3712_v5, 256 }
 0x304   : > { %vm1630_vm10 = vcmp.lt.s32.totalorder %v1202_v15, %v1203_v31  ;;  %v1458_v14 = vcvt.s32.f32 %v1456_v43  ;;  %v1387_v43 = vcvt.f32.s32 %v4490_v24 }
 0x305   : > { %v4747_v41 = vsel %vm1630_vm10, %v1202_v15, %v1203_v31 }
 0x306   : > { %v1633_v63 = vshra.s32 %v4747_v41, 16 }
 0x308   : > { %v4750_v30 = vcvt.s32.f32 %v1633_v63  ;;  %v1472_v63 = vand.u32 65535, %v4459_v29 }
 0x30a   : > { %1636 = vmin.xlane.f32.xlu1 %v4750_v30  ;;  %v1474_v54 = vcvt.s32.f32 %v1472_v63  ;;  %v1403_v63 = vcvt.f32.s32 %v4523_v22 }
 0x315   : > { %v1353_v51 = vpop.xlane.xlu0 %1352  ;;  %v4755_v32 = vpop.xlane.xlu2 %1460 }
 0x316   : > { %v1354_v11 = vcvt.f32.s32 %v1353_v51  ;;  %vm1462_vm0 = vcmp.eq.f32.partialorder %v4429_v60, %v4755_v32  ;;  %v1388_v51 = vshll.u32 %v1387_v43, 16  ;;  %v4800_v43 = vpop.xlane.xlu1 %1069 }
 0x317   : > { %v1463_v31 = vsel %vm1462_vm0, %v1458_v14, inf }
 0x318   : > { %v1357_v15 = vadd.s32 %v1356_v61, %v1354_v11  ;;  %1464 = vmin.xlane.f32.xlu0 %v1463_v31  ;;  %v1372_v61 = vshll.u32 %v1371_v0, 16 }
 0x31a   : > { %vm1742_vm4 = vcmp.eq.s32.totalorder %v3703_v2, %v1357_v15  ;;  %vm1743_vm14 = vcmp.eq.s32.totalorder %v3712_v5, %v1357_v15  ;;  %v1488_v15 = vand.u32 65535, %v4515_v3  ;;  %v1404_v3 = vshll.u32 %v1403_v63, 16 }
 0x31b   : > { %3001 = vmatmul.msk.f32.gmra.mxu2 %vm1742_vm4, %v5570_v38  ;;  %3033 = vmatmul.msk.f32.gmra.mxu3 %vm1743_vm14, %v5570_v38 }
 0x31c   : > { %v1490_v0 = vcvt.s32.f32 %v1488_v15 }
 0x31d   : > { %v4765_v13 = vpop.xlane.xlu2 %1476 }
 0x31e   : > { %vm1478_vm7 = vcmp.eq.f32.partialorder %v4467_v20, %v4765_v13 }
 0x31f   : > { %v1369_v60 = vpop.xlane.xlu0 %1368  ;;  %v1479_v14 = vsel %vm1478_vm7, %v1474_v54, inf  ;;  %v4782_v54 = vld [vmem:[#allocation2 + $0xc8] sm:$0xff] }
 0x320   : > { %v1370_v29 = vcvt.f32.s32 %v1369_v60  ;;  %1480 = vmin.xlane.f32.xlu0 %v1479_v14 }
 0x322   : > { %v1373_v11 = vadd.s32 %v1372_v61, %v1370_v29 }
 0x324   : > { %vm1744_vm10 = vcmp.eq.s32.totalorder %v3703_v2, %v1373_v11  ;;  %vm1745_vm0 = vcmp.eq.s32.totalorder %v3712_v5, %v1373_v11  ;;  %v1504_v11 = vand.u32 65535, %v4549_v46 }
 0x325   : > { %3002 = vmatmul.msk.f32.gmra.mxu2 %vm1744_vm10, %v5570_v38  ;;  %3034 = vmatmul.msk.f32.gmra.mxu3 %vm1745_vm0, %v5570_v38  ;;  %vm5524_vm10 = vcmp.lt.f32.partialorder %v4724_v21, %v4782_v54 }
 0x326   : > { %v2265_v61 = vsel %vm5524_vm10, %v4724_v21, %v4782_v54 }
 0x327   : > { %v1385_v39 = vpop.xlane.xlu0 %1384  ;;  %2298 = vst.msk [vmem:[#allocation2 + $0xc8] sm:$0xff] %vm2272_vm2, %v2265_v61 }
 0x328   : > { %v1386_v31 = vcvt.f32.s32 %v1385_v39 }
 0x32a   : > { %v1389_v20 = vadd.s32 %v1388_v51, %v1386_v31  ;;  %v1506_v51 = vcvt.s32.f32 %v1504_v11  ;;  %v4804_v31 = vld [vmem:[#allocation2 + $0xd0] sm:$0xff] }
 0x32c   : > { %vm1746_vm4 = vcmp.eq.s32.totalorder %v3703_v2, %v1389_v20  ;;  %vm1747_vm14 = vcmp.eq.s32.totalorder %v3712_v5, %v1389_v20 }
 0x32d   : > { %3003 = vmatmul.msk.f32.gmra.mxu2 %vm1746_vm4, %v5570_v38  ;;  %3035 = vmatmul.msk.f32.gmra.mxu3 %vm1747_vm14, %v5570_v38 }
 0x32e   : > { %v4780_v24 = vpop.xlane.xlu2 %1492 }
 0x32f   : > { %v1401_v60 = vpop.xlane.xlu0 %1400  ;;  %vm1494_vm7 = vcmp.eq.f32.partialorder %v4525_v52, %v4780_v24  ;;  %v1419_v52 = vcvt.f32.s32 %v4557_v47 }
 0x330   : > { %v1402_v22 = vcvt.f32.s32 %v1401_v60  ;;  %v1495_v14 = vsel %vm1494_vm7, %v1490_v0, inf  ;;  %vm5522_vm7 = vcmp.lt.f32.partialorder %v4738_v55, %v4804_v31  ;;  %v1435_v60 = vcvt.f32.s32 %v4572_v12 }
 0x331   : > { %1496 = vmin.xlane.f32.xlu0 %v1495_v14  ;;  %v2266_v47 = vsel %vm5522_vm7, %v4738_v55, %v4804_v31  ;;  %v1420_v15 = vshll.u32 %v1419_v52, 16  ;;  %v1451_v52 = vcvt.f32.s32 %v4604_v56  ;;  %vm1140_vm7 = vcmp.le.f32.partialorder %v4372_v7, %v4800_v43 }
 0x332   : > { %v1405_v29 = vadd.s32 %v1404_v3, %v1402_v22  ;;  %2299 = vst.msk [vmem:[#allocation2 + $0xd0] sm:$0xff] %vm2272_vm2, %v2266_v47  ;;  %v4825_v3 = vpop.xlane.xlu1 %1072  ;;  %v1436_v14 = vshll.u32 %v1435_v60, 16 }
 0x334   : > { %vm1748_vm0 = vcmp.eq.s32.totalorder %v3703_v2, %v1405_v29  ;;  %vm1749_vm4 = vcmp.eq.s32.totalorder %v3712_v5, %v1405_v29  ;;  %v1520_v29 = vand.u32 65535, %v4589_v10  ;;  %v4847_v10 = vld [vmem:[#allocation2 + $0xe0] sm:$0xff] }
 0x335   : > { %3004 = vmatmul.msk.f32.gmra.mxu2 %vm1748_vm0, %v5570_v38  ;;  %3036 = vmatmul.msk.f32.gmra.mxu3 %vm1749_vm4, %v5570_v38  ;;  %vm5526_vm1 = vcmp.lt.f32.partialorder %v4825_v3, %v4847_v10 }
 0x336   : > { %v4802_v39 = vpop.xlane.xlu2 %1508  ;;  %v2268_v7 = vsel %vm5526_vm1, %v4825_v3, %v4847_v10  ;;  %vm1142_vm1 = vcmp.le.f32.partialorder %v4381_v48, %v4825_v3  ;;  %v4882_v48 = vpop.f32.mrf.mxu3 }
 0x337   : > { %vm1510_vm14 = vcmp.eq.f32.partialorder %v4555_v36, %v4802_v39  ;;  %v4821_v36 = vld [vmem:[#allocation2 + $0xd8] sm:$0xff]  ;;  %2301 = vst.msk [vmem:[#allocation2 + $0xe0] sm:$0xff] %vm2272_vm2, %v2268_v7 }
 0x338   : > { %v1417_v46 = vpop.xlane.xlu0 %1416  ;;  %v1511_v20 = vsel %vm1510_vm14, %v1506_v51, inf  ;;  %vm5523_vm14 = vcmp.lt.f32.partialorder %v4800_v43, %v4821_v36 }
 0x339   : > { %v1418_v63 = vcvt.f32.s32 %v1417_v46  ;;  %1512 = vmin.xlane.f32.xlu0 %v1511_v20  ;;  %v2267_v12 = vsel %vm5523_vm14, %v4800_v43, %v4821_v36  ;;  %v1522_v46 = vcvt.s32.f32 %v1520_v29  ;;  %vm1141_vm14 = vcmp.le.f32.partialorder %v4375_v18, %v4800_v43 }
 0x33a   : > { %2300 = vst.msk [vmem:[#allocation2 + $0xd8] sm:$0xff] %vm2272_vm2, %v2267_v12  ;;  %v1452_v20 = vshll.u32 %v1451_v52, 16 }
 0x33b   : > { %v1421_v0 = vadd.s32 %v1420_v15, %v1418_v63  ;;  %v1536_v15 = vand.u32 65535, %v4622_v23  ;;  %v1205_v63 = vsel %vm1141_vm14, %v3712_v5, 256  ;;  %v5583_v23 = vld [vmem:[#allocation44_spill] sm:$0xff] }
 0x33d   : > { %vm1750_vm0 = vcmp.eq.s32.totalorder %v3703_v2, %v1421_v0  ;;  %vm1751_vm4 = vcmp.eq.s32.totalorder %v3712_v5, %v1421_v0  ;;  %v4860_v0 = vpop.xlane.xlu1 %1075  ;;  %v1538_v12 = vcvt.s32.f32 %v1536_v15  ;;  %v4906_v15 = vld [vmem:[#allocation2 + $0xf0] sm:$0xff] }
 0x33e   : > { %3005 = vmatmul.msk.f32.gmra.mxu2 %vm1750_vm0, %v5570_v38  ;;  %3037 = vmatmul.msk.f32.gmra.mxu3 %vm1751_vm4, %v5570_v38 }
 0x340   : > { %v1433_v22 = vpop.xlane.xlu0 %1432 }
 0x341   : > { %v1434_v61 = vcvt.f32.s32 %v1433_v22 }
 0x343   : > { %v1437_v11 = vadd.s32 %v1436_v14, %v1434_v61  ;;  %v4874_v14 = vld [vmem:[#allocation2 + $0xe8] sm:$0xff] }
 0x344   : > { %vm2237_vm6 = vcmp.lt.f32.partialorder %v4860_v0, %v4874_v14 }
 0x345   : > { %vm1752_vm0 = vcmp.eq.s32.totalorder %v3703_v2, %v1437_v11  ;;  %vm1753_vm4 = vcmp.eq.s32.totalorder %v3712_v5, %v1437_v11  ;;  %v4837_v51 = vpop.xlane.xlu2 %1524  ;;  %v4880_v11 = vpop.f32.mrf.mxu2  ;;  %v2269_v52 = vsel %vm2237_vm6, %v4860_v0, %v4874_v14 }
 0x346   : > { %3006 = vmatmul.msk.f32.gmra.mxu2 %vm1752_vm0, %v5570_v38  ;;  %3038 = vmatmul.msk.f32.gmra.mxu3 %vm1753_vm4, %v5570_v38  ;;  %vm1526_vm10 = vcmp.eq.f32.partialorder %v4600_v34, %v4837_v51  ;;  %v1204_v34 = vsel %vm1140_vm7, %v3703_v2, 256  ;;  %vm1143_vm7 = vcmp.le.f32.partialorder %v5583_v23, %v4825_v3  ;;  %2302 = vst.msk [vmem:[#allocation2 + $0xe8] sm:$0xff] %vm2272_vm2, %v2269_v52  ;;  %v4924_v23 = vpop.f32.mrf.mxu3 }
 0x347   : > { %v1527_v56 = vsel %vm1526_vm10, %v1522_v46, inf  ;;  %vm1646_vm10 = vcmp.lt.s32.totalorder %v1204_v34, %v1205_v63  ;;  %v1206_v46 = vsel %vm1142_vm1, %v3703_v2, 256  ;;  %5585 = vst [vmem:[#allocation42_spill] sm:$0xff] %v4924_v23 }
 0x348   : > { %v1449_v47 = vpop.xlane.xlu0 %1448  ;;  %1528 = vmin.xlane.f32.xlu0 %v1527_v56  ;;  %v4876_v29 = vsel %vm1646_vm10, %v1204_v34, %v1205_v63  ;;  %v1207_v56 = vsel %vm1143_vm7, %v3712_v5, 256 }
 0x349   : > { %v1450_v18 = vcvt.f32.s32 %v1449_v47  ;;  %v4894_v47 = vpop.xlane.xlu1 %1078  ;;  %vm1662_vm10 = vcmp.lt.s32.totalorder %v1206_v46, %v1207_v56 }
 0x34a   : > { %v4908_v63 = vsel %vm1662_vm10, %v1206_v46, %v1207_v56  ;;  %vm2238_vm7 = vcmp.lt.f32.partialorder %v4894_v47, %v4906_v15  ;;  %vm1146_vm10 = vcmp.le.f32.partialorder %v4454_v9, %v4894_v47  ;;  %v4939_v56 = vld [vmem:[#allocation2 + $0xf8] sm:$0xff] }
 0x34b   : > { %v1453_v60 = vadd.s32 %v1452_v20, %v1450_v18  ;;  %v1649_v20 = vshra.s32 %v4876_v29, 16 }
 0x34d   : > { %vm1754_vm0 = vcmp.eq.s32.totalorder %v3703_v2, %v1453_v60  ;;  %vm1755_vm4 = vcmp.eq.s32.totalorder %v3712_v5, %v1453_v60  ;;  %v4864_v22 = vpop.xlane.xlu2 %1540 }
 0x34e   : > { %3007 = vmatmul.msk.f32.gmra.mxu2 %vm1754_vm0, %v5570_v38  ;;  %3039 = vmatmul.msk.f32.gmra.mxu3 %vm1755_vm4, %v5570_v38  ;;  %vm1542_vm14 = vcmp.eq.f32.partialorder %v4628_v19, %v4864_v22  ;;  %v1552_v19 = vand.u32 65535, %v4647_v45  ;;  %vm1144_vm0 = vcmp.le.f32.partialorder %v4420_v8, %v4860_v0  ;;  %vm1145_vm4 = vcmp.le.f32.partialorder %v4413_v57, %v4860_v0 }
 0x34f   : > { %v1543_v61 = vsel %vm1542_vm14, %v1538_v12, inf  ;;  %v4904_v45 = vcvt.s32.f32 %v1649_v20  ;;  %v2270_v8 = vsel %vm2238_vm7, %v4894_v47, %v4906_v15  ;;  %v1568_v57 = vand.u32 65535, %v4671_v6  ;;  %v4922_v12 = vpop.f32.mrf.mxu2 }
 0x350   : > { %1544 = vmin.xlane.f32.xlu0 %v1543_v61  ;;  %v1554_v18 = vcvt.s32.f32 %v1552_v19  ;;  %v1209_v60 = vsel %vm1145_vm4, %v3712_v5, 256  ;;  %2303 = vst.msk [vmem:[#allocation2 + $0xf0] sm:$0xff] %vm2272_vm2, %v2270_v8  ;;  %v1665_v61 = vshra.s32 %v4908_v63, 16 }
 0x351   : > { %5584 = vst [vmem:[#allocation41_spill] sm:$0xff] %v4922_v12  ;;  %v1570_v19 = vcvt.s32.f32 %v1568_v57  ;;  %v4933_v6 = vpop.xlane.xlu1 %1081 }
 0x352   : > { %v4935_v46 = vcvt.s32.f32 %v1665_v61 }
 0x355   : > { %v4896_v7 = vpop.xlane.xlu2 %1556 }
 0x356   : > { %vm1558_vm1 = vcmp.eq.f32.partialorder %v4652_v26, %v4896_v7  ;;  %v1208_v26 = vsel %vm1144_vm0, %v3703_v2, 256  ;;  %vm1147_vm0 = vcmp.le.f32.partialorder %v4457_v25, %v4894_v47  ;;  %v1584_v25 = vand.u32 65535, %v4695_v53 }
 0x357   : > { %v1559_v34 = vsel %vm1558_vm1, %v1554_v18, inf  ;;  %vm1678_vm14 = vcmp.lt.s32.totalorder %v1208_v26, %v1209_v60  ;;  %vm2239_vm1 = vcmp.lt.f32.partialorder %v4933_v6, %v4939_v56  ;;  %v4956_v57 = vpop.f32.mrf.mxu2 }
 0x358   : > { %1560 = vmin.xlane.f32.xlu2 %v1559_v34  ;;  %1652 = vmin.xlane.f32.xlu0 %v4904_v45  ;;  %v4941_v18 = vsel %vm1678_vm14, %v1208_v26, %v1209_v60  ;;  %v2271_v9 = vsel %vm2239_vm1, %v4933_v6, %v4939_v56  ;;  %v1211_v34 = vsel %vm1147_vm0, %v3712_v5, 256  ;;  %v4958_v26 = vpop.f32.mrf.mxu3  ;;  %v1586_v61 = vcvt.s32.f32 %v1584_v25 }
 0x359   : > { %2304 = vst.msk [vmem:[#allocation2 + $0xf8] sm:$0xff] %vm2272_vm2, %v2271_v9  ;;  %v1681_v8 = vshra.s32 %v4941_v18, 16  ;;  %v1600_v9 = vand.u32 65535, %v4719_v16 }
 0x35a   : > { %5586 = vst [vmem:[#allocation43_spill] sm:$0xff] %v4958_v26 }
 0x35b   : > { %v4968_v53 = vcvt.s32.f32 %v1681_v8 }
 0x35d   : > { %v4927_v52 = vpop.xlane.xlu2 %1572 }
 0x35e   : > { %vm1574_vm4 = vcmp.eq.f32.partialorder %v4676_v62, %v4927_v52  ;;  %v1210_v62 = vsel %vm1146_vm10, %v3703_v2, 256  ;;  %vm1149_vm10 = vcmp.le.f32.partialorder %v4482_v59, %v4933_v6 }
 0x35f   : > { %v1575_v20 = vsel %vm1574_vm4, %v1570_v19, inf  ;;  %vm1694_vm14 = vcmp.lt.s32.totalorder %v1210_v62, %v1211_v34  ;;  %vm1148_vm4 = vcmp.le.f32.partialorder %v4479_v42, %v4933_v6  ;;  %v1213_v42 = vsel %vm1149_vm10, %v3712_v5, 256  ;;  %v4979_v8 = vpop.f32.mrf.mxu2 }
 0x360   : > { %1668 = vmin.xlane.f32.xlu2 %v4935_v46  ;;  %1576 = vmin.xlane.f32.xlu1 %v1575_v20  ;;  %v4970_v20 = vsel %vm1694_vm14, %v1210_v62, %v1211_v34  ;;  %v1212_v25 = vsel %vm1148_vm4, %v3703_v2, 256  ;;  %5587 = vst [vmem:[#allocation44_spill] sm:$0xff] %v4979_v8 }
 0x361   : > { %v1697_v23 = vshra.s32 %v4970_v20, 16  ;;  %vm1710_vm2 = vcmp.lt.s32.totalorder %v1212_v25, %v1213_v42 }
 0x362   : > { %v4987_v34 = vsel %vm1710_vm2, %v1212_v25, %v1213_v42 }
 0x363   : > { %v4985_v62 = vcvt.s32.f32 %v1697_v23  ;;  %v1713_v12 = vshra.s32 %v4987_v34, 16 }
 0x365   : > { %v4960_v60 = vpop.xlane.xlu2 %1588 }
 0x366   : > { %vm1590_vm0 = vcmp.eq.f32.partialorder %v4700_v27, %v4960_v60  ;;  %v1602_v27 = vcvt.s32.f32 %v1600_v9 }
 0x367   : > { %v1591_v19 = vsel %vm1590_vm0, %v1586_v61, inf  ;;  %v4981_v61 = vpop.f32.mrf.mxu3  ;;  %v4998_v23 = vpop.f32.mrf.mxu2 }
 0x368   : > { %1592 = vmin.xlane.f32.xlu0 %v1591_v19  ;;  %1684 = vmin.xlane.f32.xlu1 %v4968_v53  ;;  %5588 = vst [vmem:[#allocation56_spill] sm:$0xff] %v4981_v61  ;;  %v1616_v19 = vand.u32 65535, %v4733_v28  ;;  %v4996_v61 = vcvt.s32.f32 %v1713_v12  ;;  %v1632_v28 = vand.u32 65535, %v4747_v41 }
 0x369   : > { %5589 = vst [vmem:[#allocation57_spill] sm:$0xff] %v4998_v23 }
 0x36a   : > { %v1618_v8 = vcvt.s32.f32 %v1616_v19 }
 0x36d   : > { %v4977_v59 = vpop.xlane.xlu2 %1604 }
 0x36e   : > { %vm1606_vm14 = vcmp.eq.f32.partialorder %v4722_v40, %v4977_v59 }
 0x36f   : > { %v1607_v16 = vsel %vm1606_vm14, %v1602_v27, inf  ;;  %v5000_v25 = vpop.f32.mrf.mxu3  ;;  %v1634_v27 = vcvt.s32.f32 %v1632_v28  ;;  %v1483_v28 = vcvt.f32.s32 %v4765_v13 }
 0x370   : > { %1608 = vmin.xlane.f32.xlu2 %v1607_v16  ;;  %1700 = vmin.xlane.f32.xlu0 %v4985_v62  ;;  %5590 = vst [vmem:[#allocation58_spill] sm:$0xff] %v5000_v25 }
 0x375   : > { %v4992_v9 = vpop.xlane.xlu2 %1620 }
 0x376   : > { %vm1622_vm4 = vcmp.eq.f32.partialorder %v4736_v44, %v4992_v9  ;;  %v5008_v44 = vpop.f32.mrf.mxu2 }
 0x377   : > { %v1623_v40 = vsel %vm1622_vm4, %v1618_v8, inf  ;;  %5591 = vst [vmem:[#allocation59_spill] sm:$0xff] %v5008_v44  ;;  %v5010_v12 = vpop.f32.mrf.mxu3  ;;  %v1467_v8 = vcvt.f32.s32 %v4755_v32  ;;  %v1484_v32 = vshll.u32 %v1483_v28, 16 }
 0x378   : > { %1624 = vmin.xlane.f32.xlu1 %v1623_v40  ;;  %1716 = vmin.xlane.f32.xlu2 %v4996_v61  ;;  %5592 = vst [vmem:[#allocation60_spill] sm:$0xff] %v5010_v12 }
 0x379   : > { %v1468_v40 = vshll.u32 %v1467_v8, 16 }
 0x37d   : > { %v5004_v42 = vpop.xlane.xlu1 %1636 }
 0x37e   : > { %vm1638_vm10 = vcmp.eq.f32.partialorder %v4750_v30, %v5004_v42  ;;  %v5013_v25 = vpop.f32.mrf.mxu2 }
 0x37f   : > { %v1639_v16 = vsel %vm1638_vm10, %v1634_v27, inf  ;;  %5593 = vst [vmem:[#allocation61_spill] sm:$0xff] %v5013_v25  ;;  %v5015_v23 = vpop.f32.mrf.mxu3 }
 0x380   : > { %1640 = vmin.xlane.f32.xlu0 %v1639_v16  ;;  %5594 = vst [vmem:[#allocation62_spill] sm:$0xff] %v5015_v23 }
 0x386   : > { %v5022_v16 = vpop.f32.mrf.mxu2 }
 0x387   : > { %v5024_v8 = vpop.f32.mrf.mxu3 }
 0x38b   : > { %v1465_v19 = vpop.xlane.xlu0 %1464 }
 0x38c   : > { %v1466_v41 = vcvt.f32.s32 %v1465_v19 }
 0x38e   : > { %v1469_v26 = vadd.s32 %v1468_v40, %v1466_v41  ;;  %v1499_v40 = vcvt.f32.s32 %v4780_v24 }
 0x390   : > { %vm1756_vm0 = vcmp.eq.s32.totalorder %v3703_v2, %v1469_v26  ;;  %vm1757_vm2 = vcmp.eq.s32.totalorder %v3712_v5, %v1469_v26  ;;  %v1500_v28 = vshll.u32 %v1499_v40, 16 }
 0x391   : > { %3008 = vmatmul.msk.f32.gmra.mxu2 %vm1756_vm0, %v5570_v38  ;;  %3040 = vmatmul.msk.f32.gmra.mxu3 %vm1757_vm2, %v5570_v38 }
 0x393   : > { %v1481_v30 = vpop.xlane.xlu0 %1480 }
 0x394   : > { %v1482_v27 = vcvt.f32.s32 %v1481_v30 }
 0x396   : > { %v1485_v23 = vadd.s32 %v1484_v32, %v1482_v27  ;;  %v1515_v27 = vcvt.f32.s32 %v4802_v39  ;;  %v1531_v39 = vcvt.f32.s32 %v4837_v51 }
 0x398   : > { %vm1758_vm14 = vcmp.eq.s32.totalorder %v3703_v2, %v1485_v23  ;;  %vm1759_vm4 = vcmp.eq.s32.totalorder %v3712_v5, %v1485_v23  ;;  %v1516_v24 = vshll.u32 %v1515_v27, 16  ;;  %v1532_v27 = vshll.u32 %v1531_v39, 16 }
 0x399   : > { %3009 = vmatmul.msk.f32.gmra.mxu2 %vm1758_vm14, %v5570_v38  ;;  %3041 = vmatmul.msk.f32.gmra.mxu3 %vm1759_vm4, %v5570_v38 }
 0x39e   : > { %v1991_v13 = vpop.f32.mrf.mxu2  ;;  %v2104_v26 = vpop.f32.mrf.mxu3 }
 0x39f   : > { %v5030_v19 = vadd.f32 %v2104_v26, %v1991_v13 }
 0x3a4   : > { %v1497_v41 = vpop.xlane.xlu0 %1496 }
 0x3a5   : > { %v1498_v30 = vcvt.f32.s32 %v1497_v41 }
 0x3a7   : > { %v1501_v25 = vadd.s32 %v1500_v28, %v1498_v30 }
 0x3a8   : > { %v1994_v12 = vpop.f32.mrf.mxu2  ;;  %v2107_v32 = vpop.f32.mrf.mxu3 }
 0x3a9   : > { %v5034_v44 = vadd.f32 %v2107_v32, %v1994_v12  ;;  %vm1760_vm10 = vcmp.eq.s32.totalorder %v3703_v2, %v1501_v25  ;;  %vm1761_vm0 = vcmp.eq.s32.totalorder %v3712_v5, %v1501_v25 }
 0x3aa   : > { %3010 = vmatmul.msk.f32.gmra.mxu2 %vm1760_vm10, %v5570_v38  ;;  %3042 = vmatmul.msk.f32.gmra.mxu3 %vm1761_vm0, %v5570_v38 }
 0x3ac   : > { %v1513_v23 = vpop.xlane.xlu0 %1512 }
 0x3ad   : > { %v1514_v13 = vcvt.f32.s32 %v1513_v23 }
 0x3af   : > { %v1517_v26 = vadd.s32 %v1516_v24, %v1514_v13  ;;  %v1547_v13 = vcvt.f32.s32 %v4864_v22  ;;  %v1563_v22 = vcvt.f32.s32 %v4896_v7 }
 0x3b0   : > { %v1997_v40 = vpop.f32.mrf.mxu2  ;;  %v2110_v41 = vpop.f32.mrf.mxu3 }
 0x3b1   : > { %v5040_v28 = vadd.f32 %v2110_v41, %v1997_v40  ;;  %vm1762_vm2 = vcmp.eq.s32.totalorder %v3703_v2, %v1517_v26  ;;  %vm1763_vm14 = vcmp.eq.s32.totalorder %v3712_v5, %v1517_v26 }
 0x3b2   : > { %3011 = vmatmul.msk.f32.gmra.mxu2 %vm1762_vm2, %v5570_v38  ;;  %3043 = vmatmul.msk.f32.gmra.mxu3 %vm1763_vm14, %v5570_v38 }
 0x3b8   : > { %v2000_v25 = vpop.f32.mrf.mxu2  ;;  %v2113_v12 = vpop.f32.mrf.mxu3 }
 0x3b9   : > { %v5047_v30 = vadd.f32 %v2113_v12, %v2000_v25  ;;  %v1548_v25 = vshll.u32 %v1547_v13, 16 }
 0x3bb   : > { %v1529_v32 = vpop.xlane.xlu0 %1528 }
 0x3bc   : > { %v1530_v23 = vcvt.f32.s32 %v1529_v32  ;;  %v1648_v32 = vand.u32 65535, %v4876_v29 }
 0x3be   : > { %v1533_v24 = vadd.s32 %v1532_v27, %v1530_v23 }
 0x3c0   : > { %vm1764_vm4 = vcmp.eq.s32.totalorder %v3703_v2, %v1533_v24  ;;  %vm1765_vm10 = vcmp.eq.s32.totalorder %v3712_v5, %v1533_v24 }
 0x3c1   : > { %v2003_v26 = vpop.f32.mrf.mxu2  ;;  %v2116_v40 = vpop.f32.mrf.mxu3  ;;  %3012 = vmatmul.msk.f32.gmra.mxu2 %vm1764_vm4, %v5570_v38  ;;  %3044 = vmatmul.msk.f32.gmra.mxu3 %vm1765_vm10, %v5570_v38 }
 0x3c2   : > { %v5054_v51 = vadd.f32 %v2116_v40, %v2003_v26  ;;  %v1650_v40 = vcvt.s32.f32 %v1648_v32 }
 0x3c3   : > { %v1545_v41 = vpop.xlane.xlu0 %1544 }
 0x3c4   : > { %v1546_v12 = vcvt.f32.s32 %v1545_v41  ;;  %v1564_v41 = vshll.u32 %v1563_v22, 16 }
 0x3c6   : > { %v1549_v39 = vadd.s32 %v1548_v25, %v1546_v12  ;;  %v1664_v12 = vand.u32 65535, %v4908_v63 }
 0x3c8   : > { %vm1766_vm0 = vcmp.eq.s32.totalorder %v3703_v2, %v1549_v39  ;;  %vm1767_vm2 = vcmp.eq.s32.totalorder %v3712_v5, %v1549_v39  ;;  %v1579_v39 = vcvt.f32.s32 %v4927_v52  ;;  %v1680_v52 = vand.u32 65535, %v4941_v18 }
 0x3c9   : > { %v2006_v27 = vpop.f32.mrf.mxu2  ;;  %v2119_v23 = vpop.f32.mrf.mxu3  ;;  %3013 = vmatmul.msk.f32.gmra.mxu2 %vm1766_vm0, %v5570_v38  ;;  %3045 = vmatmul.msk.f32.gmra.mxu3 %vm1767_vm2, %v5570_v38 }
 0x3ca   : > { %v5062_v24 = vadd.f32 %v2119_v23, %v2006_v27  ;;  %v1666_v27 = vcvt.s32.f32 %v1664_v12 }
 0x3cb   : > { %v1561_v26 = vpop.xlane.xlu2 %1560  ;;  %v5064_v13 = vpop.xlane.xlu0 %1652 }
 0x3cc   : > { %v1562_v29 = vcvt.f32.s32 %v1561_v26  ;;  %vm1654_vm14 = vcmp.eq.f32.partialorder %v4904_v45, %v5064_v13  ;;  %v1580_v45 = vshll.u32 %v1579_v39, 16  ;;  %v1611_v39 = vcvt.f32.s32 %v4977_v59 }
 0x3cd   : > { %v1655_v7 = vsel %vm1654_vm14, %v1650_v40, inf  ;;  %v1595_v40 = vcvt.f32.s32 %v4960_v60  ;;  %v1696_v60 = vand.u32 65535, %v4970_v20  ;;  %v1712_v59 = vand.u32 65535, %v4987_v34 }
 0x3ce   : > { %v1565_v25 = vadd.s32 %v1564_v41, %v1562_v29  ;;  %1656 = vmin.xlane.f32.xlu1 %v1655_v7  ;;  %v1682_v7 = vcvt.s32.f32 %v1680_v52 }
 0x3d0   : > { %vm1768_vm4 = vcmp.eq.s32.totalorder %v3703_v2, %v1565_v25  ;;  %vm1769_vm10 = vcmp.eq.s32.totalorder %v3712_v5, %v1565_v25 }
 0x3d1   : > { %3014 = vmatmul.msk.f32.gmra.mxu2 %vm1768_vm4, %v5570_v38  ;;  %3046 = vmatmul.msk.f32.gmra.mxu3 %vm1769_vm10, %v5570_v38 }
 0x3d3   : > { %v5074_v32 = vpop.xlane.xlu2 %1668  ;;  %v1577_v22 = vpop.xlane.xlu1 %1576 }
 0x3d4   : > { %v1578_v23 = vcvt.f32.s32 %v1577_v22  ;;  %vm1670_vm0 = vcmp.eq.f32.partialorder %v4935_v46, %v5074_v32  ;;  %v1596_v46 = vshll.u32 %v1595_v40, 16 }
 0x3d5   : > { %v1671_v63 = vsel %vm1670_vm0, %v1666_v27, inf }
 0x3d6   : > { %v1581_v26 = vadd.s32 %v1580_v45, %v1578_v23  ;;  %1672 = vmin.xlane.f32.xlu2 %v1671_v63  ;;  %v1698_v45 = vcvt.s32.f32 %v1696_v60 }
 0x3d8   : > { %vm1770_vm2 = vcmp.eq.s32.totalorder %v3703_v2, %v1581_v26  ;;  %vm1771_vm14 = vcmp.eq.s32.totalorder %v3712_v5, %v1581_v26  ;;  %v1627_v26 = vcvt.f32.s32 %v4992_v9  ;;  %v1643_v9 = vcvt.f32.s32 %v5004_v42  ;;  %v5626_v42 = vld [vmem:[#allocation30_spill] sm:$0xff] }
 0x3d9   : > { %3015 = vmatmul.msk.f32.gmra.mxu2 %vm1770_vm2, %v5570_v38  ;;  %3047 = vmatmul.msk.f32.gmra.mxu3 %vm1771_vm14, %v5570_v38 }
 0x3db   : > { %v1593_v41 = vpop.xlane.xlu0 %1592  ;;  %v5084_v29 = vpop.xlane.xlu1 %1684 }
 0x3dc   : > { %v1594_v25 = vcvt.f32.s32 %v1593_v41  ;;  %vm1686_vm4 = vcmp.eq.f32.partialorder %v4968_v53, %v5084_v29  ;;  %v1612_v53 = vshll.u32 %v1611_v39, 16  ;;  %v1714_v41 = vcvt.s32.f32 %v1712_v59 }
 0x3dd   : > { %v1687_v18 = vsel %vm1686_vm4, %v1682_v7, inf  ;;  %v1644_v39 = vshll.u32 %v1643_v9, 16 }
 0x3de   : > { %v1597_v12 = vadd.s32 %v1596_v46, %v1594_v25  ;;  %1688 = vmin.xlane.f32.xlu0 %v1687_v18  ;;  %v5595_v25 = vmov 0  }
 0x3df   : > { %v2337_v60 = vsel %vm2208_vm5, 1, %v5595_v25  ;;  %v2338_v59 = vsel %vm2209_vm9, 1, %v5595_v25  ;;  %v2341_v18 = vsel %vm2212_vm8, 1, %v5595_v25  ;;  %vm5624_vm8 = vcmp.lt.f32.partialorder %v4570_v35, %v4568_v50  ;;  %v5632_v50 = vld [vmem:[#allocation33_spill] sm:$0xff]  ;;  %v5633_v35 = vld [vmem:[#allocation38_spill] sm:$0xff] }
 0x3e0   : > { %vm1772_vm10 = vcmp.eq.s32.totalorder %v3703_v2, %v1597_v12  ;;  %vm1773_vm0 = vcmp.eq.s32.totalorder %v3712_v5, %v1597_v12  ;;  %v5622_v12 = vld [vmem:[#allocation28_spill] sm:$0xff] }
 0x3e1   : > { %3016 = vmatmul.msk.f32.gmra.mxu2 %vm1772_vm10, %v5570_v38  ;;  %3048 = vmatmul.msk.f32.gmra.mxu3 %vm1773_vm0, %v5570_v38 }
 0x3e3   : > { %v1609_v22 = vpop.xlane.xlu2 %1608  ;;  %v5094_v27 = vpop.xlane.xlu0 %1700 }
 0x3e4   : > { %v1610_v23 = vcvt.f32.s32 %v1609_v22  ;;  %vm1702_vm2 = vcmp.eq.f32.partialorder %v4985_v62, %v5094_v27  ;;  %v1628_v62 = vshll.u32 %v1627_v26, 16  ;;  %v5616_v26 = vld [vmem:[#allocation47_spill] sm:$0xff]  ;;  %v1707_v47 = vcvt.f32.s32 %v5094_v27 }
 0x3e5   : > { %v1703_v20 = vsel %vm1702_vm2, %v1698_v45, inf }
 0x3e6   : > { %v1613_v63 = vadd.s32 %v1612_v53, %v1610_v23  ;;  %1704 = vmin.xlane.f32.xlu1 %v1703_v20  ;;  %v2344_v23 = vsel %vm2215_vm15, 1, %v5595_v25  ;;  %v2340_v53 = vsel %vm2211_vm3, 1, %v5595_v25  ;;  %v5613_v20 = vld [vmem:[#allocation23_spill] sm:$0xff] }
 0x3e8   : > { %vm1774_vm14 = vcmp.eq.s32.totalorder %v3703_v2, %v1613_v63  ;;  %vm1775_vm4 = vcmp.eq.s32.totalorder %v3712_v5, %v1613_v63 }
 0x3e9   : > { %3017 = vmatmul.msk.f32.gmra.mxu2 %vm1774_vm14, %v5570_v38  ;;  %3049 = vmatmul.msk.f32.gmra.mxu3 %vm1775_vm4, %v5570_v38 }
 0x3eb   : > { %v5104_v52 = vpop.xlane.xlu2 %1716  ;;  %v1625_v40 = vpop.xlane.xlu1 %1624 }
 0x3ec   : > { %v1626_v7 = vcvt.f32.s32 %v1625_v40  ;;  %vm1718_vm10 = vcmp.eq.f32.partialorder %v4996_v61, %v5104_v52  ;;  %v1723_v14 = vcvt.f32.s32 %v5104_v52  ;;  %v2081_v52 = vadd.f32 %v4882_v48, %v4880_v11 }
 0x3ed   : > { %v1719_v34 = vsel %vm1718_vm10, %v1714_v41, inf  ;;  %v2347_v41 = vsel %vm2218_vm12, 1, %v5595_v25  ;;  %vm5634_vm10 = vcmp.lt.f32.partialorder %v5632_v50, %v5633_v35 }
 0x3ee   : > { %v1629_v46 = vadd.s32 %v1628_v62, %v1626_v7  ;;  %1720 = vmin.xlane.f32.xlu2 %v1719_v34  ;;  %v2339_v34 = vsel %vm2210_vm13, 1, %v5595_v25 }
 0x3f0   : > { %vm1776_vm0 = vcmp.eq.s32.totalorder %v3703_v2, %v1629_v46  ;;  %vm1777_vm2 = vcmp.eq.s32.totalorder %v3712_v5, %v1629_v46  ;;  %v5619_v46 = vld [vmem:[#allocation21_spill] sm:$0xff] }
 0x3f1   : > { %3018 = vmatmul.msk.f32.gmra.mxu2 %vm1776_vm0, %v5570_v38  ;;  %3050 = vmatmul.msk.f32.gmra.mxu3 %vm1777_vm2, %v5570_v38  ;;  %vm5638_vm2 = vcmp.lt.f32.partialorder %v4724_v21, %v4782_v54  ;;  %v5645_v54 = vld [vmem:[#allocation51_spill] sm:$0xff] }
 0x3f2   : > { %2370 = vperm.xlu0 %3236, %v2337_v60  }
 0x3f3   : > { %v1641_v61 = vpop.xlane.xlu0 %1640 }
 0x3f4   : > { %v1642_v22 = vcvt.f32.s32 %v1641_v61  ;;  %v2350_v61 = vsel %vm2221_vm11, 1, %v5595_v25  ;;  %vm5631_vm11 = vcmp.lt.f32.partialorder %v4654_v37, %v4650_v4  ;;  %v5639_v4 = vld [vmem:[#allocation39_spill] sm:$0xff]  ;;  %v5640_v37 = vld [vmem:[#allocation40_spill] sm:$0xff] }
 0x3f6   : > { %v1645_v45 = vadd.s32 %v1644_v39, %v1642_v22  ;;  %v5145_v39 = vpop.f32.mrf.mxu2  ;;  %v5147_v22 = vpop.f32.mrf.mxu3 }
 0x3f8   : > { %vm1778_vm14 = vcmp.eq.s32.totalorder %v3703_v2, %v1645_v45  ;;  %vm1779_vm4 = vcmp.eq.s32.totalorder %v3712_v5, %v1645_v45  ;;  %v5625_v45 = vld [vmem:[#allocation29_spill] sm:$0xff] }
 0x3f9   : > { %3019 = vmatmul.msk.f32.gmra.mxu2 %vm1778_vm14, %v5570_v38  ;;  %3051 = vmatmul.msk.f32.gmra.mxu3 %vm1779_vm4, %v5570_v38  ;;  %vm5627_vm15 = vcmp.lt.f32.partialorder %v5625_v45, %v5626_v42  ;;  %vm5641_vm14 = vcmp.lt.f32.partialorder %v5639_v4, %v5640_v37  ;;  %vm5642_vm4 = vcmp.lt.f32.partialorder %v4527_v49, %v4521_v33  ;;  %v2368_v33 = vsel %vm2239_vm1, 1, %v5595_v25  ;;  %v5647_v49 = vld [vmem:[#allocation50_spill] sm:$0xff] }
 0x3fa   : > { %2391 = vperm.xlu0 %3236, %v2344_v23   ;;  %v5612_v23 = vld [vmem:[#allocation24_spill] sm:$0xff] }
 0x3fb   : > { %vm5614_vm5 = vcmp.lt.f32.partialorder %v5612_v23, %v5613_v20  ;;  %v5628_v23 = vld [vmem:[#allocation34_spill] sm:$0xff]  ;;  %v5629_v20 = vld [vmem:[#allocation35_spill] sm:$0xff] }
 0x3fc   : > { %v2343_v63 = vsel %vm5614_vm5, 1, %v5595_v25  ;;  %vm5630_vm12 = vcmp.lt.f32.partialorder %v5628_v23, %v5629_v20  ;;  %vm5643_vm5 = vcmp.lt.f32.partialorder %v4825_v3, %v4847_v10  ;;  %v5648_v3 = vld [vmem:[#allocation49_spill] sm:$0xff]  ;;  %v5654_v20 = vld [vmem:[#allocation52_spill] sm:$0xff] }
 0x3fd   : > { %v5653_v23 = vld [vmem:[#allocation53_spill] sm:$0xff] }
 0x3fe   : > { %vm5655_vm1 = vcmp.lt.f32.partialorder %v5653_v23, %v5654_v20  ;;  %v2306_v23 = vld [vmem:[#allocation3] sm:$0xff]  ;;  %v5659_v20 = vld [vmem:[#allocation41_spill] sm:$0xff] }
 0x3ff   : > { %2373 = vperm.xlu1 %3237, %v2338_v59   ;;  %v5615_v59 = vld [vmem:[#allocation48_spill] sm:$0xff] }
 0x400   : > { %vm5617_vm9 = vcmp.lt.f32.partialorder %v5615_v59, %v5616_v26  ;;  %v2359_v59 = vsel %vm5631_vm11, 1, %v5595_v25  ;;  %v2348_v26 = vsel %vm5634_vm10, 1, %v5595_v25  ;;  %vm5657_vm10 = vcmp.lt.f32.partialorder %v4738_v55, %v4804_v31 }
 0x401   : > { %v2353_v40 = vsel %vm5617_vm9, 1, %v5595_v25  ;;  %vm5644_vm9 = vcmp.lt.f32.partialorder %v4492_v1, %v4488_v58  ;;  %v1659_v58 = vcvt.f32.s32 %v5064_v13  ;;  %v5650_v1 = vld [vmem:[#allocation55_spill] sm:$0xff]  ;;  %v2360_v13 = vsel %vm5655_vm1, 1, %v5595_v25 }
 0x402   : > { %2400 = vperm.xlu0 %3236, %v2347_v41   ;;  %v2354_v21 = vsel %vm5644_vm9, 1, %v5595_v25 }
 0x403   : > { %v1660_v45 = vshll.u32 %v1659_v58, 16 }
 0x406   : > { %2376 = vperm.xlu2 %3238, %v2339_v34   ;;  %v5618_v34 = vld [vmem:[#allocation22_spill] sm:$0xff] }
 0x407   : > { %2382 = vperm.xlu1 %3237, %v2341_v18   ;;  %vm5620_vm13 = vcmp.lt.f32.partialorder %v5618_v34, %v5619_v46  ;;  %v5621_v18 = vld [vmem:[#allocation27_spill] sm:$0xff]  ;;  %v2362_v34 = vsel %vm5638_vm2, 1, %v5595_v25  ;;  %v2351_v46 = vsel %vm5641_vm14, 1, %v5595_v25 }
 0x408   : > { %v2342_v9 = vsel %vm5620_vm13, 1, %v5595_v25  ;;  %vm5623_vm3 = vcmp.lt.f32.partialorder %v5621_v18, %v5622_v12  ;;  %v2365_v18 = vsel %vm5643_vm5, 1, %v5595_v25  ;;  %vm5646_vm13 = vcmp.lt.f32.partialorder %v4630_v17, %v5645_v54 }
 0x409   : > { %v2346_v60 = vsel %vm5623_vm3, 1, %v5595_v25  ;;  %v2358_v12 = vsel %vm5646_vm13, 1, %v5595_v25  ;;  %vm5649_vm3 = vcmp.lt.f32.partialorder %v5647_v49, %v5648_v3  ;;  %v1724_v54 = vshll.u32 %v1723_v14, 16  ;;  %v2305_v49 = vld [vmem:[#allocation3 + $0xb0] sm:$0xff] }
 0x40a   : > { %2409 = vperm.xlu0 %3236, %v2350_v61   ;;  %v2356_v61 = vsel %vm5624_vm8, 1, %v5595_v25  ;;  %v2357_v10 = vsel %vm5649_vm3, 1, %v5595_v25 }
 0x40e   : > { %2379 = vperm.xlu2 %3238, %v2340_v53   ;;  %v2345_v53 = vsel %vm5627_vm15, 1, %v5595_v25  ;;  %vm5656_vm15 = vcmp.lt.f32.partialorder %v4800_v43, %v4821_v36  ;;  %v2363_v43 = vsel %vm5657_vm10, 1, %v5595_v25  ;;  %v1691_v36 = vcvt.f32.s32 %v5084_v29 }
 0x40f   : > { %2388 = vperm.xlu1 %3237, %v2343_v63   ;;  %v2349_v63 = vsel %vm5630_vm12, 1, %v5595_v25  ;;  %v2366_v29 = vsel %vm2237_vm6, 1, %v5595_v25 }
 0x410   : > { %v1692_v55 = vshll.u32 %v1691_v36, 16 }
 0x412   : > { %2418 = vperm.xlu0 %3236, %v2353_v40   ;;  %v5635_v40 = vld [vmem:[#allocation46_spill] sm:$0xff] }
 0x414   : > { %v2012_v41 = vpop.f32.mrf.mxu2  ;;  %v2125_v62 = vpop.f32.mrf.mxu3 }
 0x415   : > { %v5161_v7 = vadd.f32 %v2125_v62, %v2012_v41  ;;  %v5636_v41 = vld [vmem:[#allocation45_spill] sm:$0xff] }
 0x416   : > { %2385 = vperm.xlu2 %3238, %v2342_v9   ;;  %vm5637_vm0 = vcmp.lt.f32.partialorder %v5635_v40, %v5636_v41  ;;  %v2355_v9 = vsel %vm5642_vm4, 1, %v5595_v25 }
 0x417   : > { %2397 = vperm.xlu1 %3237, %v2346_v60   ;;  %v2352_v62 = vsel %vm5637_vm0, 1, %v5595_v25  ;;  %v5651_v60 = vld [vmem:[#allocation54_spill] sm:$0xff] }
 0x418   : > { %vm5652_vm8 = vcmp.lt.f32.partialorder %v5650_v1, %v5651_v60  ;;  %v2307_v60 = vld [vmem:[#allocation3 + $0xd8] sm:$0xff] }
 0x419   : > { %v2361_v17 = vsel %vm5652_vm8, 1, %v5595_v25 }
 0x41a   : > { %2427 = vperm.xlu0 %3236, %v2356_v61  }
 0x41c   : > { %v5232_v6 = vpop.f32.mrf.mxu2  ;;  %v5234_v56 = vpop.f32.mrf.mxu3 }
 0x41e   : > { %2394 = vperm.xlu2 %3238, %v2345_v53  }
 0x41f   : > { %2406 = vperm.xlu1 %3237, %v2349_v63   ;;  %v1675_v63 = vcvt.f32.s32 %v5074_v32 }
 0x421   : > { %v1676_v35 = vshll.u32 %v1675_v63, 16  ;;  %v5661_v63 = vld [vmem:[#allocation44_spill] sm:$0xff] }
 0x422   : > { %2436 = vperm.xlu0 %3236, %v2359_v59   ;;  %v2364_v59 = vsel %vm5656_vm15, 1, %v5595_v25 }
 0x426   : > { %2403 = vperm.xlu2 %3238, %v2348_v26  }
 0x427   : > { %2415 = vperm.xlu1 %3237, %v2352_v62   ;;  %v2367_v62 = vsel %vm2238_vm7, 1, %v5595_v25 }
 0x42a   : > { %2445 = vperm.xlu0 %3236, %v2362_v34  }
 0x42d   : > { %v5249_v40 = vpop.f32.mrf.mxu2  ;;  %v5251_v32 = vpop.f32.mrf.mxu3 }
 0x42e   : > { %2412 = vperm.xlu2 %3238, %v2351_v46  }
 0x42f   : > { %2424 = vperm.xlu1 %3237, %v2355_v9   ;;  %v1708_v9 = vshll.u32 %v1707_v47, 16  ;;  %v5665_v47 = vld [vmem:[#allocation59_spill] sm:$0xff] }
 0x432   : > { %2454 = vperm.xlu0 %3236, %v2365_v18  }
 0x435   : > { %v5271_v15 = vpop.f32.mrf.mxu2  ;;  %v5273_v37 = vpop.f32.mrf.mxu3 }
 0x436   : > { %2421 = vperm.xlu2 %3238, %v2354_v21  }
 0x437   : > { %2433 = vperm.xlu1 %3237, %v2358_v12  }
 0x43a   : > { %2463 = vperm.xlu0 %3236, %v2368_v33  }
 0x43e   : > { %2430 = vperm.xlu2 %3238, %v2357_v10  }
 0x43f   : > { %2442 = vperm.xlu1 %3237, %v2361_v17   ;;  %v5658_v17 = vld [vmem:[#allocation43_spill] sm:$0xff] }
 0x440   : > { %v2087_v11 = vadd.f32 %v5658_v17, %v4956_v57 }
 0x441   : > { %v1657_v61 = vpop.xlane.xlu1 %1656 }
 0x442   : > { %v1658_v42 = vcvt.f32.s32 %v1657_v61 }
 0x444   : > { %v1661_v53 = vadd.s32 %v1660_v45, %v1658_v42  ;;  %v5280_v27 = vpop.f32.mrf.mxu2  ;;  %v5282_v25 = vpop.f32.mrf.mxu3 }
 0x446   : > { %2439 = vperm.xlu2 %3238, %v2360_v13   ;;  %vm1780_vm12 = vcmp.eq.s32.totalorder %v3703_v2, %v1661_v53  ;;  %vm1781_vm11 = vcmp.eq.s32.totalorder %v3712_v5, %v1661_v53  ;;  %v2308_v53 = vld [vmem:[#allocation3 + $0x18] sm:$0xff] }
 0x447   : > { %2451 = vperm.xlu1 %3237, %v2364_v59   ;;  %3020 = vmatmul.msk.f32.gmra.mxu2 %vm1780_vm12, %v5570_v38  ;;  %v5662_v59 = vld [vmem:[#allocation56_spill] sm:$0xff] }
 0x448   : > { %3052 = vmatmul.msk.f32.gmra.mxu3 %vm1781_vm11, %v5570_v38  ;;  %v2090_v57 = vadd.f32 %v5662_v59, %v5661_v63 }
 0x449   : > { %v1673_v50 = vpop.xlane.xlu2 %1672 }
 0x44a   : > { %v1674_v26 = vcvt.f32.s32 %v1673_v50 }
 0x44c   : > { %v1677_v41 = vadd.s32 %v1676_v35, %v1674_v26  ;;  %v5293_v58 = vpop.f32.mrf.mxu2  ;;  %v5295_v1 = vpop.f32.mrf.mxu3 }
 0x44e   : > { %2448 = vperm.xlu2 %3238, %v2363_v43   ;;  %vm1782_vm0 = vcmp.eq.s32.totalorder %v3703_v2, %v1677_v41  ;;  %vm1783_vm2 = vcmp.eq.s32.totalorder %v3712_v5, %v1677_v41  ;;  %v2315_v43 = vld [vmem:[#allocation3 + $0xe8] sm:$0xff] }
 0x44f   : > { %2460 = vperm.xlu1 %3237, %v2367_v62   ;;  %3021 = vmatmul.msk.f32.gmra.mxu2 %vm1782_vm0, %v5570_v38 }
 0x450   : > { %3053 = vmatmul.msk.f32.gmra.mxu3 %vm1783_vm2, %v5570_v38 }
 0x451   : > { %v1689_v34 = vpop.xlane.xlu0 %1688 }
 0x452   : > { %v1690_v31 = vcvt.f32.s32 %v1689_v34  ;;  %v2310_v34 = vld [vmem:[#allocation3 + $0x68] sm:$0xff] }
 0x454   : > { %v1693_v4 = vadd.s32 %v1692_v55, %v1690_v31  ;;  %v5306_v26 = vpop.f32.mrf.mxu2  ;;  %v5308_v41 = vpop.f32.mrf.mxu3  ;;  %v2309_v55 = vld [vmem:[#allocation3 + $0x50] sm:$0xff] }
 0x455   : > { %v5663_v31 = vld [vmem:[#allocation57_spill] sm:$0xff] }
 0x456   : > { %2457 = vperm.xlu2 %3238, %v2366_v29   ;;  %vm1784_vm7 = vcmp.eq.s32.totalorder %v3703_v2, %v1693_v4  ;;  %vm1785_vm14 = vcmp.eq.s32.totalorder %v3712_v5, %v1693_v4  ;;  %v5664_v4 = vld [vmem:[#allocation58_spill] sm:$0xff] }
 0x457   : > { %3022 = vmatmul.msk.f32.gmra.mxu2 %vm1784_vm7, %v5570_v38  ;;  %v2093_v29 = vadd.f32 %v5664_v4, %v5663_v31  ;;  %v2322_v4 = vld [vmem:[#allocation3 + $0x58] sm:$0xff] }
 0x458   : > { %3054 = vmatmul.msk.f32.gmra.mxu3 %vm1785_vm14, %v5570_v38 }
 0x459   : > { %v1705_v46 = vpop.xlane.xlu1 %1704 }
 0x45a   : > { %v1706_v18 = vcvt.f32.s32 %v1705_v46  ;;  %v5666_v46 = vld [vmem:[#allocation60_spill] sm:$0xff] }
 0x45c   : > { %v1709_v0 = vadd.s32 %v1708_v9, %v1706_v18  ;;  %v2096_v9 = vadd.f32 %v5666_v46, %v5665_v47 }
 0x45e   : > { %vm1786_vm6 = vcmp.eq.s32.totalorder %v3703_v2, %v1709_v0  ;;  %vm1787_vm4 = vcmp.eq.s32.totalorder %v3712_v5, %v1709_v0 }
 0x45f   : > { %3023 = vmatmul.msk.f32.gmra.mxu2 %vm1786_vm6, %v5570_v38 }
 0x460   : > { %3055 = vmatmul.msk.f32.gmra.mxu3 %vm1787_vm4, %v5570_v38 }
 0x461   : > { %v1721_v21 = vpop.xlane.xlu2 %1720 }
 0x462   : > { %v1722_v12 = vcvt.f32.s32 %v1721_v21 }
 0x464   : > { %v1725_v33 = vadd.s32 %v1724_v54, %v1722_v12  ;;  %v2371_v3 = vpop.permute.xlu0 %2370  ;;  %v2033_v54 = vpop.f32.mrf.mxu2 }
 0x465   : > { %vm2465_vm5 = vcmp.eq.s32.totalorder %v2371_v3, 1  ;;  %v2146_v12 = vpop.f32.mrf.mxu3  ;;  %v2311_v3 = vld [vmem:[#allocation3 + $0x30] sm:$0xff] }
 0x466   : > { %vm1788_vm9 = vcmp.eq.s32.totalorder %v3703_v2, %v1725_v33  ;;  %vm1789_vm13 = vcmp.eq.s32.totalorder %v3712_v5, %v1725_v33  ;;  %v2497_v10 = vsel %vm2465_vm5, %v2081_v52, %v2305_v49  ;;  %v2312_v2 = vld [vmem:[#allocation3 + $0x48] sm:$0xff]  ;;  %v2102_v5 = vadd.f32 %v5024_v8, %v5022_v16  ;;  %v2318_v33 = vld [vmem:[#allocation3 + $0xf0] sm:$0xff]  ;;  %v2313_v52 = vld [vmem:[#allocation3 + $0x80] sm:$0xff] }
 0x467   : > { %3024 = vmatmul.msk.f32.gmra.mxu2 %vm1788_vm9, %v5570_v38  ;;  %2529 = vst [vmem:[#allocation3 + $0xb0] sm:$0xff] %v2497_v10  ;;  %v5667_v10 = vld [vmem:[#allocation61_spill] sm:$0xff] }
 0x468   : > { %3056 = vmatmul.msk.f32.gmra.mxu3 %vm1789_vm13, %v5570_v38  ;;  %v5660_v38 = vld [vmem:[#allocation42_spill] sm:$0xff] }
 0x469   : > { %v2377_v48 = vpop.permute.xlu2 %2376  ;;  %v2084_v13 = vadd.f32 %v5660_v38, %v5659_v20  ;;  %v2316_v20 = vld [vmem:[#allocation3 + $0xb8] sm:$0xff]  ;;  %v2314_v38 = vld [vmem:[#allocation3 + $0x88] sm:$0xff] }
 0x46a   : > { %vm2467_vm3 = vcmp.eq.s32.totalorder %v2377_v48, 1 }
 0x46b   : > { %v2499_v61 = vsel %vm2467_vm3, %v2087_v11, %v2307_v60  ;;  %v5668_v60 = vld [vmem:[#allocation62_spill] sm:$0xff] }
 0x46c   : > { %2531 = vst [vmem:[#allocation3 + $0xd8] sm:$0xff] %v2499_v61  ;;  %v2392_v45 = vpop.permute.xlu0 %2391  ;;  %v2099_v17 = vadd.f32 %v5668_v60, %v5667_v10  ;;  %v2326_v10 = vld [vmem:[#allocation3 + $0x90] sm:$0xff]  ;;  %v2144_v60 = vadd.f32 %v5308_v41, %v5306_v26 }
 0x46d   : > { %vm2472_vm8 = vcmp.eq.s32.totalorder %v2392_v45, 1  ;;  %v2129_v45 = vadd.f32 %v5234_v56, %v5232_v6  ;;  %v2324_v6 = vld [vmem:[#allocation3 + $0xc8] sm:$0xff]  ;;  %v2138_v56 = vadd.f32 %v5282_v25, %v5280_v27  ;;  %v2327_v25 = vld [vmem:[#allocation3 + $0x70] sm:$0xff] }
 0x46e   : > { %v2504_v42 = vsel %vm2472_vm8, %v2102_v5, %v2312_v2  ;;  %v2321_v5 = vld [vmem:[#allocation3 + $0x38] sm:$0xff] }
 0x46f   : > { %2536 = vst [vmem:[#allocation3 + $0x48] sm:$0xff] %v2504_v42  ;;  %v5321_v42 = vpop.f32.mrf.mxu2 }
 0x471   : > { %v2380_v50 = vpop.permute.xlu2 %2379  ;;  %v2374_v35 = vpop.permute.xlu1 %2373 }
 0x472   : > { %vm2468_vm1 = vcmp.eq.s32.totalorder %v2380_v50, 1  ;;  %vm2466_vm15 = vcmp.eq.s32.totalorder %v2374_v35, 1 }
 0x473   : > { %v2500_v16 = vsel %vm2468_vm1, %v2090_v57, %v2308_v53  ;;  %v2498_v8 = vsel %vm2466_vm15, %v2084_v13, %v2306_v23  ;;  %v5323_v53 = vpop.f32.mrf.mxu3 }
 0x474   : > { %2532 = vst [vmem:[#allocation3 + $0x18] sm:$0xff] %v2500_v16  ;;  %v2401_v36 = vpop.permute.xlu0 %2400 }
 0x475   : > { %2530 = vst [vmem:[#allocation3] sm:$0xff] %v2498_v8  ;;  %vm2475_vm12 = vcmp.eq.s32.totalorder %v2401_v36, 1  ;;  %v2319_v8 = vld [vmem:[#allocation3 + $0x8] sm:$0xff] }
 0x476   : > { %v2507_v62 = vsel %vm2475_vm12, %v5040_v28, %v2315_v43  ;;  %v2317_v43 = vld [vmem:[#allocation3 + $0x60] sm:$0xff] }
 0x477   : > { %2539 = vst [vmem:[#allocation3 + $0xe8] sm:$0xff] %v2507_v62  ;;  %v5329_v35 = vpop.f32.mrf.mxu2 }
 0x479   : > { %v2386_v18 = vpop.permute.xlu2 %2385  ;;  %v2383_v0 = vpop.permute.xlu1 %2382 }
 0x47a   : > { %vm2470_vm11 = vcmp.eq.s32.totalorder %v2386_v18, 1  ;;  %vm2469_vm10 = vcmp.eq.s32.totalorder %v2383_v0, 1  ;;  %v2330_v0 = vld [vmem:[#allocation3 + $0xd0] sm:$0xff] }
 0x47b   : > { %v2502_v14 = vsel %vm2470_vm11, %v2096_v9, %v2310_v34  ;;  %v2501_v21 = vsel %vm2469_vm10, %v2093_v29, %v2309_v55  ;;  %v5331_v16 = vpop.f32.mrf.mxu3  ;;  %v2147_v34 = vadd.f32 %v2146_v12, %v2033_v54  ;;  %v2320_v29 = vld [vmem:[#allocation3 + $0x78] sm:$0xff]  ;;  %v2325_v12 = vld [vmem:[#allocation3 + $0xe0] sm:$0xff] }
 0x47c   : > { %2534 = vst [vmem:[#allocation3 + $0x68] sm:$0xff] %v2502_v14  ;;  %v2410_v28 = vpop.permute.xlu0 %2409 }
 0x47d   : > { %2533 = vst [vmem:[#allocation3 + $0x50] sm:$0xff] %v2501_v21  ;;  %vm2478_vm0 = vcmp.eq.s32.totalorder %v2410_v28, 1 }
 0x47e   : > { %v2510_v49 = vsel %vm2478_vm0, %v5062_v24, %v2318_v33  ;;  %v2323_v33 = vld [vmem:[#allocation3 + $0x40] sm:$0xff] }
 0x47f   : > { %2542 = vst [vmem:[#allocation3 + $0xf0] sm:$0xff] %v2510_v49  ;;  %v2042_v46 = vpop.f32.mrf.mxu2 }
 0x481   : > { %v2395_v11 = vpop.permute.xlu2 %2394  ;;  %v2389_v48 = vpop.permute.xlu1 %2388 }
 0x482   : > { %vm2473_vm2 = vcmp.eq.s32.totalorder %v2395_v11, 1  ;;  %vm2471_vm7 = vcmp.eq.s32.totalorder %v2389_v48, 1 }
 0x483   : > { %v2505_v61 = vsel %vm2473_vm2, %v5030_v19, %v2313_v52  ;;  %v2503_v2 = vsel %vm2471_vm7, %v2099_v17, %v2311_v3  ;;  %v2155_v9 = vpop.f32.mrf.mxu3  ;;  %v2328_v3 = vld [vmem:[#allocation3 + $0xc0] sm:$0xff]  ;;  %v2150_v17 = vadd.f32 %v5323_v53, %v5321_v42 }
 0x484   : > { %2537 = vst [vmem:[#allocation3 + $0x80] sm:$0xff] %v2505_v61  ;;  %v2419_v24 = vpop.permute.xlu0 %2418  ;;  %v2156_v14 = vadd.f32 %v2155_v9, %v2042_v46  ;;  %v2331_v61 = vld [vmem:[#allocation3 + $0x10] sm:$0xff] }
 0x485   : > { %2535 = vst [vmem:[#allocation3 + $0x30] sm:$0xff] %v2503_v2  ;;  %vm2481_vm14 = vcmp.eq.s32.totalorder %v2419_v24, 1  ;;  %v2329_v2 = vld [vmem:[#allocation3 + $0xa8] sm:$0xff] }
 0x486   : > { %v2513_v23 = vsel %vm2481_vm14, %v2129_v45, %v2321_v5  ;;  %v2153_v5 = vadd.f32 %v5331_v16, %v5329_v35 }
 0x487   : > { %2545 = vst [vmem:[#allocation3 + $0x38] sm:$0xff] %v2513_v23  ;;  %v2045_v11 = vpop.f32.mrf.mxu2 }
 0x489   : > { %v2404_v13 = vpop.permute.xlu2 %2403  ;;  %v2398_v63 = vpop.permute.xlu1 %2397 }
 0x48a   : > { %vm2476_vm6 = vcmp.eq.s32.totalorder %v2404_v13, 1  ;;  %vm2474_vm4 = vcmp.eq.s32.totalorder %v2398_v63, 1 }
 0x48b   : > { %v2508_v19 = vsel %vm2476_vm6, %v5047_v30, %v2316_v20  ;;  %v2506_v59 = vsel %vm2474_vm4, %v5034_v44, %v2314_v38  ;;  %v2123_v30 = vadd.f32 %v5147_v22, %v5145_v39  ;;  %v2132_v39 = vadd.f32 %v5251_v32, %v5249_v40  ;;  %v2158_v48 = vpop.f32.mrf.mxu3  ;;  %v2332_v38 = vld [vmem:[#allocation3 + $0x28] sm:$0xff] }
 0x48c   : > { %2540 = vst [vmem:[#allocation3 + $0xb8] sm:$0xff] %v2508_v19  ;;  %v2428_v57 = vpop.permute.xlu0 %2427  ;;  %v2135_v40 = vadd.f32 %v5273_v37, %v5271_v15  ;;  %v2141_v32 = vadd.f32 %v5295_v1, %v5293_v58  ;;  %v2159_v45 = vadd.f32 %v2158_v48, %v2045_v11 }
 0x48d   : > { %2538 = vst [vmem:[#allocation3 + $0x88] sm:$0xff] %v2506_v59  ;;  %vm2484_vm5 = vcmp.eq.s32.totalorder %v2428_v57, 1 }
 0x48e   : > { %v2516_v50 = vsel %vm2484_vm5, %v2138_v56, %v2324_v6  ;;  %v2333_v56 = vld [vmem:[#allocation3 + $0xa0] sm:$0xff] }
 0x48f   : > { %2548 = vst [vmem:[#allocation3 + $0xc8] sm:$0xff] %v2516_v50 }
 0x491   : > { %v2413_v44 = vpop.permute.xlu2 %2412  ;;  %v2407_v36 = vpop.permute.xlu1 %2406 }
 0x492   : > { %vm2479_vm9 = vcmp.eq.s32.totalorder %v2413_v44, 1  ;;  %vm2477_vm13 = vcmp.eq.s32.totalorder %v2407_v36, 1 }
 0x493   : > { %v2511_v62 = vsel %vm2479_vm9, %v2123_v30, %v2319_v8  ;;  %v2509_v27 = vsel %vm2477_vm13, %v5054_v51, %v2317_v43  ;;  %v2334_v43 = vld [vmem:[#allocation3 + $0xf8] sm:$0xff] }
 0x494   : > { %2543 = vst [vmem:[#allocation3 + $0x8] sm:$0xff] %v2511_v62  ;;  %v2437_v55 = vpop.permute.xlu0 %2436 }
 0x495   : > { %2541 = vst [vmem:[#allocation3 + $0x60] sm:$0xff] %v2509_v27  ;;  %vm2487_vm3 = vcmp.eq.s32.totalorder %v2437_v55, 1 }
 0x496   : > { %v2519_v31 = vsel %vm2487_vm3, %v2147_v34, %v2327_v25  ;;  %v2335_v25 = vld [vmem:[#allocation3 + $0x20] sm:$0xff] }
 0x497   : > { %2551 = vst [vmem:[#allocation3 + $0x70] sm:$0xff] %v2519_v31 }
 0x499   : > { %v2422_v22 = vpop.permute.xlu2 %2421  ;;  %v2416_v47 = vpop.permute.xlu1 %2415 }
 0x49a   : > { %vm2482_vm8 = vcmp.eq.s32.totalorder %v2422_v22, 1  ;;  %vm2480_vm1 = vcmp.eq.s32.totalorder %v2416_v47, 1 }
 0x49b   : > { %v2514_v51 = vsel %vm2482_vm8, %v2132_v39, %v2322_v4  ;;  %v2512_v18 = vsel %vm2480_vm1, %v5161_v7, %v2320_v29  ;;  %v2336_v39 = vld [vmem:[#allocation3 + $0x98] sm:$0xff] }
 0x49c   : > { %2546 = vst [vmem:[#allocation3 + $0x58] sm:$0xff] %v2514_v51  ;;  %v2446_v21 = vpop.permute.xlu0 %2445 }
 0x49d   : > { %2544 = vst [vmem:[#allocation3 + $0x78] sm:$0xff] %v2512_v18  ;;  %vm2490_vm15 = vcmp.eq.s32.totalorder %v2446_v21, 1 }
 0x49e   : > { %v2522_v54 = vsel %vm2490_vm15, %v2156_v14, %v2330_v0 }
 0x49f   : > { %2554 = vst [vmem:[#allocation3 + $0xd0] sm:$0xff] %v2522_v54 }
 0x4a1   : > { %v2431_v28 = vpop.permute.xlu2 %2430  ;;  %v2425_v49 = vpop.permute.xlu1 %2424 }
 0x4a2   : > { %vm2485_vm12 = vcmp.eq.s32.totalorder %v2431_v28, 1  ;;  %vm2483_vm11 = vcmp.eq.s32.totalorder %v2425_v49, 1 }
 0x4a3   : > { %v2517_v7 = vsel %vm2485_vm12, %v2141_v32, %v2325_v12  ;;  %v2515_v52 = vsel %vm2483_vm11, %v2135_v40, %v2323_v33 }
 0x4a4   : > { %2549 = vst [vmem:[#allocation3 + $0xe0] sm:$0xff] %v2517_v7  ;;  %v2455_v19 = vpop.permute.xlu0 %2454 }
 0x4a5   : > { %2547 = vst [vmem:[#allocation3 + $0x40] sm:$0xff] %v2515_v52  ;;  %vm2493_vm6 = vcmp.eq.s32.totalorder %v2455_v19, 1 }
 0x4a9   : > { %v2440_v15 = vpop.permute.xlu2 %2439  ;;  %v2434_v37 = vpop.permute.xlu1 %2433 }
 0x4aa   : > { %vm2488_vm10 = vcmp.eq.s32.totalorder %v2440_v15, 1  ;;  %vm2486_vm0 = vcmp.eq.s32.totalorder %v2434_v37, 1 }
 0x4ab   : > { %v2520_v58 = vsel %vm2488_vm10, %v2150_v17, %v2328_v3  ;;  %v2518_v1 = vsel %vm2486_vm0, %v2144_v60, %v2326_v10 }
 0x4ac   : > { %2552 = vst [vmem:[#allocation3 + $0xc0] sm:$0xff] %v2520_v58  ;;  %v2464_v31 = vpop.permute.xlu0 %2463 }
 0x4ad   : > { %2550 = vst [vmem:[#allocation3 + $0x90] sm:$0xff] %v2518_v1  ;;  %vm2496_vm9 = vcmp.eq.s32.totalorder %v2464_v31, 1 }
 0x4b1   : > { %v2449_v26 = vpop.permute.xlu2 %2448  ;;  %v2443_v41 = vpop.permute.xlu1 %2442 }
 0x4b2   : > { %vm2491_vm2 = vcmp.eq.s32.totalorder %v2449_v26, 1  ;;  %vm2489_vm7 = vcmp.eq.s32.totalorder %v2443_v41, 1 }
 0x4b3   : > { %v2523_v24 = vsel %vm2491_vm2, %v2159_v45, %v2331_v61  ;;  %v2521_v42 = vsel %vm2489_vm7, %v2153_v5, %v2329_v2 }
 0x4b4   : > { %2555 = vst [vmem:[#allocation3 + $0x10] sm:$0xff] %v2523_v24 }
 0x4b5   : > { %2553 = vst [vmem:[#allocation3 + $0xa8] sm:$0xff] %v2521_v42 }
 0x4b9   : > { %v2452_v53 = vpop.permute.xlu1 %2451  ;;  %v2458_v35 = vpop.permute.xlu2 %2457 }
 0x4ba   : > { %vm2492_vm14 = vcmp.eq.s32.totalorder %v2452_v53, 1  ;;  %vm2494_vm4 = vcmp.eq.s32.totalorder %v2458_v35, 1 }
 0x4c1   : > { %v2461_v36 = vpop.permute.xlu1 %2460 }
 0x4c2   : > { %vm2495_vm5 = vcmp.eq.s32.totalorder %v2461_v36, 1 }
 0x4ca   : > { %v2048_v23 = vpop.f32.mrf.mxu2 }
 0x4cb   : > { %v2161_v20 = vpop.f32.mrf.mxu3 }
 0x4cc   : > { %v2162_v13 = vadd.f32 %v2161_v20, %v2048_v23 }
 0x4ce   : > { %v2524_v63 = vsel %vm2492_vm14, %v2162_v13, %v2332_v38 }
 0x4cf   : > { %2556 = vst [vmem:[#allocation3 + $0x28] sm:$0xff] %v2524_v63 }
 0x4d2   : > { %v2051_v59 = vpop.f32.mrf.mxu2 }
 0x4d3   : > { %v2164_v6 = vpop.f32.mrf.mxu3 }
 0x4d4   : > { %v2165_v57 = vadd.f32 %v2164_v6, %v2051_v59 }
 0x4d6   : > { %v2525_v50 = vsel %vm2493_vm6, %v2165_v57, %v2333_v56 }
 0x4d7   : > { %2557 = vst [vmem:[#allocation3 + $0xa0] sm:$0xff] %v2525_v50 }
 0x4da   : > { %v2054_v16 = vpop.f32.mrf.mxu2 }
 0x4db   : > { %v2167_v8 = vpop.f32.mrf.mxu3 }
 0x4dc   : > { %v2168_v30 = vadd.f32 %v2167_v8, %v2054_v16 }
 0x4de   : > { %v2526_v44 = vsel %vm2494_vm4, %v2168_v30, %v2334_v43 }
 0x4df   : > { %2558 = vst [vmem:[#allocation3 + $0xf8] sm:$0xff] %v2526_v44 }
 0x4e2   : > { %v2057_v62 = vpop.f32.mrf.mxu2 }
 0x4e3   : > { %v2170_v27 = vpop.f32.mrf.mxu3 }
 0x4e4   : > { %v2171_v34 = vadd.f32 %v2170_v27, %v2057_v62 }
 0x4e6   : > { %v2527_v55 = vsel %vm2495_vm5, %v2171_v34, %v2335_v25 }
 0x4e7   : > { %2559 = vst [vmem:[#allocation3 + $0x20] sm:$0xff] %v2527_v55 }
 0x4ea   : > { %v2060_v4 = vpop.f32.mrf.mxu2 }
 0x4eb   : > { %v2173_v29 = vpop.f32.mrf.mxu3  ;;  %2564 = sbr.rel (%p3057_p2) target bundleno = 1286 (0x506), region = 48 }
 0x4ec   : > { %v2174_v22 = vadd.f32 %v2173_v29, %v2060_v4 }
 0x4ee   : > { %v2528_v47 = vsel %vm2496_vm9, %v2174_v22, %v2336_v39 }
 0x4ef   : > { %2560 = vst [vmem:[#allocation3 + $0x98] sm:$0xff] %v2528_v47 }
 0x4f0   : > { %v2565_v46 = vld [vmem:[#allocation3 + $0xb0] sm:$0xff]  ;;  %v2566_v9 = vld [vmem:[#allocation3] sm:$0xff]  ;;  %v2567_v18 = vld [vmem:[#allocation3 + $0xd8] sm:$0xff] }
 0x4f1   : > { %v5353_v51 = vld [vmem:[%s5452_s4] ss:$0 sm:$0xff]  ;;  %v2568_v0 = vld [vmem:[#allocation3 + $0x18] sm:$0xff]  ;;  %v2569_v14 = vld [vmem:[#allocation3 + $0x50] sm:$0xff] }
 0x4f2   : > { %v2570_v21 = vld [vmem:[#allocation3 + $0x68] sm:$0xff]  ;;  %v2571_v54 = vld [vmem:[#allocation3 + $0x30] sm:$0xff]  ;;  %v2601_v12 = vadd.f32 %v5353_v51, %v2565_v46  ;;  %v2602_v33 = vadd.f32 %v5353_v51, %v2566_v9  ;;  %v2603_v40 = vadd.f32 %v5353_v51, %v2567_v18  ;;  %v2604_v32 = vadd.f32 %v5353_v51, %v2568_v0  ;;  %v2573_v49 = vld [vmem:[#allocation3 + $0x80] sm:$0xff] }
 0x4f3   : > { %v2572_v28 = vld [vmem:[#allocation3 + $0x48] sm:$0xff]  ;;  %v2605_v52 = vadd.f32 %v5353_v51, %v2569_v14  ;;  %v2606_v3 = vadd.f32 %v5353_v51, %v2570_v21  ;;  %v2607_v10 = vadd.f32 %v5353_v51, %v2571_v54  ;;  %v2576_v15 = vld [vmem:[#allocation3 + $0xb8] sm:$0xff]  ;;  %v2577_v37 = vld [vmem:[#allocation3 + $0x60] sm:$0xff]  ;;  %v2609_v11 = vadd.f32 %v5353_v51, %v2573_v49 }
 0x4f4   : > { %v2574_v7 = vld [vmem:[#allocation3 + $0x88] sm:$0xff]  ;;  %v2608_v60 = vadd.f32 %v5353_v51, %v2572_v28  ;;  %v3067_v58 = vpack.c.bf16 %v2602_v33, %v2601_v12  ;;  %v3072_v1 = vpack.c.bf16 %v2604_v32, %v2603_v40  ;;  %v2578_v61 = vld [vmem:[#allocation3 + $0xf0] sm:$0xff]  ;;  %v2580_v5 = vld [vmem:[#allocation3 + $0x78] sm:$0xff]  ;;  %v2612_v24 = vadd.f32 %v5353_v51, %v2576_v15 }
 0x4f5   : > { %v2575_v17 = vld [vmem:[#allocation3 + $0xe8] sm:$0xff]  ;;  %v2610_v48 = vadd.f32 %v5353_v51, %v2574_v7  ;;  %v3077_v45 = vpack.c.bf16 %v2606_v3, %v2605_v52  ;;  %v2581_v42 = vld [vmem:[#allocation3 + $0x38] sm:$0xff]  ;;  %v2583_v23 = vld [vmem:[#allocation3 + $0x40] sm:$0xff]  ;;  %v2613_v38 = vadd.f32 %v5353_v51, %v2577_v37  ;;  %v2614_v13 = vadd.f32 %v5353_v51, %v2578_v61 }
 0x4f6   : > { %v2579_v2 = vld [vmem:[#allocation3 + $0x8] sm:$0xff]  ;;  %v3082_v26 = vpack.c.bf16 %v2608_v60, %v2607_v10  ;;  %v2611_v41 = vadd.f32 %v5353_v51, %v2575_v17  ;;  %v2582_v53 = vld [vmem:[#allocation3 + $0x58] sm:$0xff]  ;;  %3068 = vst [vmem:[%s3468_s15] sm:$0xff] %v3067_v58   ;;  %v2585_v59 = vld [vmem:[#allocation3 + $0xe0] sm:$0xff]  ;;  %v2616_v57 = vadd.f32 %v5353_v51, %v2580_v5  ;;  %v2617_v50 = vadd.f32 %v5353_v51, %v2581_v42 }
 0x4f7   : > { %v3087_v20 = vpack.c.bf16 %v2610_v48, %v2609_v11  ;;  %v2615_v63 = vadd.f32 %v5353_v51, %v2579_v2  ;;  %v2584_v19 = vld [vmem:[#allocation3 + $0xc8] sm:$0xff]  ;;  %v2586_v6 = vld [vmem:[#allocation3 + $0x90] sm:$0xff]  ;;  %3144 = vst [vmem:[%s3468_s15 + $0x8] sm:$0xff] %v3072_v1   ;;  %v2618_v35 = vadd.f32 %v5353_v51, %v2582_v53  ;;  %v2588_v8 = vld [vmem:[#allocation3 + $0xc0] sm:$0xff]  ;;  %v3097_v30 = vpack.c.bf16 %v2614_v13, %v2613_v38 }
 0x4f8   : > { %v3092_v56 = vpack.c.bf16 %v2612_v24, %v2611_v41  ;;  %v2587_v16 = vld [vmem:[#allocation3 + $0x70] sm:$0xff]  ;;  %v2589_v43 = vld [vmem:[#allocation3 + $0xa8] sm:$0xff]  ;;  %3145 = vst [vmem:[%s3468_s15 + $0x10] sm:$0xff] %v3077_v45   ;;  %v2619_v44 = vadd.f32 %v5353_v51, %v2583_v23  ;;  %v2620_v36 = vadd.f32 %v5353_v51, %v2584_v19  ;;  %v2621_v62 = vadd.f32 %v5353_v51, %v2585_v59  ;;  %v2593_v29 = vld [vmem:[#allocation3 + $0xa0] sm:$0xff] }
 0x4f9   : > { %v2590_v27 = vld [vmem:[#allocation3 + $0xd0] sm:$0xff]  ;;  %v2592_v34 = vld [vmem:[#allocation3 + $0x28] sm:$0xff]  ;;  %3146 = vst [vmem:[%s3468_s15 + $0x18] sm:$0xff] %v3082_v26   ;;  %v3102_v55 = vpack.c.bf16 %v2616_v57, %v2615_v63  ;;  %v2622_v31 = vadd.f32 %v5353_v51, %v2586_v6  ;;  %v2623_v4 = vadd.f32 %v5353_v51, %v2587_v16  ;;  %v2594_v39 = vld [vmem:[#allocation3 + $0xf8] sm:$0xff]  ;;  %v3107_v22 = vpack.c.bf16 %v2618_v35, %v2617_v50 }
 0x4fa   : > { %v2591_v25 = vld [vmem:[#allocation3 + $0x10] sm:$0xff]  ;;  %3147 = vst [vmem:[%s3468_s15 + $0x20] sm:$0xff] %v3087_v20   ;;  %v2624_v47 = vadd.f32 %v5353_v51, %v2588_v8  ;;  %v2625_v46 = vadd.f32 %v5353_v51, %v2589_v43  ;;  %v2626_v9 = vadd.f32 %v5353_v51, %v2590_v27  ;;  %v2595_v18 = vld [vmem:[#allocation3 + $0x20] sm:$0xff]  ;;  %v2596_v0 = vld [vmem:[#allocation3 + $0x98] sm:$0xff]  ;;  %v3112_v14 = vpack.c.bf16 %v2620_v36, %v2619_v44 }
 0x4fb   : > { %3148 = vst [vmem:[%s3468_s15 + $0x28] sm:$0xff] %v3092_v56   ;;  %v2627_v21 = vadd.f32 %v5353_v51, %v2591_v25  ;;  %v2628_v54 = vadd.f32 %v5353_v51, %v2592_v34  ;;  %v3117_v12 = vpack.c.bf16 %v2622_v31, %v2621_v62  ;;  %v2629_v33 = vadd.f32 %v5353_v51, %v2593_v29 }
 0x4fc   : > { %3149 = vst [vmem:[%s3468_s15 + $0x30] sm:$0xff] %v3097_v30   ;;  %v2630_v40 = vadd.f32 %v5353_v51, %v2594_v39  ;;  %v3122_v32 = vpack.c.bf16 %v2624_v47, %v2623_v4  ;;  %v2631_v28 = vadd.f32 %v5353_v51, %v2595_v18  ;;  %v2632_v49 = vadd.f32 %v5353_v51, %v2596_v0 }
 0x4fd   : > { %3150 = vst [vmem:[%s3468_s15 + $0x38] sm:$0xff] %v3102_v55   ;;  %v3127_v7 = vpack.c.bf16 %v2626_v9, %v2625_v46  ;;  %v3132_v52 = vpack.c.bf16 %v2628_v54, %v2627_v21 }
 0x4fe   : > { %3151 = vst [vmem:[%s3468_s15 + $0x40] sm:$0xff] %v3107_v22   ;;  %v3137_v3 = vpack.c.bf16 %v2630_v40, %v2629_v33  ;;  %v3142_v10 = vpack.c.bf16 %v2632_v49, %v2631_v28 }
 0x4ff   : > { %3152 = vst [vmem:[%s3468_s15 + $0x48] sm:$0xff] %v3112_v14  }
 0x500   : > { %3153 = vst [vmem:[%s3468_s15 + $0x50] sm:$0xff] %v3117_v12  }
 0x501   : > { %3154 = vst [vmem:[%s3468_s15 + $0x58] sm:$0xff] %v3122_v32  }
 0x502   : > { %3155 = vst [vmem:[%s3468_s15 + $0x60] sm:$0xff] %v3127_v7  }
 0x503   : > { %3156 = vst [vmem:[%s3468_s15 + $0x68] sm:$0xff] %v3132_v52  }
 0x504   : > { %3157 = vst [vmem:[%s3468_s15 + $0x70] sm:$0xff] %v3137_v3  }
 0x505   : > { %3158 = vst [vmem:[%s3468_s15 + $0x78] sm:$0xff] %v3142_v10  }
 0x506 PF: > { %s3063_s21 = sshll.u32 %s3322_s22, 7  ;;  %s2710_s14 = sshll.u32 %s3468_s15, 4  ;;  %s2711_s14 = int_to_ptr.vmem [resolvable:$true] %s2710_s14 }
 0x507   : > { %s2709_s13 = scalar_lea.hbm %s5453_s5, %s3063_s21  ;;  %s5669_s26 = sand.u32 1, %s3310_s19  }
 0x508   : > { %s2712_s17 = sshll.u32 %s2709_s13, 4  ;;  %s2698_s27 = scalar_lea.sflag [#allocation5], %s5669_s26  ;;  %s2713_s17 = int_to_ptr.hbm [resolvable:$true] %s2712_s17 }
 0x509   : > { %s3254_s7 = sshra.s32 %s2713_s17, 4  ;;  %s3260_s22 = scalar_lea.hbm %s5453_s5, 256  ;;  %s3255_s7 = int_to_ptr.hbm [resolvable:$true] %s3254_s7 }
 0x50a   : > { %s3256_s8 = scalar_lea.hbm %s3255_s7, 128  ;;  %p3261_p7 = scmp.lt.s32.totalorder %s3255_s7, %s5453_s5 }
 0x50b   : > { %p3257_p4 = scmp.ne.s32.totalorder %s3255_s7, %s3256_s8  ;;  %p3262_p8 = scmp.lt.s32.totalorder %s3260_s22, %s3256_s8 }
 0x50d   : > { %p3258_p5 = pnand %p3257_p4, %p3421_p3  ;;  %p3263_p10 = por %p3262_p8, %p3261_p7 }
 0x50f   : > { %p3259_p6 = pneg %p3258_p5 }
 0x511   : > { %p3264_p11 = pnand %p3263_p10, %p3259_p6 }
 0x513   : > { %3267 = shalt.err (!%p3264_p11)
}
 0x514   : > { %s3340_s15 = smov 64   ;;  %s3341_s28 = smov 4  }
 0x515   : > { %3159 = dma.vmem_to_hbm [thread:$0]  (%p3421_p3), %s2711_s14, 2048, %s2713_s17, %s2698_s27, %s3340_s15, %s3340_s15, %s3341_s28  }
 0x516 PF: > { %p3165_p12 = scmp.ge.s32.totalorder %s3334_s25, 2  ;;  %s2727_s29 = sand.u32 1, %s3306_s18  }
 0x517   : > { %s2728_s21 = scalar_lea.sflag [#allocation5], %s2727_s29 }
 0x518   : > { %p3162_p13 = pnand %p3165_p12, %p3431_p9 }
 0x51a   : > { %p3163_p0 = pneg %p3162_p13 }
 0x51c   : > { %3301 = dma.done.wait (%p3163_p0), %s2728_s21, 2048  }
 0x51d   : > { %3303 = vsyncadd (%p3163_p0), %s2728_s21, 4294965248  ;;  %s18_s25 = sadd.s32 1, %s3334_s25   ;;  %s5670_s21 = sld [smem:[#allocation7_spill]] }
 0x51e   : > { %p15_p1 = scmp.ge.s32.totalorder %s18_s25, 6   ;;  %s5671_s22 = sld [smem:[#allocation8_spill]] }
 0x51f   : > { %s5672_s23 = sld [smem:[#allocation9_spill]]  ;;  %s5674_s18 = smov %s3310_s19 }
 0x520   : > { %s5673_s24 = sld [smem:[#allocation10_spill]]  ;;  %s5675_s19 = smov %s3314_s20 }
 0x521   : > { %s5676_s20 = smov %s3439_s9  ;;  %17 = sbr.rel (!%p15_p1) target bundleno = 5 (0x5), region = 92 }
 0x526   :  { %2734 = vsyncpa [#allocation5], 1 }
 0x527   :  { %2736 = vsyncpa [#allocation5 + $0x1], 1 }

</bundles_post_ra>
